<compile_context>
chip_gen: v7x
topology: tpu7x:2x2x1
jax: 0.10.0
libtpu: 0.0.40
codegen_flags: <defaults>
</compile_context>

<pallas_src>
import jax
import jax.numpy as jnp
from jax.experimental import pallas as pl
from jax.experimental.pallas import tpu as pltpu

EMB = 93        # Fourier mapping size (module value)
EMB_PAD = 96    # padded to a sublane-friendly multiple (8 f32 / 16 bf16 rows)
HID = 256       # hidden size
OUT = 4         # color_out_dim (rgb + raw/sigma)
OUT_PAD = 8     # padded so output tiles fill all 8 sublanes (unmasked stores)
DIM = 3         # input point dim


def _make_kernel(act_dtype):
    """act_dtype: dtype for the hidden-layer bias-add/ReLU (bf16 on v6e/v7x, f32 else)."""

    def imap_kernel(p_ref, B_ref,
                    w0_ref, b0_ref, w1_ref, b1_ref,
                    w2_ref, b2_ref, w3_ref, b3_ref,
                    wo_ref, bo_ref, out_ref):
        x = p_ref[...]                                   # (3, tn)  f32, batch on lanes
        B = B_ref[...]                                   # (EMB_PAD, 3) f32

        # Gaussian Fourier phases on the VPU in true f32 (the MXU would truncate the
        # scale-25 phases to bf16); K=3 is a wasted MXU pass anyway.
        phase = (B[:, 0:1] * x[0:1, :]
                 + B[:, 1:2] * x[1:2, :]
                 + B[:, 2:3] * x[2:3, :])                # (EMB_PAD, tn) f32
        h = jnp.sin(phase).astype(jnp.bfloat16)          # padded rows are sin(0) = 0

        def dense_relu(w_ref, b_ref, h_in):
            # MXU: bf16 x bf16 with f32 accumulation; output dtype = act_dtype.
            z = jnp.dot(w_ref[...], h_in, preferred_element_type=act_dtype)
            z = jnp.maximum(z + b_ref[...], 0.0)         # bias + ReLU on the VPU
            return z.astype(jnp.bfloat16)                # next layer's MXU input

        h = dense_relu(w0_ref, b0_ref, h)
        h = dense_relu(w1_ref, b1_ref, h)
        h = dense_relu(w2_ref, b2_ref, h)
        h = dense_relu(w3_ref, b3_ref, h)

        # output_linear (no activation): (OUT_PAD, tn), lane-dense, full-sublane store.
        y = jnp.dot(wo_ref[...], h, preferred_element_type=jnp.float32) + bo_ref[...]
        out_ref[...] = y.astype(out_ref.dtype)

    return imap_kernel


def _device_kind():
    try:
        return jax.devices()[0].device_kind.lower()
    except Exception:
        return ""


def _pick_tile(n, tile_n):
    """Largest lane-aligned tile (no minimum-step-count floor)."""
    n_aligned = ((max(int(n), 1) + 127) // 128) * 128
    tn = ((int(tile_n) + 127) // 128) * 128
    return max(128, min(tn, n_aligned))


def imap_forward(tx_noc_p, params, tile_n=2048):
    p = tx_noc_p
    if p.ndim == 3:
        p = jnp.squeeze(p, axis=0)            # matches x.squeeze(0) in the embedder
    p = p.astype(jnp.float32)
    N = p.shape[0]

    kind = _device_kind()
    is_v7x = "v7" in kind
    use_bf16_act = ("v6" in kind) or ("v7" in kind)     # v5e/v4 have no bf16 VALU
    act_dtype = jnp.bfloat16 if use_bf16_act else jnp.float32

    tn = _pick_tile(N, tile_n)
    steps = -(-N // tn)
    if is_v7x and steps > 1 and (steps % 2 == 1):
        steps += 1                             # even step count -> both v7x TensorCores
    Np = steps * tn

    # Batch-on-lanes layout: points (3, Np); weights (out, in); biases (out, 1).
    pT = jnp.pad(p.T, ((0, 0), (0, Np - N)))                              # (3, Np)
    B_T = jnp.pad(params['B'].T.astype(jnp.float32),
                  ((0, EMB_PAD - EMB), (0, 0)))                           # (96, 3)
    w0T = jnp.pad(params['w0'].T, ((0, 0), (0, EMB_PAD - EMB))).astype(jnp.bfloat16)
    wT = [w0T] + [params[f'w{i}'].T.astype(jnp.bfloat16) for i in range(1, 4)]
    bT = [params[f'b{i}'].reshape(HID, 1).astype(act_dtype) for i in range(4)]
    woT = jnp.pad(params['wo'].T, ((0, OUT_PAD - OUT), (0, 0))).astype(jnp.bfloat16)
    boT = jnp.pad(params['bo'].reshape(OUT, 1), ((0, OUT_PAD - OUT), (0, 0))
                  ).astype(jnp.float32)

    def full(shape):
        # Grid-invariant block (constant index_map): fetched once, revisit-skipped.
        return pl.BlockSpec(shape, lambda i: (0, 0))

    # Advisory cost: ~450 KFLOP / point, tiny I/O -> strongly compute-bound.
    flops = 2 * Np * (EMB_PAD * HID + 3 * HID * HID + HID * OUT_PAD) + 5 * Np * EMB_PAD
    transcendentals = Np * EMB_PAD
    bytes_accessed = (Np * (DIM + OUT_PAD) * 4
                      + DIM * EMB_PAD * 4
                      + (EMB_PAD * HID + 3 * HID * HID + HID * OUT_PAD) * 2
                      + (4 * HID + OUT_PAD) * 4)

    dim_sem = (pltpu.CORE_PARALLEL,) if (is_v7x and steps >= 2) else ("parallel",)

    y = pl.pallas_call(
        _make_kernel(act_dtype),
        out_shape=jax.ShapeDtypeStruct((OUT_PAD, Np), jnp.float32),
        grid_spec=pltpu.PrefetchScalarGridSpec(
            num_scalar_prefetch=0,
            grid=(steps,),
            in_specs=[
                pl.BlockSpec((DIM, tn), lambda i: (0, i)),
                full((EMB_PAD, DIM)),
                full((HID, EMB_PAD)), full((HID, 1)),
                full((HID, HID)), full((HID, 1)),
                full((HID, HID)), full((HID, 1)),
                full((HID, HID)), full((HID, 1)),
                full((OUT_PAD, HID)), full((OUT_PAD, 1)),
            ],
            out_specs=pl.BlockSpec((OUT_PAD, tn), lambda i: (0, i)),
        ),
        compiler_params=pltpu.CompilerParams(dimension_semantics=dim_sem),
        cost_estimate=pl.CostEstimate(
            flops=flops, transcendentals=transcendentals,
            bytes_accessed=bytes_accessed),
    )(pT, B_T,
      wT[0], bT[0], wT[1], bT[1], wT[2], bT[2], wT[3], bT[3],
      woT, boT)

    y = y[:OUT, :N].T                                                     # (N, 4)
    rt = {'rgb': y[:, :3], 'raw': y[:, 3:4], 'sigma': y[:, 3:4]}          # distinct slices
    return rt


def init_params(key):
    """Deterministic synthetic params matching the module's shapes/init scheme."""
    ks = jax.random.split(key, 6)

    def xavier_uniform(k, fan_in, fan_out, gain):
        limit = gain * (6.0 / (fan_in + fan_out)) ** 0.5
        return jax.random.uniform(k, (fan_in, fan_out), jnp.float32, -limit, limit)

    relu_gain = 2.0 ** 0.5   # torch.nn.init.calculate_gain('relu')
    params = {
        'B': jax.random.normal(ks[0], (DIM, EMB), jnp.float32) * 25.0,
        'w0': xavier_uniform(ks[1], EMB, HID, relu_gain), 'b0': jnp.zeros((1, HID), jnp.float32),
        'w1': xavier_uniform(ks[2], HID, HID, relu_gain), 'b1': jnp.zeros((1, HID), jnp.float32),
        'w2': xavier_uniform(ks[3], HID, HID, relu_gain), 'b2': jnp.zeros((1, HID), jnp.float32),
        'w3': xavier_uniform(ks[4], HID, HID, relu_gain), 'b3': jnp.zeros((1, HID), jnp.float32),
        'wo': xavier_uniform(ks[5], HID, OUT, 1.0),       'bo': jnp.zeros((1, OUT), jnp.float32),
    }
    return params


def reference_forward(tx_noc_p, params):
    """Pure-JAX f32 reference mirroring the PyTorch forward (full-precision matmuls)."""
    hp = jax.lax.Precision.HIGHEST
    p = tx_noc_p
    if p.ndim == 3:
        p = jnp.squeeze(p, axis=0)
    p = p.astype(jnp.float32)
    h = jnp.sin(jnp.dot(p, params['B'], precision=hp))
    for i in range(4):
        h = jnp.maximum(jnp.dot(h, params[f'w{i}'], precision=hp) + params[f'b{i}'], 0.0)
    y = jnp.dot(h, params['wo'], precision=hp) + params['bo']
    return {'rgb': y[..., :3], 'raw': y[..., -1:], 'sigma': y[..., -1:]}


def _check(rt, ref, tag):
    # bf16 weights / f32 accumulation -> compare with a relative-to-max bound.
    for k in ('rgb', 'raw', 'sigma'):
        assert rt[k].shape == ref[k].shape, (tag, k, rt[k].shape, ref[k].shape)
        err = float(jnp.max(jnp.abs(rt[k] - ref[k])))
        scale = float(jnp.max(jnp.abs(ref[k]))) + 1e-6
        assert err / scale < 5e-2, (tag, k, err, scale)


if __name__ == "__main__":
    key = jax.random.PRNGKey(0)
    pkey, xkey, xkey2 = jax.random.split(key, 3)
    params = init_params(pkey)

    # Small batch of 3-D points, shape (1, N, 3) as the wrapper receives it.
    tx_noc_p = jax.random.uniform(xkey, (1, 64, 3), jnp.float32, -1.0, 1.0)
    rt = imap_forward(tx_noc_p, params)
    jax.block_until_ready(rt)
    _check(rt, reference_forward(tx_noc_p, params), "N=64")

    # Odd N: exercises padding; with the new tiling this is a single big tile.
    tx_noc_p2 = jax.random.uniform(xkey2, (1, 777, 3), jnp.float32, -1.0, 1.0)
    rt2 = imap_forward(tx_noc_p2, params)
    jax.block_until_ready(rt2)
    _check(rt2, reference_forward(tx_noc_p2, params), "N=777 single-tile")

    # Force a small tile to exercise the multi-step (parallel) grid path cheaply.
    rt3 = imap_forward(tx_noc_p2, params, tile_n=256)
    jax.block_until_ready(rt3)
    _check(rt3, reference_forward(tx_noc_p2, params), "N=777 multi-tile")

    print("KERNEL_OK")
</pallas_src>

<mosaic_0001>
module attributes {stable_mosaic.version = 11 : i64} {
  func.func @imap_kernel(%arg0: i32, %arg1: memref<3x128xf32, #tpu.memory_space<vmem>>, %arg2: memref<96x3xf32, #tpu.memory_space<vmem>>, %arg3: memref<256x96xbf16, #tpu.memory_space<vmem>>, %arg4: memref<256x1xf32, #tpu.memory_space<vmem>>, %arg5: memref<256x256xbf16, #tpu.memory_space<vmem>>, %arg6: memref<256x1xf32, #tpu.memory_space<vmem>>, %arg7: memref<256x256xbf16, #tpu.memory_space<vmem>>, %arg8: memref<256x1xf32, #tpu.memory_space<vmem>>, %arg9: memref<256x256xbf16, #tpu.memory_space<vmem>>, %arg10: memref<256x1xf32, #tpu.memory_space<vmem>>, %arg11: memref<8x256xbf16, #tpu.memory_space<vmem>>, %arg12: memref<8x1xf32, #tpu.memory_space<vmem>>, %arg13: memref<8x128xf32, #tpu.memory_space<vmem>>) attributes {dimension_semantics = [#tpu.dimension_semantics<parallel>], iteration_bounds = array<i64: 1>, scalar_prefetch = 0 : i64, scratch_operands = 0 : i64, tpu.core_type = #tpu.core_type<tc>, window_params = [{transform_indices = @transform_0, window_bounds = array<i64: 3, 128>}, {pipeline_mode = #tpu.pipeline_mode<synchronous>, transform_indices = @transform_1, window_bounds = array<i64: 96, 3>}, {pipeline_mode = #tpu.pipeline_mode<synchronous>, transform_indices = @transform_2, window_bounds = array<i64: 256, 96>}, {pipeline_mode = #tpu.pipeline_mode<synchronous>, transform_indices = @transform_3, window_bounds = array<i64: 256, 1>}, {pipeline_mode = #tpu.pipeline_mode<synchronous>, transform_indices = @transform_4, window_bounds = array<i64: 256, 256>}, {pipeline_mode = #tpu.pipeline_mode<synchronous>, transform_indices = @transform_5, window_bounds = array<i64: 256, 1>}, {pipeline_mode = #tpu.pipeline_mode<synchronous>, transform_indices = @transform_6, window_bounds = array<i64: 256, 256>}, {pipeline_mode = #tpu.pipeline_mode<synchronous>, transform_indices = @transform_7, window_bounds = array<i64: 256, 1>}, {pipeline_mode = #tpu.pipeline_mode<synchronous>, transform_indices = @transform_8, window_bounds = array<i64: 256, 256>}, {pipeline_mode = #tpu.pipeline_mode<synchronous>, transform_indices = @transform_9, window_bounds = array<i64: 256, 1>}, {pipeline_mode = #tpu.pipeline_mode<synchronous>, transform_indices = @transform_10, window_bounds = array<i64: 8, 256>}, {pipeline_mode = #tpu.pipeline_mode<synchronous>, transform_indices = @transform_11, window_bounds = array<i64: 8, 1>}, {transform_indices = @transform_12, window_bounds = array<i64: 8, 128>}]} {
    %c0 = arith.constant 0 : index
    %c0_0 = arith.constant 0 : index
    %0 = vector.load %arg1[%c0, %c0_0] : memref<3x128xf32, #tpu.memory_space<vmem>>, vector<3x128xf32>
    %c0_1 = arith.constant 0 : index
    %c0_2 = arith.constant 0 : index
    %1 = vector.load %arg2[%c0_1, %c0_2] : memref<96x3xf32, #tpu.memory_space<vmem>>, vector<96x3xf32>
    %2 = vector.extract_strided_slice %1 {offsets = [0, 0], sizes = [96, 1], strides = [1, 1]} : vector<96x3xf32> to vector<96x1xf32>
    %3 = vector.extract_strided_slice %0 {offsets = [0, 0], sizes = [1, 128], strides = [1, 1]} : vector<3x128xf32> to vector<1x128xf32>
    %4 = vector.broadcast %2 : vector<96x1xf32> to vector<96x128xf32>
    %5 = vector.broadcast %3 : vector<1x128xf32> to vector<96x128xf32>
    %6 = arith.mulf %4, %5 : vector<96x128xf32>
    %7 = vector.extract_strided_slice %1 {offsets = [0, 1], sizes = [96, 1], strides = [1, 1]} : vector<96x3xf32> to vector<96x1xf32>
    %8 = vector.extract_strided_slice %0 {offsets = [1, 0], sizes = [1, 128], strides = [1, 1]} : vector<3x128xf32> to vector<1x128xf32>
    %9 = vector.broadcast %7 : vector<96x1xf32> to vector<96x128xf32>
    %10 = vector.broadcast %8 : vector<1x128xf32> to vector<96x128xf32>
    %11 = arith.mulf %9, %10 : vector<96x128xf32>
    %12 = arith.addf %6, %11 : vector<96x128xf32>
    %13 = vector.extract_strided_slice %1 {offsets = [0, 2], sizes = [96, 1], strides = [1, 1]} : vector<96x3xf32> to vector<96x1xf32>
    %14 = vector.extract_strided_slice %0 {offsets = [2, 0], sizes = [1, 128], strides = [1, 1]} : vector<3x128xf32> to vector<1x128xf32>
    %15 = vector.broadcast %13 : vector<96x1xf32> to vector<96x128xf32>
    %16 = vector.broadcast %14 : vector<1x128xf32> to vector<96x128xf32>
    %17 = arith.mulf %15, %16 : vector<96x128xf32>
    %18 = arith.addf %12, %17 : vector<96x128xf32>
    %19 = math.sin %18 : vector<96x128xf32>
    %20 = arith.truncf %19 : vector<96x128xf32> to vector<96x128xbf16>
    %c0_3 = arith.constant 0 : index
    %c0_4 = arith.constant 0 : index
    %21 = vector.load %arg3[%c0_3, %c0_4] : memref<256x96xbf16, #tpu.memory_space<vmem>>, vector<256x96xbf16>
    %cst = arith.constant dense<0.000000e+00> : vector<256x128xf32>
    %22 = tpu.matmul %21, %20, %cst {dimension_numbers = #tpu.dot_dimension_numbers<[1], [0], [0], [1], [0, 0, 1, 1], [], []>} : vector<256x96xbf16>, vector<96x128xbf16>, vector<256x128xf32> -> vector<256x128xf32>
    %c0_5 = arith.constant 0 : index
    %c0_6 = arith.constant 0 : index
    %23 = vector.load %arg4[%c0_5, %c0_6] : memref<256x1xf32, #tpu.memory_space<vmem>>, vector<256x1xf32>
    %24 = vector.broadcast %23 : vector<256x1xf32> to vector<256x128xf32>
    %25 = arith.addf %22, %24 : vector<256x128xf32>
    %cst_7 = arith.constant 0.000000e+00 : f32
    %26 = vector.broadcast %cst_7 : f32 to vector<256x128xf32>
    %27 = arith.maximumf %25, %26 : vector<256x128xf32>
    %28 = arith.truncf %27 : vector<256x128xf32> to vector<256x128xbf16>
    %c0_8 = arith.constant 0 : index
    %c0_9 = arith.constant 0 : index
    %29 = vector.load %arg5[%c0_8, %c0_9] : memref<256x256xbf16, #tpu.memory_space<vmem>>, vector<256x256xbf16>
    %cst_10 = arith.constant dense<0.000000e+00> : vector<256x128xf32>
    %30 = tpu.matmul %29, %28, %cst_10 {dimension_numbers = #tpu.dot_dimension_numbers<[1], [0], [0], [1], [0, 0, 1, 1], [], []>} : vector<256x256xbf16>, vector<256x128xbf16>, vector<256x128xf32> -> vector<256x128xf32>
    %c0_11 = arith.constant 0 : index
    %c0_12 = arith.constant 0 : index
    %31 = vector.load %arg6[%c0_11, %c0_12] : memref<256x1xf32, #tpu.memory_space<vmem>>, vector<256x1xf32>
    %32 = vector.broadcast %31 : vector<256x1xf32> to vector<256x128xf32>
    %33 = arith.addf %30, %32 : vector<256x128xf32>
    %cst_13 = arith.constant 0.000000e+00 : f32
    %34 = vector.broadcast %cst_13 : f32 to vector<256x128xf32>
    %35 = arith.maximumf %33, %34 : vector<256x128xf32>
    %36 = arith.truncf %35 : vector<256x128xf32> to vector<256x128xbf16>
    %c0_14 = arith.constant 0 : index
    %c0_15 = arith.constant 0 : index
    %37 = vector.load %arg7[%c0_14, %c0_15] : memref<256x256xbf16, #tpu.memory_space<vmem>>, vector<256x256xbf16>
    %cst_16 = arith.constant dense<0.000000e+00> : vector<256x128xf32>
    %38 = tpu.matmul %37, %36, %cst_16 {dimension_numbers = #tpu.dot_dimension_numbers<[1], [0], [0], [1], [0, 0, 1, 1], [], []>} : vector<256x256xbf16>, vector<256x128xbf16>, vector<256x128xf32> -> vector<256x128xf32>
    %c0_17 = arith.constant 0 : index
    %c0_18 = arith.constant 0 : index
    %39 = vector.load %arg8[%c0_17, %c0_18] : memref<256x1xf32, #tpu.memory_space<vmem>>, vector<256x1xf32>
    %40 = vector.broadcast %39 : vector<256x1xf32> to vector<256x128xf32>
    %41 = arith.addf %38, %40 : vector<256x128xf32>
    %cst_19 = arith.constant 0.000000e+00 : f32
    %42 = vector.broadcast %cst_19 : f32 to vector<256x128xf32>
    %43 = arith.maximumf %41, %42 : vector<256x128xf32>
    %44 = arith.truncf %43 : vector<256x128xf32> to vector<256x128xbf16>
    %c0_20 = arith.constant 0 : index
    %c0_21 = arith.constant 0 : index
    %45 = vector.load %arg9[%c0_20, %c0_21] : memref<256x256xbf16, #tpu.memory_space<vmem>>, vector<256x256xbf16>
    %cst_22 = arith.constant dense<0.000000e+00> : vector<256x128xf32>
    %46 = tpu.matmul %45, %44, %cst_22 {dimension_numbers = #tpu.dot_dimension_numbers<[1], [0], [0], [1], [0, 0, 1, 1], [], []>} : vector<256x256xbf16>, vector<256x128xbf16>, vector<256x128xf32> -> vector<256x128xf32>
    %c0_23 = arith.constant 0 : index
    %c0_24 = arith.constant 0 : index
    %47 = vector.load %arg10[%c0_23, %c0_24] : memref<256x1xf32, #tpu.memory_space<vmem>>, vector<256x1xf32>
    %48 = vector.broadcast %47 : vector<256x1xf32> to vector<256x128xf32>
    %49 = arith.addf %46, %48 : vector<256x128xf32>
    %cst_25 = arith.constant 0.000000e+00 : f32
    %50 = vector.broadcast %cst_25 : f32 to vector<256x128xf32>
    %51 = arith.maximumf %49, %50 : vector<256x128xf32>
    %52 = arith.truncf %51 : vector<256x128xf32> to vector<256x128xbf16>
    %c0_26 = arith.constant 0 : index
    %c0_27 = arith.constant 0 : index
    %53 = vector.load %arg11[%c0_26, %c0_27] : memref<8x256xbf16, #tpu.memory_space<vmem>>, vector<8x256xbf16>
    %cst_28 = arith.constant dense<0.000000e+00> : vector<8x128xf32>
    %54 = tpu.matmul %53, %52, %cst_28 {dimension_numbers = #tpu.dot_dimension_numbers<[1], [0], [0], [1], [0, 0, 1, 1], [], []>} : vector<8x256xbf16>, vector<256x128xbf16>, vector<8x128xf32> -> vector<8x128xf32>
    %c0_29 = arith.constant 0 : index
    %c0_30 = arith.constant 0 : index
    %55 = vector.load %arg12[%c0_29, %c0_30] : memref<8x1xf32, #tpu.memory_space<vmem>>, vector<8x1xf32>
    %56 = vector.broadcast %55 : vector<8x1xf32> to vector<8x128xf32>
    %57 = arith.addf %54, %56 : vector<8x128xf32>
    %c0_31 = arith.constant 0 : index
    %c0_32 = arith.constant 0 : index
    %58 = vector.load %arg13[%c0_31, %c0_32] : memref<8x128xf32, #tpu.memory_space<vmem>>, vector<8x128xf32>
    tpu.vector_store %arg13[%c0_31, %c0_32], %57 {strides = array<i32>} : memref<8x128xf32, #tpu.memory_space<vmem>>, vector<8x128xf32>,
    return
  }
  func.func @transform_0(%arg0: i32) -> (i32, i32) {
    %c0_i32 = arith.constant 0 : i32
    %c0_i32_0 = arith.constant 0 : i32
    return %c0_i32, %arg0 : i32, i32
  }
  func.func @transform_1(%arg0: i32) -> (i32, i32) {
    %c0_i32 = arith.constant 0 : i32
    %c0_i32_0 = arith.constant 0 : i32
    %c0_i32_1 = arith.constant 0 : i32
    return %c0_i32, %c0_i32_0 : i32, i32
  }
  func.func @transform_2(%arg0: i32) -> (i32, i32) {
    %c0_i32 = arith.constant 0 : i32
    %c0_i32_0 = arith.constant 0 : i32
    %c0_i32_1 = arith.constant 0 : i32
    return %c0_i32, %c0_i32_0 : i32, i32
  }
  func.func @transform_3(%arg0: i32) -> (i32, i32) {
    %c0_i32 = arith.constant 0 : i32
    %c0_i32_0 = arith.constant 0 : i32
    %c0_i32_1 = arith.constant 0 : i32
    return %c0_i32, %c0_i32_0 : i32, i32
  }
  func.func @transform_4(%arg0: i32) -> (i32, i32) {
    %c0_i32 = arith.constant 0 : i32
    %c0_i32_0 = arith.constant 0 : i32
    %c0_i32_1 = arith.constant 0 : i32
    return %c0_i32, %c0_i32_0 : i32, i32
  }
  func.func @transform_5(%arg0: i32) -> (i32, i32) {
    %c0_i32 = arith.constant 0 : i32
    %c0_i32_0 = arith.constant 0 : i32
    %c0_i32_1 = arith.constant 0 : i32
    return %c0_i32, %c0_i32_0 : i32, i32
  }
  func.func @transform_6(%arg0: i32) -> (i32, i32) {
    %c0_i32 = arith.constant 0 : i32
    %c0_i32_0 = arith.constant 0 : i32
    %c0_i32_1 = arith.constant 0 : i32
    return %c0_i32, %c0_i32_0 : i32, i32
  }
  func.func @transform_7(%arg0: i32) -> (i32, i32) {
    %c0_i32 = arith.constant 0 : i32
    %c0_i32_0 = arith.constant 0 : i32
    %c0_i32_1 = arith.constant 0 : i32
    return %c0_i32, %c0_i32_0 : i32, i32
  }
  func.func @transform_8(%arg0: i32) -> (i32, i32) {
    %c0_i32 = arith.constant 0 : i32
    %c0_i32_0 = arith.constant 0 : i32
    %c0_i32_1 = arith.constant 0 : i32
    return %c0_i32, %c0_i32_0 : i32, i32
  }
  func.func @transform_9(%arg0: i32) -> (i32, i32) {
    %c0_i32 = arith.constant 0 : i32
    %c0_i32_0 = arith.constant 0 : i32
    %c0_i32_1 = arith.constant 0 : i32
    return %c0_i32, %c0_i32_0 : i32, i32
  }
  func.func @transform_10(%arg0: i32) -> (i32, i32) {
    %c0_i32 = arith.constant 0 : i32
    %c0_i32_0 = arith.constant 0 : i32
    %c0_i32_1 = arith.constant 0 : i32
    return %c0_i32, %c0_i32_0 : i32, i32
  }
  func.func @transform_11(%arg0: i32) -> (i32, i32) {
    %c0_i32 = arith.constant 0 : i32
    %c0_i32_0 = arith.constant 0 : i32
    %c0_i32_1 = arith.constant 0 : i32
    return %c0_i32, %c0_i32_0 : i32, i32
  }
  func.func @transform_12(%arg0: i32) -> (i32, i32) {
    %c0_i32 = arith.constant 0 : i32
    %c0_i32_0 = arith.constant 0 : i32
    return %c0_i32, %arg0 : i32, i32
  }
}

</mosaic_0001>

<bundles_post_ra>
// kernel: tpu_custom_call.1
= control target key start
LH: loop header
LB: loop body
LE: loop exit
PB: predicated region body
PF: predicated region fallthrough
CT: control target
= control target key end

     0   :  { %v4879_v1 = vmov 1   ;;  %v4880_v2 = vmov 0   ;;  %v4881_v6 = vmov 2   ;;  %s7411_s0 = inlined_call_operand.vmem [shape: f32[3,128], index: 0, kind: input, shape index: {}]   ;;  %s7412_s1 = inlined_call_operand.vmem [shape: f32[96,3], index: 1, kind: input, shape index: {}]   ;;  %s7413_s2 = inlined_call_operand.vmem [shape: bf16[256,96], index: 2, kind: input, shape index: {}]   ;;  %s7414_s3 = inlined_call_operand.vmem [shape: f32[256,1], index: 3, kind: input, shape index: {}]   ;;  %s7415_s4 = inlined_call_operand.vmem [shape: bf16[256,256], index: 4, kind: input, shape index: {}]   ;;  %s7416_s5 = inlined_call_operand.vmem [shape: f32[256,1], index: 5, kind: input, shape index: {}]   ;;  %s7417_s6 = inlined_call_operand.vmem [shape: bf16[256,256], index: 6, kind: input, shape index: {}]   ;;  %s7418_s7 = inlined_call_operand.vmem [shape: f32[256,1], index: 7, kind: input, shape index: {}]   ;;  %s7419_s8 = inlined_call_operand.vmem [shape: bf16[256,256], index: 8, kind: input, shape index: {}]   ;;  %s7420_s9 = inlined_call_operand.vmem [shape: f32[256,1], index: 9, kind: input, shape index: {}]   ;;  %s7421_s10 = inlined_call_operand.vmem [shape: bf16[8,256], index: 10, kind: input, shape index: {}]   ;;  %s7422_s11 = inlined_call_operand.vmem [shape: f32[8,1], index: 11, kind: input, shape index: {}]   ;;  %s7423_s12 = inlined_call_operand.hbm [shape: f32[8,128], index: 12, kind: output, shape index: {}]  }
   0x1   :  { %v44_v0 = vld [vmem:[%s7412_s1] sm:$0xff]  ;;  %4625 = vset.pattern.permute.xlu1 %v4879_v1  ;;  %4624 = vset.pattern.permute.xlu0 %v4880_v2  ;;  %v45_v3 = vld [vmem:[%s7412_s1 + $0x8] sm:$0xff]  ;;  %v47_v4 = vld [vmem:[%s7412_s1 + $0x18] sm:$0xff] }
   0x2   :  { %133 = vperm.xlu1 %4625, %v44_v0   ;;  %58 = vperm.xlu0 %4624, %v44_v0   ;;  %v49_v5 = vld [vmem:[%s7412_s1 + $0x28] sm:$0xff]  ;;  %v46_v7 = vld [vmem:[%s7412_s1 + $0x10] sm:$0xff]  ;;  %v51_v8 = vld [vmem:[%s7412_s1 + $0x38] sm:$0xff] }
   0x3   :  { %v53_v9 = vld [vmem:[%s7412_s1 + $0x48] sm:$0xff]  ;;  %v55_v10 = vld [vmem:[%s7412_s1 + $0x58] sm:$0xff]  ;;  %v48_v11 = vld [vmem:[%s7412_s1 + $0x20] sm:$0xff] }
   0x4   :  { %v50_v12 = vld [vmem:[%s7412_s1 + $0x30] sm:$0xff]  ;;  %v52_v13 = vld [vmem:[%s7412_s1 + $0x40] sm:$0xff] }
   0x5   :  { %v54_v14 = vld [vmem:[%s7412_s1 + $0x50] sm:$0xff] }
   0x6   :  { %137 = vperm.xlu1 %4625, %v45_v3   ;;  %63 = vperm.xlu0 %4624, %v45_v3  }
   0xa   :  { %4626 = vset.pattern.permute.xlu1 %v4881_v6  ;;  %73 = vperm.xlu0 %4624, %v47_v4  }
   0xb   :  { %213 = vperm.xlu1 %4626, %v45_v3  }
   0xe   :  { %83 = vperm.xlu0 %4624, %v49_v5  }
   0xf   :  { %4627 = vset.pattern.permute.xlu1 %v4880_v2 }
  0x10   :  { %68 = vperm.xlu1 %4627, %v46_v7  }
  0x12   :  { %93 = vperm.xlu0 %4624, %v51_v8  }
  0x14   :  { %4628 = vset.pattern.permute.xlu1 %v4879_v1 }
  0x15   :  { %141 = vperm.xlu1 %4628, %v46_v7  }
  0x16   :  { %103 = vperm.xlu0 %4624, %v53_v9  }
  0x19   :  { %145 = vperm.xlu1 %4628, %v47_v4  }
  0x1a   :  { %113 = vperm.xlu0 %4624, %v55_v10  }
  0x1d   :  { %4629 = vset.pattern.permute.xlu1 %v4881_v6 }
  0x1e   :  { %221 = vperm.xlu1 %4629, %v47_v4   ;;  %4640 = vset.pattern.permute.xlu0 %v4881_v6 }
  0x1f   :  { %209 = vperm.xlu0 %4640, %v44_v0  }
  0x22   :  { %4630 = vset.pattern.permute.xlu1 %v4880_v2 }
  0x23   :  { %78 = vperm.xlu1 %4630, %v48_v11   ;;  %217 = vperm.xlu0 %4640, %v46_v7  }
  0x27   :  { %4631 = vset.pattern.permute.xlu1 %v4879_v1  ;;  %225 = vperm.xlu0 %4640, %v48_v11  }
  0x28   :  { %149 = vperm.xlu1 %4631, %v48_v11  }
  0x2b   :  { %233 = vperm.xlu0 %4640, %v50_v12  }
  0x2c   :  { %153 = vperm.xlu1 %4631, %v49_v5  }
  0x2f   :  { %241 = vperm.xlu0 %4640, %v52_v13  }
  0x30   :  { %4632 = vset.pattern.permute.xlu1 %v4881_v6 }
  0x31   :  { %229 = vperm.xlu1 %4632, %v49_v5  }
  0x33   :  { %249 = vperm.xlu0 %4640, %v54_v14  }
  0x34   :  { %17 = vsyncpa [#allocation3], 0  ;;  %v1587_v15 = vld [vmem:[%s7414_s3 + $0x88] sm:$0xff]  ;;  %v1588_v16 = vld [vmem:[%s7414_s3 + $0x90] sm:$0xff]  ;;  %v116_v40 = vlaneseq }
  0x35   :  { %4633 = vset.pattern.permute.xlu1 %v4880_v2  ;;  %v1572_v17 = vld [vmem:[%s7414_s3 + $0x10] sm:$0xff]  ;;  %v1590_v18 = vld [vmem:[%s7414_s3 + $0xa0] sm:$0xff]  ;;  %v1571_v25 = vld [vmem:[%s7414_s3 + $0x8] sm:$0xff] }
  0x36   :  { %88 = vperm.xlu1 %4633, %v50_v12   ;;  %v1574_v19 = vld [vmem:[%s7414_s3 + $0x20] sm:$0xff]  ;;  %v1592_v20 = vld [vmem:[%s7414_s3 + $0xb0] sm:$0xff]  ;;  %v1589_v26 = vld [vmem:[%s7414_s3 + $0x98] sm:$0xff]  ;;  %v117_v44 = vshrl.u32 %v116_v40, 7 }
  0x37   :  { %4644 = vset.pattern.permute.xlu0 %v4880_v2  ;;  %v1576_v21 = vld [vmem:[%s7414_s3 + $0x30] sm:$0xff]  ;;  %v1586_v22 = vld [vmem:[%s7414_s3 + $0x80] sm:$0xff]  ;;  %v1573_v27 = vld [vmem:[%s7414_s3 + $0x18] sm:$0xff] }
  0x38   :  { %1689 = vperm.xlu0 %4644, %v1587_v15   ;;  %v1570_v23 = vld [vmem:[%s7414_s3] sm:$0xff]  ;;  %v1591_v28 = vld [vmem:[%s7414_s3 + $0xa8] sm:$0xff]  ;;  %v1596_v35 = vld [vmem:[%s7414_s3 + $0xd0] sm:$0xff]  ;;  %v182_v47 = vsub.s32 1, %v117_v44  ;;  %v118_v48 = vsub.s32 0, %v117_v44  ;;  %v258_v52 = vsub.s32 2, %v117_v44 }
  0x39   :  { %v1594_v24 = vld [vmem:[%s7414_s3 + $0xc0] sm:$0xff]  ;;  %v1575_v32 = vld [vmem:[%s7414_s3 + $0x28] sm:$0xff]  ;;  %v1593_v36 = vld [vmem:[%s7414_s3 + $0xb8] sm:$0xff] }
  0x3a   :  { %4634 = vset.pattern.permute.xlu1 %v4879_v1  ;;  %v1578_v31 = vld [vmem:[%s7414_s3 + $0x40] sm:$0xff]  ;;  %v1580_v39 = vld [vmem:[%s7414_s3 + $0x50] sm:$0xff]  ;;  %v1577_v41 = vld [vmem:[%s7414_s3 + $0x38] sm:$0xff] }
  0x3b   :  { %157 = vperm.xlu1 %4634, %v50_v12   ;;  %v1595_v45 = vld [vmem:[%s7414_s3 + $0xc8] sm:$0xff]  ;;  %v43_v51 = vld [vmem:[%s7411_s0] sm:$0x7]  ;;  %v1597_v57 = vld [vmem:[%s7414_s3 + $0xd8] sm:$0xff] }
  0x3c   :  { %1694 = vperm.xlu0 %4644, %v1588_v16   ;;  %v1579_v50 = vld [vmem:[%s7414_s3 + $0x48] sm:$0xff]  ;;  %v5090_v54 = vrot.slane %v43_v51, %v182_v47  ;;  %v5092_v55 = vrot.slane %v43_v51, %v118_v48  ;;  %v5097_v58 = vrot.slane %v43_v51, %v258_v52  ;;  %v1598_v0 = vld [vmem:[%s7414_s3 + $0xe0] sm:$0xff] }
  0x3d   :  { %v1599_v11 = vld [vmem:[%s7414_s3 + $0xe8] sm:$0xff] }
  0x3f   :  { %161 = vperm.xlu1 %4634, %v51_v8  }
  0x40   :  { %1614 = vperm.xlu0 %4644, %v1572_v17  }
  0x43   :  { %4635 = vset.pattern.permute.xlu1 %v4881_v6 }
  0x44   :  { %237 = vperm.xlu1 %4635, %v51_v8   ;;  %1704 = vperm.xlu0 %4644, %v1590_v18  }
  0x48   :  { %4636 = vset.pattern.permute.xlu1 %v4880_v2  ;;  %1624 = vperm.xlu0 %4644, %v1574_v19  }
  0x49   :  { %98 = vperm.xlu1 %4636, %v52_v13  }
  0x4c   :  { %1714 = vperm.xlu0 %4644, %v1592_v20   ;;  %v1583_v20 = vld [vmem:[%s7414_s3 + $0x68] sm:$0xff] }
  0x4d   :  { %4637 = vset.pattern.permute.xlu1 %v4879_v1 }
  0x4e   :  { %165 = vperm.xlu1 %4637, %v52_v13  }
  0x50   :  { %1634 = vperm.xlu0 %4644, %v1576_v21  }
  0x52   :  { %169 = vperm.xlu1 %4637, %v53_v9  }
  0x54   :  { %1724 = vperm.xlu0 %4644, %v1594_v24  }
  0x56   :  { %4638 = vset.pattern.permute.xlu1 %v4881_v6 }
  0x57   :  { %245 = vperm.xlu1 %4638, %v53_v9   ;;  %v1582_v9 = vld [vmem:[%s7414_s3 + $0x60] sm:$0xff] }
  0x58   :  { %1644 = vperm.xlu0 %4644, %v1578_v31   ;;  %v1601_v31 = vld [vmem:[%s7414_s3 + $0xf8] sm:$0xff] }
  0x5b   :  { %4639 = vset.pattern.permute.xlu1 %v4880_v2 }
  0x5c   :  { %108 = vperm.xlu1 %4639, %v54_v14   ;;  %1734 = vperm.xlu0 %4644, %v1596_v35  }
  0x60   :  { %4641 = vset.pattern.permute.xlu1 %v4879_v1  ;;  %1654 = vperm.xlu0 %4644, %v1580_v39   ;;  %v1581_v1 = vld [vmem:[%s7414_s3 + $0x58] sm:$0xff] }
  0x61   :  { %173 = vperm.xlu1 %4641, %v54_v14  }
  0x64   :  { %1744 = vperm.xlu0 %4644, %v1598_v0  }
  0x65   :  { %177 = vperm.xlu1 %4641, %v55_v10  }
  0x68   :  { %1664 = vperm.xlu0 %4644, %v1582_v9  }
  0x69   :  { %4642 = vset.pattern.permute.xlu1 %v4881_v6 }
  0x6a   :  { %253 = vperm.xlu1 %4642, %v55_v10  }
  0x6e   :  { %4643 = vset.pattern.permute.xlu1 %v4880_v2 }
  0x6f   :  { %1684 = vperm.xlu1 %4643, %v1586_v22  }
  0x73   :  { %1604 = vperm.xlu1 %4643, %v1570_v23  }
  0x77   :  { %1609 = vperm.xlu1 %4643, %v1571_v25  }
  0x7b   :  { %1699 = vperm.xlu1 %4643, %v1589_v26  }
  0x7f   :  { %1619 = vperm.xlu1 %4643, %v1573_v27  }
  0x81   :  { %v5053_v29 = vpop.permute.xlu1 %133  ;;  %v5055_v30 = vpop.permute.xlu0 %58 }
  0x82   :  { %v5152_v40 = vmul.f32 %v5090_v54, %v5053_v29  ;;  %v1585_v29 = vld [vmem:[%s7414_s3 + $0x78] sm:$0xff] }
  0x83   :  { %1709 = vperm.xlu1 %4643, %v1591_v28  }
  0x85   :  { %v138_v33 = vpop.permute.xlu1 %137  ;;  %v64_v34 = vpop.permute.xlu0 %63 }
  0x86   :  { %v185_v62 = vmul.f32 %v5090_v54, %v138_v33  ;;  %v121_v63 = vmul.f32 %v5092_v55, %v64_v34 }
  0x87   :  { %1629 = vperm.xlu1 %4643, %v1575_v32  }
  0x88   :  { %v197_v7 = vadd.f32 %v185_v62, %v121_v63  ;;  %v7442_v63 = vmov 2131351028  }
  0x89   :  { %v74_v37 = vpop.permute.xlu0 %73 }
  0x8a   :  { %v214_v38 = vpop.permute.xlu1 %213  ;;  %v123_v60 = vmul.f32 %v5092_v55, %v74_v37 }
  0x8b   :  { %1719 = vperm.xlu1 %4643, %v1593_v36   ;;  %v261_v2 = vmul.f32 %v5097_v58, %v214_v38 }
  0x8d   :  { %v5075_v42 = vpop.permute.xlu0 %83  ;;  %v5124_v12 = vadd.f32 %v261_v2, %v197_v7  ;;  %v7433_v7 = vmov 920167782  }
  0x8f   :  { %v69_v43 = vpop.permute.xlu1 %68  ;;  %1639 = vperm.xlu1 %4643, %v1577_v41   ;;  %7480 = vst [vmem:[#allocation5_spill] sm:$0xff] %v5124_v12  ;;  %v391_v21 = vand.u32 2139095040, %v5124_v12  ;;  %v5156_v41 = vmul.f32 %v5092_v55, %v5055_v30  ;;  %v1600_v30 = vld [vmem:[%s7414_s3 + $0xf0] sm:$0xff] }
  0x90   :  { %v122_v13 = vmul.f32 %v5092_v55, %v69_v43  ;;  %1754 = vperm.xlu0 %4644, %v1600_v30  }
  0x91   :  { %v5080_v46 = vpop.permute.xlu0 %93  ;;  %v392_v32 = vshrl.u32 %v391_v21, 23 }
  0x93   :  { %1729 = vperm.xlu1 %4643, %v1595_v45   ;;  %v5159_v45 = vadd.s32 4294967169, %v392_v32 }
  0x94   :  { %v142_v49 = vpop.permute.xlu1 %141 }
  0x95   :  { %v5088_v53 = vpop.permute.xlu0 %103  ;;  %v186_v8 = vmul.f32 %v5090_v54, %v142_v49 }
  0x97   :  { %1649 = vperm.xlu1 %4643, %v1579_v50   ;;  %v198_v17 = vadd.f32 %v186_v8, %v122_v13  ;;  %v7431_v13 = vmov 1326507024  }
  0x98   :  { %v146_v56 = vpop.permute.xlu1 %145 }
  0x99   :  { %v5099_v59 = vpop.permute.xlu0 %113  ;;  %v187_v61 = vmul.f32 %v5090_v54, %v146_v56 }
  0x9b   :  { %1739 = vperm.xlu1 %4643, %v1597_v57   ;;  %v199_v4 = vadd.f32 %v187_v61, %v123_v60  ;;  %v7435_v57 = vmov 683565275   ;;  %v7438_v61 = vmov 2475754826  }
  0x9d   :  { %v222_v3 = vpop.permute.xlu1 %221 }
  0x9e   :  { %v263_v5 = vmul.f32 %v5097_v58, %v222_v3  ;;  %v5113_v6 = vpop.permute.xlu0 %209 }
  0x9f   :  { %1659 = vperm.xlu1 %4643, %v1581_v1   ;;  %v7429_v1 = vmov 2102212464  }
  0xa0   :  { %v5119_v10 = vadd.f32 %v263_v5, %v199_v4 }
  0xa2   :  { %v599_v14 = vand.u32 2139095040, %v5119_v10  ;;  %v79_v15 = vpop.permute.xlu1 %78  ;;  %v218_v16 = vpop.permute.xlu0 %217  ;;  %v7425_v22 = vand.u32 2147483647, %v5119_v10 }
  0xa3   :  { %v262_v18 = vmul.f32 %v5097_v58, %v218_v16  ;;  %1749 = vperm.xlu1 %4643, %v1599_v11   ;;  %v124_v44 = vmul.f32 %v5092_v55, %v79_v15  ;;  %v2149_v15 = vld [vmem:[%s7416_s5 + $0x88] sm:$0xff]  ;;  %v1584_v16 = vld [vmem:[%s7414_s3 + $0x70] sm:$0xff] }
  0xa4   :  { %v600_v19 = vshrl.u32 %v599_v14, 23  ;;  %v5143_v33 = vand.u32 8388607, %v7425_v22  ;;  %1674 = vperm.xlu0 %4644, %v1584_v16  }
  0xa5   :  { %v5134_v23 = vadd.f32 %v262_v18, %v198_v17 }
  0xa6   :  { %v3960_v24 = vadd.s32 4294967169, %v600_v19  ;;  %v226_v37 = vpop.permute.xlu0 %225  ;;  %v604_v47 = vor.u32 8388608, %v5143_v33 }
  0xa7   :  { %v7427_v25 = vand.u32 2147483647, %v5134_v23  ;;  %v495_v26 = vand.u32 2139095040, %v5134_v23  ;;  %v150_v27 = vpop.permute.xlu1 %149  ;;  %1669 = vperm.xlu1 %4643, %v1583_v20   ;;  %v5163_v49 = vmul.f32 %v5097_v58, %v226_v37 }
  0xa8   :  { %v606_v28 = vadd.s32 1, %v3960_v24  ;;  %v188_v36 = vmul.f32 %v5090_v54, %v150_v27 }
  0xa9   :  { %v496_v34 = vshrl.u32 %v495_v26, 23  ;;  %v5147_v35 = vand.u32 8388607, %v7427_v25 }
  0xaa   :  { %vm607_vm0 = vcmp.gt.s32.totalorder %v606_v28, 0  ;;  %v200_v56 = vadd.f32 %v188_v36, %v124_v44 }
  0xab   :  { %v608_v38 = vsel %vm607_vm0, %v606_v28, 0  ;;  %v3956_v39 = vadd.s32 4294967169, %v496_v34  ;;  %1759 = vperm.xlu1 %4643, %v1601_v31   ;;  %v500_v51 = vor.u32 8388608, %v5147_v35  ;;  %v2133_v35 = vld [vmem:[%s7416_s5 + $0x8] sm:$0xff] }
  0xac   :  { %v610_v43 = vand.u32 31, %v608_v38  ;;  %v609_v48 = vshrl.u32 %v608_v38, 5  ;;  %v644_v38 = vshll.u32 %v604_v47, 8 }
  0xad   :  { %v502_v52 = vadd.s32 1, %v3956_v39  ;;  %v2148_v39 = vld [vmem:[%s7416_s5 + $0x80] sm:$0xff]  ;;  %v5208_v47 = vshll.u32 %v500_v51, 8 }
  0xae   :  { %v611_v50 = vsub.s32 32, %v610_v43  ;;  %v613_v60 = vshll.u32 %v7435_v57, %v610_v43  ;;  %v616_v62 = vshll.u32 %v7438_v61, %v610_v43  ;;  %v619_v0 = vshll.u32 %v7442_v63, %v610_v43  ;;  %2246 = vperm.xlu0 %4644, %v2148_v39  }
  0xaf   :  { %v622_v2 = vshll.u32 %v7429_v1, %v610_v43  ;;  %1679 = vperm.xlu1 %4643, %v1585_v29   ;;  %v625_v8 = vshll.u32 %v7433_v7, %v610_v43  ;;  %vm628_vm1 = vcmp.lt.s32.totalorder %v609_v48, 1  ;;  %vm630_vm2 = vcmp.lt.s32.totalorder %v609_v48, 3 }
  0xb0   :  { %v614_v3 = vshrl.u32 %v7438_v61, %v611_v50  ;;  %v617_v4 = vshrl.u32 %v7442_v63, %v611_v50  ;;  %v620_v5 = vshrl.u32 %v7429_v1, %v611_v50  ;;  %v612_v9 = vshrl.u32 %v7435_v57, %v611_v50 }
  0xb1   :  { %v623_v11 = vshrl.u32 %v7433_v7, %v611_v50  ;;  %v626_v14 = vshrl.u32 %v7431_v13, %v611_v50  ;;  %vm631_vm3 = vcmp.lt.s32.totalorder %v609_v48, 4  ;;  %vm503_vm4 = vcmp.gt.s32.totalorder %v502_v52, 0 }
  0xb2   :  { %v615_v17 = vor.u32 %v614_v3, %v613_v60  ;;  %v618_v18 = vor.u32 %v617_v4, %v616_v62  ;;  %v621_v19 = vor.u32 %v620_v5, %v619_v0  ;;  %v504_v34 = vsel %vm503_vm4, %v502_v52, 0  ;;  %v2151_v3 = vld [vmem:[%s7416_s5 + $0x98] sm:$0xff]  ;;  %v2132_v4 = vld [vmem:[%s7416_s5] sm:$0xff] }
  0xb3   :  { %v624_v20 = vor.u32 %v623_v11, %v622_v2  ;;  %v627_v21 = vor.u32 %v626_v14, %v625_v8  ;;  %2251 = vperm.xlu1 %4643, %v2149_v15   ;;  %vm629_vm5 = vcmp.lt.s32.totalorder %v609_v48, 2  ;;  %v506_v30 = vand.u32 31, %v504_v34  ;;  %2166 = vperm.xlu0 %4644, %v2132_v4  }
  0xb4   :  { %v632_v24 = vsel %vm628_vm1, %v612_v9, %v615_v17  ;;  %v633_v26 = vsel %vm631_vm3, %v621_v19, 2102212464  ;;  %v636_v27 = vsel %vm628_vm1, %v615_v17, %v618_v18  ;;  %v640_v28 = vsel %vm628_vm1, %v618_v18, %v621_v19 }
  0xb5   :  { %v634_v31 = vsel %vm630_vm2, %v618_v18, %v633_v26  ;;  %v637_v32 = vsel %vm631_vm3, %v624_v20, 920167782  ;;  %v641_v33 = vsel %vm631_vm3, %v627_v21, 1326507024  ;;  %v505_v48 = vshrl.u32 %v504_v34, 5  ;;  %v2135_v26 = vld [vmem:[%s7416_s5 + $0x18] sm:$0xff] }
  0xb6   :  { %v638_v36 = vsel %vm630_vm2, %v621_v19, %v637_v32  ;;  %v642_v37 = vsel %vm630_vm2, %v624_v20, %v641_v33  ;;  %v635_v43 = vsel %vm629_vm5, %v632_v24, %v634_v31  ;;  %v507_v0 = vsub.s32 32, %v506_v30  ;;  %v154_v24 = vpop.permute.xlu1 %153 }
  0xb7   :  { %v639_v44 = vsel %vm629_vm5, %v636_v27, %v638_v36  ;;  %v643_v29 = vsel %vm629_vm5, %v640_v28, %v642_v37  ;;  %2171 = vperm.xlu1 %4643, %v2133_v35   ;;  %v5211_v2 = vadd.f32 %v5163_v49, %v200_v56  ;;  %v651_v5 = vmul.u32 %v644_v38, %v635_v43  ;;  %v2150_v27 = vld [vmem:[%s7416_s5 + $0x90] sm:$0xff] }
  0xb8   :  { %v5201_v50 = vmul.u32.u64.low %v644_v38, %v643_v29  ;;  %v5202_v52 = vmul.u32.u64.high %v644_v38, %v643_v29, %v5201_v50  ;;  %v5204_v60 = vmul.u32.u64.low %v644_v38, %v639_v44  ;;  %v5205_v62 = vmul.u32.u64.high %v644_v38, %v639_v44, %v5204_v60  ;;  %2256 = vperm.xlu0 %4644, %v2150_v27  }
  0xb9   :  { %v509_v8 = vshll.u32 %v7435_v57, %v506_v30  ;;  %v512_v9 = vshll.u32 %v7438_v61, %v506_v30  ;;  %v515_v11 = vshll.u32 %v7442_v63, %v506_v30  ;;  %v510_v51 = vshrl.u32 %v7438_v61, %v507_v0 }
  0xba   :  { %v513_v49 = vshrl.u32 %v7442_v63, %v507_v0  ;;  %v516_v56 = vshrl.u32 %v7429_v1, %v507_v0  ;;  %v518_v14 = vshll.u32 %v7429_v1, %v506_v30  ;;  %vm653_vm6 = vc.u32 %v5202_v52, %v5204_v60 }
  0xbb   :  { %2261 = vperm.xlu1 %4643, %v2151_v3   ;;  %v654_v15 = vadd.s32 1, %v5205_v62  ;;  %v519_v16 = vshrl.u32 %v7433_v7, %v507_v0  ;;  %v521_v17 = vshll.u32 %v7433_v7, %v506_v30  ;;  %v511_v18 = vor.u32 %v510_v51, %v509_v8  ;;  %v230_v8 = vpop.permute.xlu1 %229 }
  0xbc   :  { %v514_v19 = vor.u32 %v513_v49, %v512_v9  ;;  %v517_v20 = vor.u32 %v516_v56, %v515_v11  ;;  %v522_v21 = vshrl.u32 %v7431_v13, %v507_v0  ;;  %vm524_vm7 = vcmp.lt.s32.totalorder %v505_v48, 1 }
  0xbd   :  { %v655_v28 = vsel %vm653_vm6, %v654_v15, %v5205_v62  ;;  %v520_v31 = vor.u32 %v519_v16, %v518_v14  ;;  %vm527_vm8 = vcmp.lt.s32.totalorder %v505_v48, 4  ;;  %v508_v33 = vshrl.u32 %v7435_v57, %v507_v0 }
  0xbe   :  { %v656_v32 = vadd.s32 %v655_v28, %v651_v5  ;;  %v523_v34 = vor.u32 %v522_v21, %v521_v17  ;;  %v529_v35 = vsel %vm527_vm8, %v517_v20, 2102212464  ;;  %vm526_vm9 = vcmp.lt.s32.totalorder %v505_v48, 3 }
  0xbf   :  { %2181 = vperm.xlu1 %4643, %v2135_v26   ;;  %v532_v36 = vsel %vm524_vm7, %v511_v18, %v514_v19  ;;  %v533_v37 = vsel %vm527_vm8, %v520_v31, 920167782  ;;  %v536_v38 = vsel %vm524_vm7, %v514_v19, %v517_v20  ;;  %vm525_vm10 = vcmp.lt.s32.totalorder %v505_v48, 2  ;;  %v89_v26 = vpop.permute.xlu1 %88 }
  0xc0   :  { %v657_v39 = vadd.s32 536870912, %v656_v32  ;;  %v534_v43 = vsel %vm526_vm9, %v517_v20, %v533_v37  ;;  %v537_v44 = vsel %vm527_vm8, %v523_v34, 1326507024  ;;  %v528_v29 = vsel %vm524_vm7, %v508_v33, %v511_v18 }
  0xc1   :  { %v530_v30 = vsel %vm526_vm9, %v514_v19, %v529_v35  ;;  %v535_v50 = vsel %vm525_vm10, %v532_v36, %v534_v43  ;;  %v538_v62 = vsel %vm526_vm9, %v520_v31, %v537_v44  ;;  %v398_v9 = vadd.s32 1, %v5159_v45 }
  0xc2   :  { %v5244_v0 = vshrl.u32 %v657_v39, 30  ;;  %v539_v3 = vsel %vm525_vm10, %v536_v38, %v538_v62  ;;  %v5248_v4 = vmul.u32.u64.low %v5208_v47, %v535_v50  ;;  %v5249_v5 = vmul.u32.u64.high %v5208_v47, %v535_v50, %v5248_v4  ;;  %v2137_v62 = vld [vmem:[%s7416_s5 + $0x28] sm:$0xff] }
  0xc3   :  { %v5254_v11 = vmul.u32.u64.low %v5208_v47, %v539_v3  ;;  %v5255_v51 = vmul.u32.u64.high %v5208_v47, %v539_v3, %v5254_v11  ;;  %v703_v49 = vand.u32 2139095040, %v5211_v2  ;;  %v260_v14 = vmul.f32 %v5097_v58, %v5113_v6  ;;  %v158_v50 = vpop.permute.xlu1 %157  ;;  %v2152_v3 = vld [vmem:[%s7416_s5 + $0xa0] sm:$0xff] }
  0xc4   :  { %7481 = vst [vmem:[#allocation6_spill] sm:$0xff] %v5244_v0  ;;  %v659_v56 = vshll.u32 %v5244_v0, 30  ;;  %v531_v15 = vsel %vm525_vm10, %v528_v29, %v530_v30  ;;  %v196_v16 = vadd.f32 %v5152_v40, %v5156_v41  ;;  %v125_v45 = vmul.f32 %v5092_v55, %v5075_v42 }
  0xc5   :  { %v704_v17 = vshrl.u32 %v703_v49, 23  ;;  %v550_v19 = vadd.s32 1, %v5249_v5  ;;  %v189_v20 = vmul.f32 %v5090_v54, %v154_v24  ;;  %vm399_vm11 = vcmp.gt.s32.totalorder %v398_v9, 0 }
  0xc6   :  { %v5266_v18 = vsub.s32 %v656_v32, %v659_v56  ;;  %v547_v21 = vmul.u32 %v5208_v47, %v531_v15  ;;  %vm549_vm12 = vc.u32 %v5255_v51, %v5248_v4  ;;  %v5274_v40 = vadd.f32 %v260_v14, %v196_v16  ;;  %v2153_v47 = vld [vmem:[%s7416_s5 + $0xa8] sm:$0xff]  ;;  %v2134_v32 = vld [vmem:[%s7416_s5 + $0x10] sm:$0xff] }
  0xc7   :  { %v3964_v6 = vadd.s32 4294967169, %v704_v17  ;;  %v551_v41 = vsel %vm549_vm12, %v550_v19, %v5249_v5  ;;  %v265_v42 = vmul.f32 %v5097_v58, %v230_v8  ;;  %v201_v31 = vadd.f32 %v189_v20, %v125_v45  ;;  %2271 = vperm.xlu1 %4643, %v2153_v47   ;;  %2176 = vperm.xlu0 %4644, %v2134_v32  }
  0xc8   :  { %v662_v48 = vsub.s32 0, %v5266_v18  ;;  %7482 = vst [vmem:[#allocation7_spill] sm:$0xff] %v5274_v40  ;;  %v5278_v27 = vadd.s32 %v551_v41, %v547_v21  ;;  %v400_v33 = vsel %vm399_vm11, %v398_v9, 0  ;;  %v287_v35 = vand.u32 2139095040, %v5274_v40  ;;  %v2155_v21 = vld [vmem:[%s7416_s5 + $0xb8] sm:$0xff] }
  0xc9   :  { %v710_v28 = vadd.s32 1, %v3964_v6  ;;  %v7424_v36 = vand.u32 2147483647, %v5211_v2  ;;  %v5290_v38 = vadd.f32 %v265_v42, %v201_v31  ;;  %v5292_v44 = vshrl.u32 %v400_v33, 5  ;;  %v2136_v6 = vld [vmem:[%s7416_s5 + $0x20] sm:$0xff] }
  0xca   :  { %v3961_v24 = vmin.u32 %v662_v48, %v5266_v18  ;;  %v553_v34 = vadd.s32 536870912, %v5278_v27  ;;  %v5296_v29 = vmul.f32 %v5092_v55, %v5080_v46  ;;  %v5300_v30 = vmul.f32 %v5092_v55, %v5088_v53 }
  0xcb   :  { %vm711_vm13 = vcmp.gt.s32.totalorder %v710_v28, 0  ;;  %7483 = vst [vmem:[#allocation8_spill] sm:$0xff] %v5292_v44  ;;  %v5308_v5 = vand.u32 31, %v400_v33  ;;  %v5312_v8 = vmul.f32 %v5092_v55, %v5099_v59  ;;  %2191 = vperm.xlu1 %4643, %v2137_v62   ;;  %2266 = vperm.xlu0 %4644, %v2152_v3   ;;  %v288_v53 = vshrl.u32 %v287_v35, 23  ;;  %v162_v33 = vpop.permute.xlu1 %161 }
  0xcc   :  { %v712_v37 = vsel %vm711_vm13, %v710_v28, 0  ;;  %v664_v39 = vclz %v3961_v24  ;;  %v5314_v46 = vshrl.u32 %v553_v34, 30  ;;  %v707_v11 = vand.u32 8388607, %v7424_v36  ;;  %v234_v28 = vpop.permute.xlu0 %233 }
  0xcd   :  { %v714_v43 = vand.u32 31, %v712_v37  ;;  %7484 = vst [vmem:[#allocation9_spill] sm:$0xff] %v5308_v5  ;;  %v807_v49 = vand.u32 2139095040, %v5290_v38  ;;  %v7428_v56 = vand.u32 2147483647, %v5274_v40  ;;  %v126_v16 = vmul.f32 %v5092_v55, %v89_v26 }
  0xce   :  { %7485 = vst [vmem:[#allocation10_spill] sm:$0xff] %v5314_v46  ;;  %v3962_v14 = vadd.s32 4294967294, %v664_v39  ;;  %v190_v59 = vmul.f32 %v5090_v54, %v158_v50  ;;  %v555_v48 = vshll.u32 %v5314_v46, 30  ;;  %v713_v24 = vshrl.u32 %v712_v37, 5 }
  0xcf   :  { %v715_v9 = vsub.s32 32, %v714_v43  ;;  %v717_v17 = vshll.u32 %v7435_v57, %v714_v43  ;;  %v720_v45 = vshll.u32 %v7438_v61, %v714_v43  ;;  %v723_v20 = vshll.u32 %v7442_v63, %v714_v43  ;;  %2281 = vperm.xlu1 %4643, %v2155_v21   ;;  %2186 = vperm.xlu0 %4644, %v2136_v6  }
  0xd0   :  { %v726_v42 = vshll.u32 %v7429_v1, %v714_v43  ;;  %v729_v31 = vshll.u32 %v7433_v7, %v714_v43  ;;  %v808_v32 = vshrl.u32 %v807_v49, 23  ;;  %v3948_v62 = vadd.s32 4294967169, %v288_v53 }
  0xd1   :  { %v718_v15 = vshrl.u32 %v7438_v61, %v715_v9  ;;  %v721_v19 = vshrl.u32 %v7442_v63, %v715_v9  ;;  %v724_v41 = vshrl.u32 %v7429_v1, %v715_v9  ;;  %v727_v26 = vshrl.u32 %v7433_v7, %v715_v9 }
  0xd2   :  { %v730_v47 = vshrl.u32 %v7431_v13, %v715_v9  ;;  %v708_v3 = vor.u32 8388608, %v707_v11  ;;  %v266_v22 = vmul.f32 %v5097_v58, %v234_v28  ;;  %vm3963_vm14 = vcmp.lt.s32.totalorder %v3962_v14, 0 }
  0xd3   :  { %v719_v34 = vor.u32 %v718_v15, %v717_v17  ;;  %v722_v35 = vor.u32 %v721_v19, %v720_v45  ;;  %v725_v39 = vor.u32 %v724_v41, %v723_v20  ;;  %v728_v50 = vor.u32 %v727_v26, %v726_v42 }
  0xd4   :  { %v731_v36 = vor.u32 %v730_v47, %v729_v31  ;;  %v5341_v21 = vsub.s32 %v5278_v27, %v555_v48  ;;  %v202_v37 = vadd.f32 %v190_v59, %v126_v16  ;;  %v191_v43 = vmul.f32 %v5090_v54, %v162_v33 }
  0xd5   :  { %vm732_vm15 = vcmp.lt.s32.totalorder %v713_v24, 1  ;;  %vm735_vm0 = vcmp.lt.s32.totalorder %v713_v24, 4  ;;  %v7426_v49 = vand.u32 2147483647, %v5290_v38  ;;  %v3968_v15 = vadd.s32 4294967169, %v808_v32 }
  0xd6   :  { %vm734_vm1 = vcmp.lt.s32.totalorder %v713_v24, 3  ;;  %v740_v17 = vsel %vm732_vm15, %v719_v34, %v722_v35  ;;  %v741_v53 = vsel %vm735_vm0, %v728_v50, 920167782  ;;  %v744_v11 = vsel %vm732_vm15, %v722_v35, %v725_v39 }
  0xd7   :  { %v5347_v45 = vsel %vm3963_vm14, 0, %v3962_v14  ;;  %v737_v19 = vsel %vm735_vm0, %v725_v39, 2102212464  ;;  %v742_v27 = vsel %vm734_vm1, %v725_v39, %v741_v53  ;;  %v745_v20 = vsel %vm735_vm0, %v731_v36, 1326507024 }
  0xd8   :  { %v558_v16 = vsub.s32 0, %v5341_v21  ;;  %v716_v59 = vshrl.u32 %v7435_v57, %v715_v9  ;;  %vm733_vm2 = vcmp.lt.s32.totalorder %v713_v24, 2  ;;  %v746_v6 = vsel %vm734_vm1, %v728_v50, %v745_v20 }
  0xd9   :  { %v743_v48 = vsel %vm733_vm2, %v740_v17, %v742_v27  ;;  %v747_v41 = vsel %vm733_vm2, %v744_v11, %v746_v6  ;;  %v748_v42 = vshll.u32 %v708_v3, 8  ;;  %v814_v26 = vadd.s32 1, %v3968_v15 }
  0xda   :  { %v736_v14 = vsel %vm732_vm15, %v716_v59, %v719_v34  ;;  %v738_v28 = vsel %vm734_vm1, %v722_v35, %v737_v19  ;;  %v811_v36 = vand.u32 8388607, %v7426_v49  ;;  %v5359_v31 = vadd.f32 %v266_v22, %v202_v37 }
  0xdb   :  { %v672_v9 = vsub.s32 4294967266, %v5347_v45  ;;  %v5362_v47 = vmul.u32.u64.low %v748_v42, %v747_v41  ;;  %v5363_v32 = vmul.u32.u64.high %v748_v42, %v747_v41, %v5362_v47  ;;  %vm815_vm3 = vcmp.gt.s32.totalorder %v814_v26, 0 }
  0xdc   :  { %v5366_v33 = vsub.s32 32, %v5308_v5  ;;  %v3957_v39 = vmin.u32 %v558_v16, %v5341_v21  ;;  %v5369_v50 = vmul.u32.u64.low %v748_v42, %v743_v48  ;;  %v5370_v34 = vmul.u32.u64.high %v748_v42, %v743_v48, %v5369_v50 }
  0xdd   :  { %v5373_v35 = vadd.s32 1, %v3948_v62  ;;  %v739_v22 = vsel %vm733_vm2, %v736_v14, %v738_v28  ;;  %v816_v3 = vsel %vm815_vm3, %v814_v26, 0  ;;  %v5378_v37 = vand.u32 8388607, %v7428_v56 }
  0xde   :  { %7486 = vst [vmem:[#allocation11_spill] sm:$0xff] %v5366_v33  ;;  %v652_v15 = vadd.s32 %v5204_v60, %v5202_v52  ;;  %v818_v17 = vand.u32 31, %v816_v3  ;;  %v7437_v53 = vand.u32 2147483647, %v5359_v31  ;;  %v5384_v11 = vadd.f32 %v191_v43, %v5296_v29 }
  0xdf   :  { %7487 = vst [vmem:[#allocation12_spill] sm:$0xff] %v5378_v37  ;;  %v668_v19 = vsub.s32 32, %v5347_v45  ;;  %v5387_v62 = vadd.s32 127, %v672_v9  ;;  %vm757_vm4 = vc.u32 %v5363_v32, %v5369_v50  ;;  %v812_v24 = vor.u32 8388608, %v811_v36 }
  0xe0   :  { %v560_v27 = vclz %v3957_v39  ;;  %v755_v20 = vmul.u32 %v748_v42, %v739_v22  ;;  %v758_v16 = vadd.s32 1, %v5370_v34  ;;  %v819_v59 = vsub.s32 32, %v818_v17 }
  0xe1   :  { %v817_v52 = vshrl.u32 %v816_v3, 5  ;;  %v821_v60 = vshll.u32 %v7435_v57, %v818_v17  ;;  %v824_v6 = vshll.u32 %v7438_v61, %v818_v17  ;;  %v911_v29 = vand.u32 2139095040, %v5359_v31 }
  0xe2   :  { %v759_v43 = vsel %vm757_vm4, %v758_v16, %v5370_v34  ;;  %v822_v48 = vshrl.u32 %v7438_v61, %v819_v59  ;;  %v827_v41 = vshll.u32 %v7442_v63, %v818_v17  ;;  %v830_v26 = vshll.u32 %v7429_v1, %v818_v17 }
  0xe3   :  { %v760_v14 = vadd.s32 %v759_v43, %v755_v20  ;;  %v825_v42 = vshrl.u32 %v7442_v63, %v819_v59  ;;  %v828_v28 = vshrl.u32 %v7429_v1, %v819_v59  ;;  %v831_v36 = vshrl.u32 %v7433_v7, %v819_v59 }
  0xe4   :  { %v3958_v9 = vadd.s32 4294967294, %v560_v27  ;;  %v823_v47 = vor.u32 %v822_v48, %v821_v60  ;;  %v833_v39 = vshll.u32 %v7433_v7, %v818_v17  ;;  %v834_v22 = vshrl.u32 %v7431_v13, %v819_v59 }
  0xe5   :  { %vm295_vm5 = vcmp.gt.s32.totalorder %v5373_v35, 0  ;;  %v761_v34 = vadd.s32 536870912, %v760_v14  ;;  %v826_v3 = vor.u32 %v825_v42, %v824_v6  ;;  %v829_v16 = vor.u32 %v828_v28, %v827_v41 }
  0xe6   :  { %v832_v49 = vor.u32 %v831_v36, %v830_v26  ;;  %v820_v20 = vshrl.u32 %v7435_v57, %v819_v59  ;;  %v835_v43 = vor.u32 %v834_v22, %v833_v39  ;;  %v852_v25 = vshll.u32 %v812_v24, 8  ;;  %v238_v26 = vpop.permute.xlu1 %237 }
  0xe7   :  { %v912_v56 = vshrl.u32 %v911_v29, 23  ;;  %v5406_v1 = vshrl.u32 %v761_v34, 30  ;;  %vm836_vm6 = vcmp.lt.s32.totalorder %v817_v52, 1  ;;  %vm837_vm7 = vcmp.lt.s32.totalorder %v817_v52, 2 }
  0xe8   :  { %vm839_vm8 = vcmp.lt.s32.totalorder %v817_v52, 4  ;;  %vm838_vm9 = vcmp.lt.s32.totalorder %v817_v52, 3  ;;  %v844_v27 = vsel %vm836_vm6, %v823_v47, %v826_v3  ;;  %v840_v13 = vsel %vm836_vm6, %v820_v20, %v823_v47 }
  0xe9   :  { %7488 = vst [vmem:[#allocation13_spill] sm:$0xff] %v5406_v1  ;;  %v841_v17 = vsel %vm839_vm8, %v829_v16, 2102212464  ;;  %v845_v60 = vsel %vm839_vm8, %v832_v49, 920167782  ;;  %v763_v48 = vshll.u32 %v5406_v1, 30  ;;  %v848_v41 = vsel %vm836_vm6, %v826_v3, %v829_v16 }
  0xea   :  { %v846_v6 = vsel %vm838_vm9, %v829_v16, %v845_v60  ;;  %v842_v42 = vsel %vm838_vm9, %v826_v3, %v841_v17  ;;  %v849_v24 = vsel %vm839_vm8, %v835_v43, 1326507024  ;;  %v3972_v29 = vadd.s32 4294967169, %v912_v56  ;;  %v99_v0 = vpop.permute.xlu1 %98 }
  0xeb   :  { %v847_v59 = vsel %vm837_vm7, %v844_v27, %v846_v6  ;;  %v5410_v28 = vsub.s32 %v760_v14, %v763_v48  ;;  %v850_v36 = vsel %vm838_vm9, %v832_v49, %v849_v24  ;;  %v670_v34 = vshrl.u32 %v652_v15, %v668_v19 }
  0xec   :  { %v5412_v39 = vmul.u32.u64.low %v852_v25, %v847_v59  ;;  %v5413_v22 = vmul.u32.u64.high %v852_v25, %v847_v59, %v5412_v39  ;;  %v851_v7 = vsel %vm837_vm7, %v848_v41, %v850_v36  ;;  %v918_v57 = vadd.s32 1, %v3972_v29 }
  0xed   :  { %v267_v47 = vmul.f32 %v5097_v58, %v238_v26  ;;  %vm3959_vm10 = vcmp.lt.s32.totalorder %v3958_v9, 0  ;;  %v766_v3 = vsub.s32 0, %v5410_v28  ;;  %v669_v56 = vshll.u32 %v5266_v18, %v5347_v45 }
  0xee   :  { %v5419_v16 = vmul.u32.u64.low %v852_v25, %v851_v7  ;;  %v5420_v20 = vmul.u32.u64.high %v852_v25, %v851_v7, %v5419_v16  ;;  %v674_v49 = vshll.u32 %v5387_v62, 23  ;;  %v843_v14 = vsel %vm837_vm7, %v840_v13, %v842_v42 }
  0xef   :  { %vm919_vm11 = vcmp.gt.s32.totalorder %v918_v57, 0  ;;  %v3965_v15 = vmin.u32 %v766_v3, %v5410_v28  ;;  %v862_v19 = vadd.s32 1, %v5413_v22  ;;  %v915_v43 = vand.u32 8388607, %v7437_v53 }
  0xf0   :  { %v920_v17 = vsel %vm919_vm11, %v918_v57, 0  ;;  %v5433_v7 = vsel %vm295_vm5, %v5373_v35, 0  ;;  %v5435_v27 = vsel %vm3959_vm10, 0, %v3958_v9  ;;  %v5438_v45 = vadd.f32 %v267_v47, %v5384_v11 }
  0xf1   :  { %v922_v18 = vand.u32 31, %v920_v17  ;;  %v5440_v13 = vor.u32 %v670_v34, %v669_v56  ;;  %v548_v62 = vadd.s32 %v5248_v4, %v5255_v51  ;;  %v859_v52 = vmul.u32 %v852_v25, %v843_v14 }
  0xf2   :  { %vm861_vm12 = vc.u32 %v5420_v20, %v5412_v39  ;;  %v5446_v57 = vor.u32 4788187, %v674_v49  ;;  %v768_v60 = vclz %v3965_v15  ;;  %v564_v48 = vsub.s32 32, %v5435_v27 }
  0xf3   :  { %v863_v35 = vsel %vm861_vm12, %v862_v19, %v5413_v22  ;;  %v923_v9 = vsub.s32 32, %v922_v18  ;;  %v568_v11 = vsub.s32 4294967266, %v5435_v27  ;;  %v916_v41 = vor.u32 8388608, %v915_v43 }
  0xf4   :  { %v864_v6 = vadd.s32 %v863_v35, %v859_v52  ;;  %v7489_v25 = vmov 2102212464   ;;  %v1015_v42 = vand.u32 2139095040, %v5438_v45  ;;  %v7490_v24 = vmov 683565275  }
  0xf5   :  { %v926_v26 = vshrl.u32 %v7438_v61, %v923_v9  ;;  %v929_v4 = vshrl.u32 %v7442_v63, %v923_v9  ;;  %v932_v51 = vshrl.u32 %v7489_v25, %v923_v9  ;;  %v925_v29 = vshll.u32 %v7490_v24, %v922_v18 }
  0xf6   :  { %v865_v59 = vadd.s32 536870912, %v864_v6  ;;  %v928_v36 = vshll.u32 %v7438_v61, %v922_v18  ;;  %v7491_v22 = vmov 920167782   ;;  %v3966_v47 = vadd.s32 4294967294, %v768_v60 }
  0xf7   :  { %v935_v34 = vshrl.u32 %v7491_v22, %v923_v9  ;;  %v921_v3 = vshrl.u32 %v920_v17, 5  ;;  %v931_v16 = vshll.u32 %v7442_v63, %v922_v18  ;;  %v934_v56 = vshll.u32 %v7489_v25, %v922_v18 }
  0xf8   :  { %v565_v49 = vshll.u32 %v5341_v21, %v5435_v27  ;;  %v5462_v14 = vshrl.u32 %v865_v59, 30  ;;  %v927_v15 = vor.u32 %v926_v26, %v925_v29  ;;  %v930_v19 = vor.u32 %v929_v4, %v928_v36 }
  0xf9   :  { %v933_v43 = vor.u32 %v932_v51, %v931_v16  ;;  %v936_v52 = vor.u32 %v935_v34, %v934_v56  ;;  %v937_v35 = vshll.u32 %v7491_v22, %v922_v18  ;;  %v7493_v53 = vmov 1326507024   ;;  %v166_v16 = vpop.permute.xlu1 %165 }
  0xfa   :  { %7492 = vst [vmem:[#allocation14_spill] sm:$0xff] %v5462_v14  ;;  %v938_v61 = vshrl.u32 %v7493_v53, %v923_v9  ;;  %v566_v1 = vshrl.u32 %v548_v62, %v564_v48  ;;  %v569_v60 = vadd.s32 127, %v568_v11  ;;  %v867_v17 = vshll.u32 %v5462_v14, 30 }
  0xfb   :  { %v956_v63 = vshll.u32 %v916_v41, 8  ;;  %vm3967_vm13 = vcmp.lt.s32.totalorder %v3966_v47, 0  ;;  %vm940_vm14 = vcmp.lt.s32.totalorder %v921_v3, 1  ;;  %v1016_v21 = vshrl.u32 %v1015_v42, 23 }
  0xfc   :  { %v939_v46 = vor.u32 %v938_v61, %v937_v35  ;;  %v5467_v27 = vsub.s32 %v864_v6, %v867_v17  ;;  %v924_v26 = vshrl.u32 %v7490_v24, %v923_v9  ;;  %vm943_vm15 = vcmp.lt.s32.totalorder %v921_v3, 4 }
  0xfd   :  { %v948_v4 = vsel %vm940_vm14, %v927_v15, %v930_v19  ;;  %v945_v51 = vsel %vm943_vm15, %v933_v43, 2102212464  ;;  %v949_v18 = vsel %vm943_vm15, %v936_v52, 920167782  ;;  %v952_v59 = vsel %vm940_vm14, %v930_v19, %v933_v43 }
  0xfe   :  { %v953_v29 = vsel %vm943_vm15, %v939_v46, 1326507024  ;;  %v5470_v62 = vsel %vm3967_vm13, 0, %v3966_v47  ;;  %vm941_vm0 = vcmp.lt.s32.totalorder %v921_v3, 2  ;;  %vm942_vm1 = vcmp.lt.s32.totalorder %v921_v3, 3 }
  0xff   :  { %v7448_v48 = vand.u32 2147483647, %v5438_v45  ;;  %v944_v11 = vsel %vm940_vm14, %v924_v26, %v927_v15  ;;  %v950_v61 = vsel %vm942_vm1, %v933_v43, %v949_v18  ;;  %v954_v41 = vsel %vm942_vm1, %v936_v52, %v953_v29 }
 0x100   :  { %v3976_v42 = vadd.s32 4294967169, %v1016_v21  ;;  %v870_v6 = vsub.s32 0, %v5467_v27  ;;  %v946_v36 = vsel %vm942_vm1, %v930_v19, %v945_v51  ;;  %v951_v9 = vsel %vm941_vm0, %v948_v4, %v950_v61 }
 0x101   :  { %v955_v34 = vsel %vm941_vm0, %v952_v59, %v954_v41  ;;  %v5479_v47 = vmul.u32.u64.low %v956_v63, %v951_v9  ;;  %v5480_v35 = vmul.u32.u64.high %v956_v63, %v951_v9, %v5479_v47  ;;  %v676_v15 = vand.u32 2147483647, %v5446_v57 }
 0x102   :  { %v5476_v56 = vmul.u32.u64.low %v956_v63, %v955_v34  ;;  %v5477_v46 = vmul.u32.u64.high %v956_v63, %v955_v34, %v5476_v56  ;;  %v5485_v43 = vshrl.u32 %v5433_v7, 5  ;;  %v1022_v52 = vadd.s32 1, %v3976_v42 }
 0x103   :  { %v678_v17 = vcvt.s32.f32 %v5440_v13  ;;  %v5489_v21 = vor.u32 %v566_v1, %v565_v49  ;;  %v570_v26 = vshll.u32 %v569_v60, 23  ;;  %v947_v4 = vsel %vm941_vm0, %v944_v11, %v946_v36  ;;  %v170_v11 = vpop.permute.xlu1 %169  ;;  %v242_v36 = vpop.permute.xlu0 %241 }
 0x104   :  { %7494 = vst [vmem:[#allocation15_spill] sm:$0xff] %v5485_v43  ;;  %v776_v51 = vsub.s32 4294967266, %v5470_v62  ;;  %v1019_v18 = vand.u32 8388607, %v7448_v48  ;;  %vm1023_vm2 = vcmp.gt.s32.totalorder %v1022_v52, 0  ;;  %v192_v57 = vmul.f32 %v5090_v54, %v166_v16 }
 0x105   :  { %v3969_v59 = vmin.u32 %v870_v6, %v5467_v27  ;;  %vm965_vm3 = vc.u32 %v5477_v46, %v5479_v47  ;;  %v966_v13 = vadd.s32 1, %v5480_v35  ;;  %v1024_v1 = vsel %vm1023_vm2, %v1022_v52, 0 }
 0x106   :  { %v5500_v49 = vmul.f32 %v678_v17, %v676_v15  ;;  %v5503_v3 = vand.u32 31, %v5433_v7  ;;  %v963_v60 = vmul.u32 %v956_v63, %v947_v4  ;;  %v1026_v29 = vand.u32 31, %v1024_v1 }
 0x107   :  { %v5505_v61 = vor.u32 4788187, %v570_v26  ;;  %v5509_v41 = vadd.s32 %v5369_v50, %v5363_v32  ;;  %v967_v42 = vsel %vm965_vm3, %v966_v13, %v5480_v35  ;;  %v128_v6 = vmul.f32 %v5092_v55, %v99_v0 }
 0x108   :  { %v772_v34 = vsub.s32 32, %v5470_v62  ;;  %v968_v7 = vadd.s32 %v967_v42, %v963_v60  ;;  %v1020_v16 = vor.u32 8388608, %v1019_v18  ;;  %v5515_v63 = vadd.s32 127, %v776_v51  ;;  %v246_v42 = vpop.permute.xlu1 %245 }
 0x109   :  { %v872_v56 = vclz %v3969_v59  ;;  %v1027_v15 = vsub.s32 32, %v1026_v29  ;;  %v204_v52 = vadd.f32 %v192_v57, %v128_v6  ;;  %v1029_v32 = vshll.u32 %v7490_v24, %v1026_v29 }
 0x10a   :  { %v969_v17 = vadd.s32 536870912, %v968_v7  ;;  %v7495_v50 = vmov 2475754826   ;;  %v268_v35 = vmul.f32 %v5097_v58, %v242_v36  ;;  %v7496_v4 = vmov 2131351028  }
 0x10b   :  { %v1032_v26 = vshll.u32 %v7495_v50, %v1026_v29  ;;  %v1030_v0 = vshrl.u32 %v7495_v50, %v1027_v15  ;;  %v1033_v13 = vshrl.u32 %v7496_v4, %v1027_v15  ;;  %v1035_v48 = vshll.u32 %v7496_v4, %v1026_v29 }
 0x10c   :  { %v1036_v18 = vshrl.u32 %v7489_v25, %v1027_v15  ;;  %v5524_v51 = vshrl.u32 %v969_v17, 30  ;;  %v1025_v59 = vshrl.u32 %v1024_v1, 5  ;;  %v1038_v57 = vshll.u32 %v7489_v25, %v1026_v29 }
 0x10d   :  { %v1039_v60 = vshrl.u32 %v7491_v22, %v1027_v15  ;;  %v1031_v6 = vor.u32 %v1030_v0, %v1029_v32  ;;  %v1034_v19 = vor.u32 %v1033_v13, %v1032_v26  ;;  %v5528_v36 = vshll.u32 %v1020_v16, 8  ;;  %v109_v26 = vpop.permute.xlu1 %108 }
 0x10e   :  { %7497 = vst [vmem:[#allocation16_spill] sm:$0xff] %v5524_v51  ;;  %v1037_v9 = vor.u32 %v1036_v18, %v1035_v48  ;;  %v3970_v14 = vadd.s32 4294967294, %v872_v56  ;;  %v971_v40 = vshll.u32 %v5524_v51, 30  ;;  %v193_v5 = vmul.f32 %v5090_v54, %v170_v11 }
 0x10f   :  { %v1040_v44 = vor.u32 %v1039_v60, %v1038_v57  ;;  %v1041_v17 = vshll.u32 %v7491_v22, %v1026_v29  ;;  %v1042_v1 = vshrl.u32 %v7493_v53, %v1027_v15  ;;  %v5534_v33 = vadd.f32 %v268_v35, %v204_v52 }
 0x110   :  { %v269_v12 = vmul.f32 %v5097_v58, %v246_v42  ;;  %v5537_v37 = vsub.s32 %v968_v7, %v971_v40  ;;  %vm1044_vm4 = vcmp.lt.s32.totalorder %v1025_v59, 1  ;;  %vm1046_vm5 = vcmp.lt.s32.totalorder %v1025_v59, 3 }
 0x111   :  { %7498 = vst [vmem:[#allocation17_spill] sm:$0xff] %v5534_v33  ;;  %vm1047_vm6 = vcmp.lt.s32.totalorder %v1025_v59, 4  ;;  %v1043_v48 = vor.u32 %v1042_v1, %v1041_v17  ;;  %v1052_v56 = vsel %vm1044_vm4, %v1031_v6, %v1034_v19  ;;  %v1028_v29 = vshrl.u32 %v7490_v24, %v1027_v15 }
 0x112   :  { %v1049_v16 = vsel %vm1047_vm6, %v1037_v9, 2102212464  ;;  %v1053_v32 = vsel %vm1047_vm6, %v1040_v44, 920167782  ;;  %v974_v11 = vsub.s32 0, %v5537_v37  ;;  %vm1045_vm7 = vcmp.lt.s32.totalorder %v1025_v59, 2 }
 0x113   :  { %v1054_v52 = vsel %vm1046_vm5, %v1037_v9, %v1053_v32  ;;  %vm3971_vm8 = vcmp.lt.s32.totalorder %v3970_v14, 0  ;;  %v1056_v7 = vsel %vm1044_vm4, %v1034_v19, %v1037_v9  ;;  %v1057_v35 = vsel %vm1047_vm6, %v1043_v48, 1326507024 }
 0x114   :  { %v1055_v40 = vsel %vm1045_vm7, %v1052_v56, %v1054_v52  ;;  %v3973_v0 = vmin.u32 %v974_v11, %v5537_v37  ;;  %v1048_v13 = vsel %vm1044_vm4, %v1028_v29, %v1031_v6  ;;  %v1050_v18 = vsel %vm1046_vm5, %v1034_v19, %v1049_v16  ;;  %v174_v52 = vpop.permute.xlu1 %173 }
 0x115   :  { %v1058_v57 = vsel %vm1046_vm5, %v1040_v44, %v1057_v35  ;;  %v5551_v60 = vmul.u32.u64.low %v5528_v36, %v1055_v40  ;;  %v5552_v42 = vmul.u32.u64.high %v5528_v36, %v1055_v40, %v5551_v60  ;;  %v7461_v17 = vand.u32 2147483647, %v5534_v33 }
 0x116   :  { %v1059_v15 = vsel %vm1045_vm7, %v1056_v7, %v1058_v57  ;;  %v5556_v1 = vsel %vm3971_vm8, 0, %v3970_v14  ;;  %v976_v9 = vclz %v3973_v0  ;;  %v774_v44 = vshrl.u32 %v5509_v41, %v772_v34 }
 0x117   :  { %v5559_v48 = vmul.u32.u64.low %v5528_v36, %v1059_v15  ;;  %v5560_v56 = vmul.u32.u64.high %v5528_v36, %v1059_v15, %v5559_v48  ;;  %v1051_v6 = vsel %vm1045_vm7, %v1048_v13, %v1050_v18  ;;  %v1119_v16 = vand.u32 2139095040, %v5534_v33 }
 0x118   :  { %v773_v32 = vshll.u32 %v5410_v28, %v5470_v62  ;;  %v778_v11 = vshll.u32 %v5515_v63, 23  ;;  %v3974_v14 = vadd.s32 4294967294, %v976_v9  ;;  %v205_v29 = vadd.f32 %v193_v5, %v5300_v30  ;;  %v250_v28 = vpop.permute.xlu0 %249 }
 0x119   :  { %v880_v40 = vsub.s32 4294967266, %v5556_v1  ;;  %v1070_v7 = vadd.s32 1, %v5552_v42  ;;  %v1120_v35 = vshrl.u32 %v1119_v16, 23  ;;  %v1123_v41 = vand.u32 8388607, %v7461_v17 }
 0x11a   :  { %vm3975_vm9 = vcmp.lt.s32.totalorder %v3974_v14, 0  ;;  %v1067_v34 = vmul.u32 %v5528_v36, %v1051_v6  ;;  %vm1069_vm10 = vc.u32 %v5560_v56, %v5551_v60  ;;  %v5577_v62 = vadd.f32 %v269_v12, %v205_v29 }
 0x11b   :  { %v5579_v63 = vor.u32 %v774_v44, %v773_v32  ;;  %v860_v30 = vadd.s32 %v5412_v39, %v5420_v20  ;;  %v1071_v5 = vsel %vm1069_vm10, %v1070_v7, %v5552_v42  ;;  %v3980_v59 = vadd.s32 4294967169, %v1120_v35  ;;  %v178_v44 = vpop.permute.xlu1 %177 }
 0x11c   :  { %7499 = vst [vmem:[#allocation18_spill] sm:$0xff] %v5577_v62  ;;  %v5584_v0 = vor.u32 4788187, %v778_v11  ;;  %v876_v13 = vsub.s32 32, %v5556_v1  ;;  %v5587_v18 = vsel %vm3975_vm9, 0, %v3974_v14  ;;  %v1072_v36 = vadd.s32 %v1071_v5, %v1067_v34 }
 0x11d   :  { %v5589_v57 = vadd.s32 127, %v880_v40  ;;  %v1124_v15 = vor.u32 8388608, %v1123_v41  ;;  %v1126_v12 = vadd.s32 1, %v3980_v59  ;;  %v5592_v9 = vmul.f32 %v5097_v58, %v250_v28 }
 0x11e   :  { %v964_v39 = vadd.s32 %v5479_v47, %v5477_v46  ;;  %v1073_v20 = vadd.s32 536870912, %v1072_v36  ;;  %v7460_v42 = vand.u32 2147483647, %v5577_v62  ;;  %v194_v48 = vmul.f32 %v5090_v54, %v174_v52 }
 0x11f   :  { %v984_v16 = vsub.s32 4294967266, %v5587_v18  ;;  %vm1127_vm11 = vcmp.gt.s32.totalorder %v1126_v12, 0  ;;  %v1223_v32 = vand.u32 2139095040, %v5577_v62  ;;  %v5602_v11 = vshrl.u32 %v860_v30, %v876_v13 }
 0x120   :  { %v5604_v14 = vshrl.u32 %v1073_v20, 30  ;;  %v1128_v29 = vsel %vm1127_vm11, %v1126_v12, 0  ;;  %v130_v46 = vmul.f32 %v5092_v55, %v109_v26  ;;  %v5608_v52 = vshll.u32 %v1124_v15, 8 }
 0x121   :  { %v1130_v40 = vand.u32 31, %v1128_v29  ;;  %v5611_v7 = vmul.f32 %v5090_v54, %v178_v44  ;;  %v980_v35 = vsub.s32 32, %v5587_v18  ;;  %v5617_v34 = vand.u32 8388607, %v7460_v42 }
 0x122   :  { %7500 = vst [vmem:[#allocation19_spill] sm:$0xff] %v5604_v14  ;;  %v1075_v41 = vshll.u32 %v5604_v14, 30  ;;  %v206_v28 = vadd.f32 %v194_v48, %v130_v46  ;;  %v5619_v30 = vadd.s32 127, %v984_v16  ;;  %v1129_v55 = vshrl.u32 %v1128_v29, 5 }
 0x123   :  { %v1131_v26 = vsub.s32 32, %v1130_v40  ;;  %v1224_v5 = vshrl.u32 %v1223_v32, 23  ;;  %v1133_v13 = vshll.u32 %v7490_v24, %v1130_v40  ;;  %v1136_v54 = vshll.u32 %v7495_v50, %v1130_v40 }
 0x124   :  { %v5621_v59 = vsub.s32 %v1072_v36, %v1075_v41  ;;  %v1139_v15 = vshll.u32 %v7496_v4, %v1130_v40  ;;  %v1142_v48 = vshll.u32 %v7489_v25, %v1130_v40  ;;  %v1145_v36 = vshll.u32 %v7491_v22, %v1130_v40 }
 0x125   :  { %v1134_v12 = vshrl.u32 %v7495_v50, %v1131_v26  ;;  %v1137_v20 = vshrl.u32 %v7496_v4, %v1131_v26  ;;  %v1140_v44 = vshrl.u32 %v7489_v25, %v1131_v26  ;;  %v1143_v32 = vshrl.u32 %v7491_v22, %v1131_v26 }
 0x126   :  { %v1078_v16 = vsub.s32 0, %v5621_v59  ;;  %v1146_v29 = vshrl.u32 %v7493_v53, %v1131_v26  ;;  %v982_v46 = vshrl.u32 %v964_v39, %v980_v35  ;;  %v1228_v14 = vor.u32 8388608, %v5617_v34 }
 0x127   :  { %v1135_v41 = vor.u32 %v1134_v12, %v1133_v13  ;;  %v1138_v42 = vor.u32 %v1137_v20, %v1136_v54  ;;  %v1141_v17 = vor.u32 %v1140_v44, %v1139_v15  ;;  %v1144_v47 = vor.u32 %v1143_v32, %v1142_v48 }
 0x128   :  { %v3977_v19 = vmin.u32 %v1078_v16, %v5621_v59  ;;  %v1147_v6 = vor.u32 %v1146_v29, %v1145_v36  ;;  %v986_v51 = vshll.u32 %v5619_v30, 23  ;;  %v1132_v62 = vshrl.u32 %v7490_v24, %v1131_v26 }
 0x129   :  { %vm1148_vm12 = vcmp.lt.s32.totalorder %v1129_v55, 1  ;;  %v3984_v33 = vadd.s32 4294967169, %v1224_v5  ;;  %vm1150_vm13 = vcmp.lt.s32.totalorder %v1129_v55, 3  ;;  %vm1151_vm14 = vcmp.lt.s32.totalorder %v1129_v55, 4 }
 0x12a   :  { %v1080_v43 = vclz %v3977_v19  ;;  %v1156_v40 = vsel %vm1148_vm12, %v1135_v41, %v1138_v42  ;;  %v1153_v39 = vsel %vm1151_vm14, %v1141_v17, 2102212464  ;;  %v1157_v35 = vsel %vm1151_vm14, %v1144_v47, 920167782 }
 0x12b   :  { %v1160_v13 = vsel %vm1148_vm12, %v1138_v42, %v1141_v17  ;;  %v1161_v54 = vsel %vm1151_vm14, %v1147_v6, 1326507024  ;;  %vm1149_vm15 = vcmp.lt.s32.totalorder %v1129_v55, 2  ;;  %v1158_v12 = vsel %vm1150_vm13, %v1141_v17, %v1157_v35 }
 0x12c   :  { %v3978_v15 = vadd.s32 4294967294, %v1080_v43  ;;  %v1162_v34 = vsel %vm1150_vm13, %v1144_v47, %v1161_v54  ;;  %v1152_v20 = vsel %vm1148_vm12, %v1132_v62, %v1135_v41  ;;  %v1159_v30 = vsel %vm1149_vm15, %v1156_v40, %v1158_v12  ;;  %v254_v54 = vpop.permute.xlu1 %253 }
 0x12d   :  { %v1163_v26 = vsel %vm1149_vm15, %v1160_v13, %v1162_v34  ;;  %v1230_v5 = vadd.s32 1, %v3984_v33  ;;  %v1154_v19 = vsel %vm1150_vm13, %v1138_v42, %v1153_v39  ;;  %v981_v62 = vshll.u32 %v5537_v37, %v5587_v18 }
 0x12e   :  { %vm3979_vm0 = vcmp.lt.s32.totalorder %v3978_v15, 0  ;;  %v5644_v44 = vmul.u32.u64.low %v5608_v52, %v1163_v26  ;;  %v5645_v48 = vmul.u32.u64.high %v5608_v52, %v1163_v26, %v5644_v44  ;;  %v5658_v42 = vadd.f32 %v5592_v9, %v206_v28 }
 0x12f   :  { %v5647_v6 = vsel %vm3979_vm0, 0, %v3978_v15  ;;  %v5650_v43 = vmul.u32.u64.low %v5608_v52, %v1159_v30  ;;  %v5651_v17 = vmul.u32.u64.high %v5608_v52, %v1159_v30, %v5650_v43  ;;  %vm1231_vm1 = vcmp.gt.s32.totalorder %v1230_v5, 0 }
 0x130   :  { %v1088_v33 = vsub.s32 4294967266, %v5647_v6  ;;  %v1232_v47 = vsel %vm1231_vm1, %v1230_v5, 0  ;;  %v7501_v16 = vshll.u32 %v5467_v27, %v5556_v1  ;;  %v7502_v36 = vshll.u32 %v5589_v57, 23 }
 0x131   :  { %v1155_v41 = vsel %vm1149_vm15, %v1152_v20, %v1154_v19  ;;  %v1234_v40 = vand.u32 31, %v1232_v47  ;;  %v5671_v37 = vor.u32 %v982_v46, %v981_v62  ;;  %v1068_v18 = vadd.s32 %v5551_v60, %v5560_v56 }
 0x132   :  { %v5664_v32 = vor.u32 %v5602_v11, %v7501_v16  ;;  %v5668_v29 = vor.u32 4788187, %v7502_v36  ;;  %vm1173_vm2 = vc.u32 %v5645_v48, %v5650_v43  ;;  %v5679_v27 = vadd.f32 %v5611_v7, %v5312_v8 }
 0x133   :  { %v5681_v1 = vor.u32 4788187, %v986_v51  ;;  %v1174_v57 = vadd.s32 1, %v5651_v17  ;;  %v1235_v9 = vsub.s32 32, %v1234_v40  ;;  %v5684_v11 = vshll.u32 %v1228_v14, 8 }
 0x134   :  { %v1089_v28 = vadd.s32 127, %v1088_v33  ;;  %v1171_v55 = vmul.u32 %v5608_v52, %v1155_v41  ;;  %v1237_v46 = vshll.u32 %v7490_v24, %v1234_v40  ;;  %v1327_v60 = vand.u32 2139095040, %v5658_v42  ;;  %v2139_v33 = vld [vmem:[%s7416_s5 + $0x38] sm:$0xff] }
 0x135   :  { %v1175_v56 = vsel %vm1173_vm2, %v1174_v57, %v5651_v17  ;;  %v1238_v39 = vshrl.u32 %v7495_v50, %v1235_v9  ;;  %v1240_v8 = vshll.u32 %v7495_v50, %v1234_v40  ;;  %v1241_v51 = vshrl.u32 %v7496_v4, %v1235_v9  ;;  %2201 = vperm.xlu1 %4643, %v2139_v33  }
 0x136   :  { %v1176_v7 = vadd.s32 %v1175_v56, %v1171_v55  ;;  %v1233_v35 = vshrl.u32 %v1232_v47, 5  ;;  %v1243_v14 = vshll.u32 %v7496_v4, %v1234_v40  ;;  %v1244_v13 = vshrl.u32 %v7489_v25, %v1235_v9  ;;  %v2154_v47 = vld [vmem:[%s7416_s5 + $0xb0] sm:$0xff] }
 0x137   :  { %v1239_v52 = vor.u32 %v1238_v39, %v1237_v46  ;;  %v1242_v15 = vor.u32 %v1241_v51, %v1240_v8  ;;  %v1246_v12 = vshll.u32 %v7489_v25, %v1234_v40  ;;  %v1247_v34 = vshrl.u32 %v7491_v22, %v1235_v9  ;;  %2276 = vperm.xlu0 %4644, %v2154_v47   ;;  %v2157_v51 = vld [vmem:[%s7416_s5 + $0xc8] sm:$0xff] }
 0x138   :  { %v1177_v20 = vadd.s32 536870912, %v1176_v7  ;;  %v1245_v30 = vor.u32 %v1244_v13, %v1243_v14  ;;  %v1249_v26 = vshll.u32 %v7491_v22, %v1234_v40  ;;  %v1250_v5 = vshrl.u32 %v7493_v53, %v1235_v9  ;;  %v2138_v14 = vld [vmem:[%s7416_s5 + $0x30] sm:$0xff] }
 0x139   :  { %v1084_v19 = vsub.s32 32, %v5647_v6  ;;  %v1090_v44 = vshll.u32 %v1089_v28, 23  ;;  %v1248_v17 = vor.u32 %v1247_v34, %v1246_v12  ;;  %v271_v62 = vmul.f32 %v5097_v58, %v254_v54  ;;  %2291 = vperm.xlu1 %4643, %v2157_v51  }
 0x13a   :  { %v5707_v16 = vshrl.u32 %v1177_v20, 30  ;;  %v1251_v36 = vor.u32 %v1250_v5, %v1249_v26  ;;  %vm1252_vm3 = vcmp.lt.s32.totalorder %v1233_v35, 1  ;;  %vm1255_vm4 = vcmp.lt.s32.totalorder %v1233_v35, 4  ;;  %v2156_v5 = vld [vmem:[%s7416_s5 + $0xc0] sm:$0xff] }
 0x13b   :  { %vm1254_vm5 = vcmp.lt.s32.totalorder %v1233_v35, 3  ;;  %v1257_v41 = vsel %vm1255_vm4, %v1245_v30, 2102212464  ;;  %v1260_v40 = vsel %vm1252_vm3, %v1239_v52, %v1242_v15  ;;  %v1261_v58 = vsel %vm1255_vm4, %v1248_v17, 920167782  ;;  %2196 = vperm.xlu0 %4644, %v2138_v14   ;;  %v2143_v14 = vld [vmem:[%s7416_s5 + $0x58] sm:$0xff] }
 0x13c   :  { %v1179_v57 = vshll.u32 %v5707_v16, 30  ;;  %v1236_v28 = vshrl.u32 %v7490_v24, %v1235_v9  ;;  %vm1253_vm6 = vcmp.lt.s32.totalorder %v1233_v35, 2  ;;  %v1262_v55 = vsel %vm1254_vm5, %v1245_v30, %v1261_v58 }
 0x13d   :  { %v1086_v46 = vshrl.u32 %v1068_v18, %v1084_v19  ;;  %v1263_v56 = vsel %vm1253_vm6, %v1260_v40, %v1262_v55  ;;  %v1264_v39 = vsel %vm1252_vm3, %v1242_v15, %v1245_v30  ;;  %v1265_v8 = vsel %vm1255_vm4, %v1251_v36, 1326507024 }
 0x13e   :  { %v1085_v9 = vshll.u32 %v5621_v59, %v5647_v6  ;;  %v1256_v13 = vsel %vm1252_vm3, %v1236_v28, %v1239_v52  ;;  %v1258_v18 = vsel %vm1254_vm5, %v1242_v15, %v1257_v41  ;;  %v1266_v54 = vsel %vm1254_vm5, %v1248_v17, %v1265_v8  ;;  %v2141_v59 = vld [vmem:[%s7416_s5 + $0x48] sm:$0xff] }
 0x13f   :  { %v1091_v12 = vor.u32 4788187, %v1090_v44  ;;  %v1267_v34 = vsel %vm1253_vm6, %v1264_v39, %v1266_v54  ;;  %v5728_v20 = vmul.u32.u64.low %v5684_v11, %v1263_v56  ;;  %v5729_v30 = vmul.u32.u64.high %v5684_v11, %v1263_v56, %v5728_v20  ;;  %2211 = vperm.xlu1 %4643, %v2141_v59   ;;  %2286 = vperm.xlu0 %4644, %v2156_v5  }
 0x140   :  { %v5735_v6 = vsub.s32 %v1176_v7, %v1179_v57  ;;  %v5738_v52 = vmul.u32.u64.low %v5684_v11, %v1267_v34  ;;  %v5739_v15 = vmul.u32.u64.high %v5684_v11, %v1267_v34, %v5738_v52  ;;  %v5742_v26 = vadd.f32 %v271_v62, %v5679_v27 }
 0x141   :  { %v780_v19 = vand.u32 2147483647, %v5584_v0  ;;  %v884_v44 = vand.u32 2147483647, %v5668_v29  ;;  %v1087_v17 = vor.u32 %v1086_v46, %v1085_v9  ;;  %v1259_v33 = vsel %vm1253_vm6, %v1256_v13, %v1258_v18 }
 0x142   :  { %7503 = vst [vmem:[#allocation20_spill] sm:$0xff] %v5742_v26  ;;  %vm598_vm7 = vcmp.lt.s32.totalorder %v5119_v10, 0  ;;  %vm494_vm8 = vcmp.lt.s32.totalorder %v5134_v23, 0  ;;  %v7504_v7 = vand.u32 2147483647, %v5505_v61  ;;  %v7505_v27 = vcvt.s32.f32 %v5489_v21  ;;  %v2159_v21 = vld [vmem:[%s7416_s5 + $0xd8] sm:$0xff] }
 0x143   :  { %v782_v47 = vcvt.s32.f32 %v5579_v63  ;;  %v988_v36 = vand.u32 2147483647, %v5681_v1  ;;  %v1328_v0 = vshrl.u32 %v1327_v60, 23  ;;  %v886_v29 = vcvt.s32.f32 %v5664_v32  ;;  %v2140_v32 = vld [vmem:[%s7416_s5 + $0x40] sm:$0xff]  ;;  %2301 = vperm.xlu1 %4643, %v2159_v21  }
 0x144   :  { %v575_v62 = vmul.f32 %v7505_v27, %v7504_v7  ;;  %v1092_v35 = vand.u32 2147483647, %v1091_v12  ;;  %v1278_v41 = vadd.s32 1, %v5729_v30  ;;  %v1431_v40 = vand.u32 2139095040, %v5742_v26  ;;  %2206 = vperm.xlu0 %4644, %v2140_v32   ;;  %v2158_v12 = vld [vmem:[%s7416_s5 + $0xd0] sm:$0xff]  ;;  %v2161_v7 = vld [vmem:[%s7416_s5 + $0xe8] sm:$0xff] }
 0x145   :  { %v990_v61 = vcvt.s32.f32 %v5671_v37  ;;  %v1182_v63 = vsub.s32 0, %v5735_v6  ;;  %v1275_v1 = vmul.u32 %v5684_v11, %v1259_v33  ;;  %vm1277_vm9 = vc.u32 %v5739_v15, %v5728_v20  ;;  %v2145_v32 = vld [vmem:[%s7416_s5 + $0x68] sm:$0xff] }
 0x146   :  { %v783_v60 = vmul.f32 %v782_v47, %v780_v19  ;;  %v887_v58 = vmul.f32 %v886_v29, %v884_v44  ;;  %v1094_v57 = vcvt.s32.f32 %v1087_v17  ;;  %v1279_v28 = vsel %vm1277_vm9, %v1278_v41, %v5729_v30 }
 0x147   :  { %v991_v55 = vmul.f32 %v990_v61, %v988_v36  ;;  %v1280_v46 = vadd.s32 %v1279_v28, %v1275_v1  ;;  %v3988_v56 = vadd.s32 4294967169, %v1328_v0  ;;  %v1432_v37 = vshrl.u32 %v1431_v40, 23  ;;  %2221 = vperm.xlu1 %4643, %v2143_v14  }
 0x148   :  { %v680_v39 = vxor.u32 2147483648, %v5500_v49  ;;  %v5777_v11 = vsub.s32 32, %v5503_v3  ;;  %v576_v8 = vxor.u32 2147483648, %v575_v62  ;;  %v1095_v51 = vmul.f32 %v1094_v57, %v1092_v35  ;;  %2296 = vperm.xlu0 %4644, %v2158_v12   ;;  %v2163_v12 = vld [vmem:[%s7416_s5 + $0xf8] sm:$0xff] }
 0x149   :  { %v3981_v9 = vmin.u32 %v1182_v63, %v5735_v6  ;;  %v1281_v13 = vadd.s32 536870912, %v1280_v46  ;;  %v7471_v18 = vand.u32 2147483647, %v5742_v26  ;;  %v3992_v54 = vadd.s32 4294967169, %v1432_v37 }
 0x14a   :  { %vm702_vm10 = vcmp.lt.s32.totalorder %v5211_v2, 0  ;;  %v784_v34 = vxor.u32 2147483648, %v783_v60  ;;  %vm806_vm11 = vcmp.lt.s32.totalorder %v5290_v38, 0  ;;  %v888_v30 = vxor.u32 2147483648, %v887_v58 }
 0x14b   :  { %vm910_vm12 = vcmp.lt.s32.totalorder %v5359_v31, 0  ;;  %v992_v59 = vxor.u32 2147483648, %v991_v55  ;;  %v5790_v52 = vshrl.u32 %v1281_v13, 30  ;;  %v1334_v5 = vadd.s32 1, %v3988_v56  ;;  %2311 = vperm.xlu1 %4643, %v2161_v7  }
 0x14c   :  { %v5795_v19 = vsel %vm598_vm7, %v680_v39, %v5500_v49  ;;  %v5799_v44 = vsel %vm494_vm8, %v576_v8, %v575_v62  ;;  %v1096_v17 = vxor.u32 2147483648, %v1095_v51  ;;  %v1438_v33 = vadd.s32 1, %v3992_v54  ;;  %v2142_v62 = vld [vmem:[%s7416_s5 + $0x50] sm:$0xff] }
 0x14d   :  { %vm1014_vm13 = vcmp.lt.s32.totalorder %v5438_v45, 0  ;;  %v1184_v27 = vclz %v3981_v9  ;;  %v1283_v47 = vshll.u32 %v5790_v52, 30  ;;  %v1435_v49 = vand.u32 8388607, %v7471_v18  ;;  %2216 = vperm.xlu0 %4644, %v2142_v62  }
 0x14e   :  { %v5813_v36 = vsel %vm702_vm10, %v784_v34, %v783_v60  ;;  %v5817_v0 = vsel %vm806_vm11, %v888_v30, %v887_v58  ;;  %vm1439_vm14 = vcmp.gt.s32.totalorder %v1438_v33, 0  ;;  %v302_v29 = vshrl.u32 %v7495_v50, %v5777_v11 }
 0x14f   :  { %v5823_v35 = vsel %vm910_vm12, %v992_v59, %v991_v55  ;;  %v5825_v41 = vsub.s32 %v1280_v46, %v1283_v47  ;;  %vm1335_vm15 = vcmp.gt.s32.totalorder %v1334_v5, 0  ;;  %v1440_v40 = vsel %vm1439_vm14, %v1438_v33, 0  ;;  %2231 = vperm.xlu1 %4643, %v2145_v32  }
 0x150   :  { %v5829_v21 = vsel %vm1014_vm13, %v1096_v17, %v1095_v51  ;;  %v5833_v61 = vadd.s32 %v5650_v43, %v5645_v48  ;;  %v1442_v63 = vand.u32 31, %v1440_v40  ;;  %v301_v1 = vshll.u32 %v7490_v24, %v5503_v3  ;;  %v2160_v48 = vld [vmem:[%s7416_s5 + $0xe0] sm:$0xff] }
 0x151   :  { %v5840_v60 = vadd.s32 4294967294, %v1184_v27  ;;  %v1286_v58 = vsub.s32 0, %v5825_v41  ;;  %v1436_v57 = vor.u32 8388608, %v1435_v49  ;;  %v5845_v28 = vshrl.u32 %v7490_v24, %v5777_v11  ;;  %2306 = vperm.xlu0 %4644, %v2160_v48   ;;  %v2144_v17 = vld [vmem:[%s7416_s5 + $0x60] sm:$0xff] }
 0x152   :  { %v5850_v43 = vsel %vm1335_vm15, %v1334_v5, 0  ;;  %v1443_v55 = vsub.s32 32, %v1442_v63  ;;  %v5852_v46 = vor.u32 %v302_v29, %v301_v1  ;;  %v304_v56 = vshll.u32 %v7495_v50, %v5503_v3 }
 0x153   :  { %v1441_v37 = vshrl.u32 %v1440_v40, 5  ;;  %v1445_v39 = vshll.u32 %v7490_v24, %v1442_v63  ;;  %v1448_v8 = vshll.u32 %v7495_v50, %v1442_v63  ;;  %v1451_v51 = vshll.u32 %v7496_v4, %v1442_v63  ;;  %2321 = vperm.xlu1 %4643, %v2163_v12  }
 0x154   :  { %v3985_v14 = vmin.u32 %v1286_v58, %v5825_v41  ;;  %v1446_v9 = vshrl.u32 %v7495_v50, %v1443_v55  ;;  %v1449_v13 = vshrl.u32 %v7496_v4, %v1443_v55  ;;  %v1452_v54 = vshrl.u32 %v7489_v25, %v1443_v55 }
 0x155   :  { %vm3983_vm0 = vcmp.lt.s32.totalorder %v5840_v60, 0  ;;  %v1454_v34 = vshll.u32 %v7489_v25, %v1442_v63  ;;  %v1455_v30 = vshrl.u32 %v7491_v22, %v1443_v55  ;;  %v1458_v59 = vshrl.u32 %v7493_v53, %v1443_v55  ;;  %2226 = vperm.xlu0 %4644, %v2144_v17   ;;  %v2742_v17 = vld [vmem:[%s7418_s7 + $0x88] sm:$0xff] }
 0x156   :  { %v5870_v5 = vshll.u32 %v1436_v57, 8  ;;  %v1447_v33 = vor.u32 %v1446_v9, %v1445_v39  ;;  %v1450_v7 = vor.u32 %v1449_v13, %v1448_v8  ;;  %v1453_v27 = vor.u32 %v1452_v54, %v1451_v51  ;;  %v2162_v39 = vld [vmem:[%s7416_s5 + $0xf0] sm:$0xff] }
 0x157   :  { %v1457_v47 = vshll.u32 %v7491_v22, %v1442_v63  ;;  %v1456_v49 = vor.u32 %v1455_v30, %v1454_v34  ;;  %v305_v62 = vshrl.u32 %v7496_v4, %v5777_v11  ;;  %v307_v29 = vshll.u32 %v7496_v4, %v5503_v3  ;;  %v2147_v63 = vld [vmem:[%s7416_s5 + $0x78] sm:$0xff] }
 0x158   :  { %v308_v40 = vshrl.u32 %v7489_v25, %v5777_v11  ;;  %v1288_v1 = vclz %v3985_v14  ;;  %v1444_v32 = vshrl.u32 %v7490_v24, %v1443_v55  ;;  %vm1463_vm1 = vcmp.lt.s32.totalorder %v1441_v37, 4  ;;  %2241 = vperm.xlu1 %4643, %v2147_v63  }
 0x159   :  { %v1459_v58 = vor.u32 %v1458_v59, %v1457_v47  ;;  %vm1460_vm2 = vcmp.lt.s32.totalorder %v1441_v37, 1  ;;  %vm1462_vm3 = vcmp.lt.s32.totalorder %v1441_v37, 3  ;;  %v1465_v57 = vsel %vm1463_vm1, %v1453_v27, 2102212464  ;;  %2316 = vperm.xlu0 %4644, %v2162_v39  }
 0x15a   :  { %v311_v48 = vshrl.u32 %v7491_v22, %v5777_v11  ;;  %v1464_v8 = vsel %vm1460_vm2, %v1444_v32, %v1447_v33  ;;  %v1466_v55 = vsel %vm1462_vm3, %v1450_v7, %v1465_v57  ;;  %v1468_v51 = vsel %vm1460_vm2, %v1447_v33, %v1450_v7 }
 0x15b   :  { %v1469_v14 = vsel %vm1463_vm1, %v1456_v49, 920167782  ;;  %v1472_v9 = vsel %vm1460_vm2, %v1450_v7, %v1453_v27  ;;  %v306_v13 = vor.u32 %v305_v62, %v304_v56  ;;  %v309_v54 = vor.u32 %v308_v40, %v307_v29  ;;  %v2146_v62 = vld [vmem:[%s7416_s5 + $0x70] sm:$0xff] }
 0x15c   :  { %v310_v12 = vshll.u32 %v7489_v25, %v5503_v3  ;;  %v3986_v34 = vadd.s32 4294967294, %v1288_v1  ;;  %vm1461_vm4 = vcmp.lt.s32.totalorder %v1441_v37, 2  ;;  %v1470_v30 = vsel %vm1462_vm3, %v1453_v27, %v1469_v14  ;;  %2844 = vperm.xlu1 %4643, %v2742_v17  }
 0x15d   :  { %v1473_v59 = vsel %vm1463_vm1, %v1459_v58, 1326507024  ;;  %v1467_v33 = vsel %vm1461_vm4, %v1464_v8, %v1466_v55  ;;  %v1471_v47 = vsel %vm1461_vm4, %v1468_v51, %v1470_v30  ;;  %v314_v1 = vshrl.u32 %v7493_v53, %v5777_v11  ;;  %2236 = vperm.xlu0 %4644, %v2146_v62   ;;  %v7508_v8 = vld [vmem:[#allocation15_spill] sm:$0xff] }
 0x15e   :  { %v1474_v56 = vsel %vm1462_vm3, %v1456_v49, %v1473_v59  ;;  %v312_v7 = vor.u32 %v311_v48, %v310_v12  ;;  %v5906_v40 = vmul.u32.u64.low %v5870_v5, %v1471_v47  ;;  %v5907_v27 = vmul.u32.u64.high %v5870_v5, %v1471_v47, %v5906_v40  ;;  %v2726_v48 = vld [vmem:[%s7418_s7 + $0x8] sm:$0xff]  ;;  %v2744_v30 = vld [vmem:[%s7418_s7 + $0x98] sm:$0xff] }
 0x15f   :  { %v1475_v29 = vsel %vm1461_vm4, %v1472_v9, %v1474_v56  ;;  %v5913_v32 = vshrl.u32 %v5850_v43, 5  ;;  %v313_v58 = vshll.u32 %v7491_v22, %v5503_v3  ;;  %v5924_v63 = vsel %vm3983_vm0, 0, %v5840_v60  ;;  %v7509_v56 = vld [vmem:[#allocation12_spill] sm:$0xff] }
 0x160   :  { %7506 = vst [vmem:[#allocation21_spill] sm:$0xff] %v5906_v40  ;;  %v5916_v37 = vmul.u32.u64.low %v5870_v5, %v1475_v29  ;;  %v5917_v49 = vmul.u32.u64.high %v5870_v5, %v1475_v29, %v5916_v37  ;;  %v5928_v57 = vadd.s32 %v5728_v20, %v5739_v15  ;;  %vm3987_vm5 = vcmp.lt.s32.totalorder %v3986_v34, 0  ;;  %v2741_v20 = vld [vmem:[%s7418_s7 + $0x80] sm:$0xff]  ;;  %2764 = vperm.xlu1 %4643, %v2726_v48  }
 0x161   :  { %v5931_v11 = vand.u32 31, %v5850_v43  ;;  %v1483_v3 = vmul.u32 %v5870_v5, %v1467_v33  ;;  %v315_v39 = vor.u32 %v314_v1, %v313_v58  ;;  %vm316_vm6 = vcmp.lt.s32.totalorder %v7508_v8, 1  ;;  %2839 = vperm.xlu0 %4644, %v2741_v20   ;;  %v2725_v33 = vld [vmem:[%s7418_s7] sm:$0xff] }
 0x162   :  { %7507 = vst [vmem:[#allocation22_spill] sm:$0xff] %v5917_v49  ;;  %vm319_vm9 = vcmp.lt.s32.totalorder %v7508_v8, 4  ;;  %v1486_v15 = vadd.s32 1, %v5907_v27  ;;  %v324_v43 = vsel %vm316_vm6, %v5852_v46, %v306_v13  ;;  %vm1485_vm14 = vc.u32 %v5917_v49, %v5906_v40  ;;  %v2730_v49 = vld [vmem:[%s7418_s7 + $0x28] sm:$0xff] }
 0x163   :  { %v321_v60 = vsel %vm319_vm9, %v309_v54, 2102212464  ;;  %v325_v55 = vsel %vm319_vm9, %v312_v7, 920167782  ;;  %vm317_vm15 = vcmp.lt.s32.totalorder %v7508_v8, 2  ;;  %vm318_vm0 = vcmp.lt.s32.totalorder %v7508_v8, 3 }
 0x164   :  { %v320_v5 = vsel %vm316_vm6, %v5845_v28, %v5852_v46  ;;  %v1487_v51 = vsel %vm1485_vm14, %v1486_v15, %v5907_v27  ;;  %v322_v14 = vsel %vm318_vm0, %v306_v13, %v321_v60  ;;  %v326_v9 = vsel %vm318_vm0, %v309_v54, %v325_v55  ;;  %2854 = vperm.xlu1 %4643, %v2744_v30   ;;  %v7512_v60 = vld [vmem:[#allocation5_spill] sm:$0xff]  ;;  %v2743_v55 = vld [vmem:[%s7418_s7 + $0x90] sm:$0xff] }
 0x165   :  { %v328_v12 = vsel %vm316_vm6, %v306_v13, %v309_v54  ;;  %v5963_v59 = vsub.s32 32, %v5931_v11  ;;  %v1488_v17 = vadd.s32 %v1487_v51, %v1483_v3  ;;  %v327_v28 = vsel %vm317_vm15, %v324_v43, %v326_v9  ;;  %2759 = vperm.xlu0 %4644, %v2725_v33  }
 0x166   :  { %v329_v46 = vsel %vm319_vm9, %v315_v39, 1326507024  ;;  %v1188_v13 = vsub.s32 32, %v5924_v63  ;;  %v1192_v54 = vsub.s32 4294967266, %v5924_v63  ;;  %v7510_v62 = vor.u32 8388608, %v7509_v56 }
 0x167   :  { %v330_v47 = vsel %vm318_vm0, %v312_v7, %v329_v46  ;;  %v5979_v27 = vsel %vm3987_vm5, 0, %v3986_v34  ;;  %v1489_v1 = vadd.s32 536870912, %v1488_v17  ;;  %v323_v37 = vsel %vm317_vm15, %v320_v5, %v322_v14  ;;  %v2728_v34 = vld [vmem:[%s7418_s7 + $0x18] sm:$0xff] }
 0x168   :  { %v332_v29 = vshll.u32 %v7510_v62, 8  ;;  %v331_v58 = vsel %vm317_vm15, %v328_v12, %v330_v47  ;;  %v5997_v7 = vshll.u32 %v7489_v25, %v5931_v11  ;;  %v6001_v8 = vshll.u32 %v7491_v22, %v5931_v11  ;;  %2774 = vperm.xlu1 %4643, %v2728_v34   ;;  %v7514_v47 = vld [vmem:[#allocation9_spill] sm:$0xff] }
 0x169   :  { %v6003_v15 = vshrl.u32 %v1489_v1, 30  ;;  %v7472_v43 = vand.u32 2147483647, %v7512_v60  ;;  %v1189_v5 = vshll.u32 %v5735_v6, %v5924_v63  ;;  %v1190_v51 = vshrl.u32 %v5833_v61, %v1188_v13  ;;  %v7513_v61 = vld [vmem:[#allocation11_spill] sm:$0xff]  ;;  %2849 = vperm.xlu0 %4644, %v2743_v55   ;;  %v2746_v13 = vld [vmem:[%s7418_s7 + $0xa8] sm:$0xff]  ;;  %v2727_v1 = vld [vmem:[%s7418_s7 + $0x10] sm:$0xff] }
 0x16a   :  { %v5985_v48 = vmul.u32.u64.low %v332_v29, %v331_v58  ;;  %v5986_v3 = vmul.u32.u64.high %v332_v29, %v331_v58, %v5985_v48  ;;  %v5988_v39 = vmul.u32.u64.low %v332_v29, %v327_v28  ;;  %v5989_v20 = vmul.u32.u64.high %v332_v29, %v327_v28, %v5988_v39 }
 0x16b   :  { %7511 = vst [vmem:[#allocation15_spill] sm:$0xff] %v6003_v15  ;;  %v6014_v14 = vshrl.u32 %v7491_v22, %v5963_v59  ;;  %v6018_v9 = vshrl.u32 %v7493_v53, %v5963_v59  ;;  %v1193_v12 = vadd.s32 127, %v1192_v54  ;;  %v1296_v30 = vsub.s32 4294967266, %v5979_v27 }
 0x16c   :  { %v1491_v28 = vshll.u32 %v6003_v15, 30  ;;  %v339_v46 = vmul.u32 %v332_v29, %v323_v37  ;;  %vm341_vm1 = vc.u32 %v5986_v3, %v5988_v39  ;;  %v342_v6 = vadd.s32 1, %v5989_v20  ;;  %2864 = vperm.xlu1 %4643, %v2746_v13  }
 0x16d   :  { %v406_v63 = vshrl.u32 %v7495_v50, %v7513_v61  ;;  %v409_v33 = vshrl.u32 %v7496_v4, %v7513_v61  ;;  %v395_v54 = vand.u32 8388607, %v7472_v43  ;;  %v405_v56 = vshll.u32 %v7490_v24, %v7514_v47  ;;  %2769 = vperm.xlu0 %4644, %v2727_v1   ;;  %v2729_v1 = vld [vmem:[%s7418_s7 + $0x20] sm:$0xff] }
 0x16e   :  { %v408_v62 = vshll.u32 %v7495_v50, %v7514_v47  ;;  %v412_v29 = vshrl.u32 %v7489_v25, %v7513_v61  ;;  %v343_v37 = vsel %vm341_vm1, %v342_v6, %v5989_v20  ;;  %v411_v58 = vshll.u32 %v7496_v4, %v7514_v47 }
 0x16f   :  { %v414_v48 = vshll.u32 %v7489_v25, %v7514_v47  ;;  %v415_v34 = vshrl.u32 %v7491_v22, %v7513_v61  ;;  %v6050_v55 = vsub.s32 %v1488_v17, %v1491_v28  ;;  %v344_v18 = vadd.s32 %v343_v37, %v339_v46  ;;  %v7515_v46 = vld [vmem:[#allocation8_spill] sm:$0xff] }
 0x170   :  { %v417_v43 = vshll.u32 %v7491_v22, %v7514_v47  ;;  %v418_v15 = vshrl.u32 %v7493_v53, %v7513_v61  ;;  %v407_v20 = vor.u32 %v406_v63, %v405_v56  ;;  %v410_v6 = vor.u32 %v409_v33, %v408_v62  ;;  %v2745_v22 = vld [vmem:[%s7418_s7 + $0xa0] sm:$0xff]  ;;  %2784 = vperm.xlu1 %4643, %v2730_v49  }
 0x171   :  { %v413_v26 = vor.u32 %v412_v29, %v411_v58  ;;  %v416_v40 = vor.u32 %v415_v34, %v414_v48  ;;  %v1194_v25 = vshll.u32 %v1193_v12, 23  ;;  %v345_v17 = vadd.s32 536870912, %v344_v18  ;;  %2859 = vperm.xlu0 %4644, %v2745_v22   ;;  %v7516_v22 = vld [vmem:[#allocation7_spill] sm:$0xff] }
 0x172   :  { %v419_v28 = vor.u32 %v418_v15, %v417_v43  ;;  %vm423_vm2 = vcmp.lt.s32.totalorder %v7515_v46, 4  ;;  %v1292_v53 = vsub.s32 32, %v5979_v27  ;;  %v1297_v63 = vadd.s32 127, %v1296_v30 }
 0x173   :  { %v396_v33 = vor.u32 8388608, %v395_v54  ;;  %v429_v13 = vsel %vm423_vm2, %v416_v40, 920167782  ;;  %v1494_v47 = vsub.s32 0, %v6050_v55  ;;  %v6067_v56 = vshrl.u32 %v345_v17, 30  ;;  %v2748_v54 = vld [vmem:[%s7418_s7 + $0xb8] sm:$0xff] }
 0x174   :  { %vm420_vm3 = vcmp.lt.s32.totalorder %v7515_v46, 1  ;;  %vm422_vm4 = vcmp.lt.s32.totalorder %v7515_v46, 3  ;;  %v433_v30 = vsel %vm423_vm2, %v419_v28, 1326507024  ;;  %v1191_v62 = vor.u32 %v1190_v51, %v1189_v5  ;;  %2874 = vperm.xlu1 %4643, %v2748_v54  }
 0x175   :  { %v428_v15 = vsel %vm420_vm3, %v407_v20, %v410_v6  ;;  %v430_v43 = vsel %vm422_vm4, %v413_v26, %v429_v13  ;;  %v432_v12 = vsel %vm420_vm3, %v410_v6, %v413_v26  ;;  %v347_v49 = vshll.u32 %v6067_v56, 30  ;;  %2779 = vperm.xlu0 %4644, %v2729_v1   ;;  %v2731_v1 = vld [vmem:[%s7418_s7 + $0x30] sm:$0xff] }
 0x176   :  { %vm421_vm5 = vcmp.lt.s32.totalorder %v7515_v46, 2  ;;  %v434_v29 = vsel %vm422_vm4, %v416_v40, %v433_v30  ;;  %v1195_v37 = vor.u32 4788187, %v1194_v25  ;;  %v425_v58 = vsel %vm423_vm2, %v413_v26, 2102212464 }
 0x177   :  { %v435_v48 = vsel %vm421_vm5, %v432_v12, %v434_v29  ;;  %v436_v34 = vshll.u32 %v396_v33, 8  ;;  %v1294_v5 = vshrl.u32 %v5928_v57, %v1292_v53  ;;  %v6094_v51 = vsub.s32 %v344_v18, %v347_v49  ;;  %v2732_v18 = vld [vmem:[%s7418_s7 + $0x38] sm:$0xff]  ;;  %v2747_v33 = vld [vmem:[%s7418_s7 + $0xb0] sm:$0xff] }
 0x178   :  { %v404_v17 = vshrl.u32 %v7490_v24, %v7513_v61  ;;  %v431_v40 = vsel %vm421_vm5, %v428_v15, %v430_v43  ;;  %v1298_v28 = vshll.u32 %v1297_v63, 23  ;;  %v3993_v25 = vmin.u32 %v1494_v47, %v6050_v55  ;;  %2794 = vperm.xlu1 %4643, %v2732_v18   ;;  %v7524_v18 = vld [vmem:[#allocation17_spill] sm:$0xff] }
 0x179   :  { %vm286_vm6 = vcmp.lt.s32.totalorder %v7516_v22, 0  ;;  %v6102_v26 = vmul.u32.u64.low %v436_v34, %v435_v48  ;;  %v6103_v13 = vmul.u32.u64.high %v436_v34, %v435_v48, %v6102_v26  ;;  %v1293_v57 = vshll.u32 %v5825_v41, %v5979_v27  ;;  %2869 = vperm.xlu0 %4644, %v2747_v33   ;;  %v7523_v48 = vld [vmem:[#allocation10_spill] sm:$0xff] }
 0x17a   :  { %v350_v61 = vsub.s32 0, %v6094_v51  ;;  %v424_v53 = vsel %vm420_vm3, %v404_v17, %v407_v20  ;;  %v426_v63 = vsel %vm422_vm4, %v410_v6, %v425_v58  ;;  %v6120_v47 = vor.u32 %v6014_v14, %v5997_v7  ;;  %v2750_v14 = vld [vmem:[%s7418_s7 + $0xc8] sm:$0xff] }
 0x17b   :  { %vm1359_vm9 = vcmp.lt.s32.totalorder %v5913_v32, 4  ;;  %v6123_v15 = vmul.u32.u64.low %v436_v34, %v431_v40  ;;  %v6124_v41 = vmul.u32.u64.high %v436_v34, %v431_v40, %v6123_v15  ;;  %v1196_v27 = vand.u32 2147483647, %v1195_v37 }
 0x17c   :  { %v1295_v43 = vor.u32 %v1294_v5, %v1293_v57  ;;  %v1355_v20 = vor.u32 %v6018_v9, %v6001_v8  ;;  %v3949_v6 = vmin.u32 %v350_v61, %v6094_v51  ;;  %v1198_v12 = vcvt.s32.f32 %v1191_v62  ;;  %2884 = vperm.xlu1 %4643, %v2750_v14  }
 0x17d   :  { %v1299_v30 = vor.u32 4788187, %v1298_v28  ;;  %v1496_v54 = vclz %v3993_v25  ;;  %v427_v7 = vsel %vm421_vm5, %v424_v53, %v426_v63  ;;  %v7517_v49 = vand.u32 2147483647, %v7516_v22  ;;  %2789 = vperm.xlu0 %4644, %v2731_v1   ;;  %v2752_v1 = vld [vmem:[%s7418_s7 + $0xd8] sm:$0xff] }
 0x17e   :  { %v352_v8 = vclz %v3949_v6  ;;  %v370_v9 = vsub.s32 4, %v6067_v56  ;;  %vm445_vm15 = vc.u32 %v6103_v13, %v6123_v15  ;;  %v7520_v46 = vand.u32 2147483647, %v5134_v23 }
 0x17f   :  { %vm6137_vm14 = vcmp.le.f32.partialorder %v7517_v49, 0.7853982  ;;  %v6156_v37 = vsel %vm1359_vm9, %v6120_v47, 920167782  ;;  %v446_v58 = vadd.s32 1, %v6124_v41  ;;  %v578_v5 = vsub.s32 4, %v7523_v48 }
 0x180   :  { %vm6146_vm0 = vcmp.le.f32.partialorder %v7520_v46, 0.7853982  ;;  %v1199_v40 = vmul.f32 %v1198_v12, %v1196_v27  ;;  %v1302_v28 = vcvt.s32.f32 %v1295_v43  ;;  %v3950_v25 = vadd.s32 4294967294, %v352_v8  ;;  %v6177_v27 = vpop.permute.xlu1 %1684 }
 0x181   :  { %v580_v17 = vsel %vm6146_vm0, %v5134_v23, %v5799_v44  ;;  %v443_v26 = vmul.u32 %v436_v34, %v427_v7  ;;  %vm1118_vm1 = vcmp.lt.s32.totalorder %v7524_v18, 0  ;;  %v1300_v57 = vand.u32 2147483647, %v1299_v30  ;;  %v2734_v44 = vld [vmem:[%s7418_s7 + $0x48] sm:$0xff] }
 0x182   :  { %v3994_v61 = vadd.s32 4294967294, %v1496_v54  ;;  %v340_v53 = vadd.s32 %v5988_v39, %v5986_v3  ;;  %v447_v63 = vsel %vm445_vm15, %v446_v58, %v6124_v41  ;;  %vm3951_vm2 = vcmp.lt.s32.totalorder %v3950_v25, 0  ;;  %v2749_v3 = vld [vmem:[%s7418_s7 + $0xc0] sm:$0xff]  ;;  %v7529_v54 = vld [vmem:[#allocation6_spill] sm:$0xff]  ;;  %2804 = vperm.xlu1 %4643, %v2734_v44  }
 0x183   :  { %v371_v34 = vsel %vm286_vm6, %v370_v9, %v6067_v56  ;;  %v448_v33 = vadd.s32 %v447_v63, %v443_v26  ;;  %4807 = vcosq.f32 %v580_v17  ;;  %v355_v39 = vsel %vm3951_vm2, 0, %v3950_v25  ;;  %v7528_v56 = vld [vmem:[#allocation18_spill] sm:$0xff]  ;;  %2879 = vperm.xlu0 %4644, %v2749_v3  }
 0x184   :  { %v579_v41 = vsel %vm494_vm8, %v578_v5, %v7523_v48  ;;  %4809 = vsinq.f32 %v580_v17  ;;  %v7525_v43 = vand.u32 2147483647, %v5119_v10  ;;  %vm1222_vm4 = vcmp.lt.s32.totalorder %v7528_v56, 0  ;;  %v2733_v17 = vld [vmem:[%s7418_s7 + $0x40] sm:$0xff] }
 0x185   :  { %v356_v12 = vsub.s32 32, %v355_v39  ;;  %v360_v30 = vsub.s32 4294967266, %v355_v39  ;;  %v682_v7 = vsub.s32 4, %v7529_v54  ;;  %v1200_v49 = vxor.u32 2147483648, %v1199_v40 }
 0x186   :  { %vm6187_vm3 = vcmp.le.f32.partialorder %v7525_v43, 0.7853982  ;;  %v1303_v8 = vmul.f32 %v1302_v28, %v1300_v57  ;;  %v6199_v9 = vsel %vm1359_vm9, %v1355_v20, 1326507024  ;;  %v449_v46 = vadd.s32 536870912, %v448_v33  ;;  %v6215_v57 = vpop.permute.xlu1 %1604  ;;  %2894 = vperm.xlu1 %4643, %v2752_v1   ;;  %v2751_v43 = vld [vmem:[%s7418_s7 + $0xd0] sm:$0xff] }
 0x187   :  { %v684_v14 = vsel %vm6187_vm3, %v5119_v10, %v5795_v19  ;;  %v357_v58 = vshll.u32 %v6094_v51, %v355_v39  ;;  %v358_v48 = vshrl.u32 %v340_v53, %v356_v12  ;;  %v361_v5 = vadd.s32 127, %v360_v30  ;;  %2799 = vperm.xlu0 %4644, %v2733_v17   ;;  %v7533_v1 = vld [vmem:[#allocation13_spill] sm:$0xff] }
 0x188   :  { %v581_v19 = vsel %vm6146_vm0, 0, %v579_v41  ;;  %vm3995_vm8 = vcmp.lt.s32.totalorder %v3994_v61, 0  ;;  %v373_v20 = vsel %vm6137_vm14, 0, %v371_v34  ;;  %v450_v28 = vshrl.u32 %v449_v46, 30  ;;  %v2736_v34 = vld [vmem:[%s7418_s7 + $0x58] sm:$0xff]  ;;  %v2754_v17 = vld [vmem:[%s7418_s7 + $0xe8] sm:$0xff] }
 0x189   :  { %4811 = vcosq.f32 %v684_v14  ;;  %v359_v25 = vor.u32 %v358_v48, %v357_v58  ;;  %v362_v26 = vshll.u32 %v361_v5, 23  ;;  %v683_v51 = vsel %vm598_vm7, %v682_v7, %v7529_v54 }
 0x18a   :  { %4813 = vsinq.f32 %v684_v14  ;;  %v1304_v62 = vxor.u32 2147483648, %v1303_v8  ;;  %v451_v53 = vshll.u32 %v450_v28, 30  ;;  %v474_v63 = vsub.s32 4, %v450_v28  ;;  %2814 = vperm.xlu1 %4643, %v2736_v34  }
 0x18b   :  { %v585_v44 = vadd.s32 3, %v581_v19  ;;  %v6222_v3 = vsel %vm1118_vm1, %v1200_v49, %v1199_v40  ;;  %v6225_v39 = vsel %vm3995_vm8, 0, %v3994_v61  ;;  %v363_v41 = vor.u32 4788187, %v362_v26  ;;  %2889 = vperm.xlu0 %4644, %v2751_v43  }
 0x18c   :  { %vm390_vm7 = vcmp.lt.s32.totalorder %v7512_v60, 0  ;;  %v377_v12 = vadd.s32 3, %v373_v20  ;;  %v6231_v30 = vsub.s32 %v448_v33, %v451_v53  ;;  %v685_v54 = vsel %vm6187_vm3, 0, %v683_v51  ;;  %v6265_v51 = vpop.permute.xlu1 %1609 }
 0x18d   :  { %v7530_v7 = vand.u32 2147483647, %v5211_v2  ;;  %v4808_v61 = vpop.eup %4807  ;;  %v364_v14 = vand.u32 2147483647, %v363_v41  ;;  %v366_v49 = vcvt.s32.f32 %v359_v25  ;;  %v475_v46 = vsel %vm390_vm7, %v474_v63, %v450_v28 }
 0x18e   :  { %v786_v58 = vsub.s32 4, %v7533_v1  ;;  %v4810_v33 = vpop.eup %4809  ;;  %v6246_v6 = vsel %vm1222_vm4, %v1304_v62, %v1303_v8  ;;  %v454_v48 = vsub.s32 0, %v6231_v30  ;;  %v6249_v5 = vand.u32 3, %v585_v44  ;;  %2904 = vperm.xlu1 %4643, %v2754_v17  }
 0x18f   :  { %vm6237_vm5 = vcmp.le.f32.partialorder %v7530_v7, 0.7853982  ;;  %v367_v28 = vmul.f32 %v366_v49, %v364_v14  ;;  %v7534_v8 = vand.u32 2147483647, %v7512_v60  ;;  %v689_v26 = vadd.s32 3, %v685_v54 }
 0x190   :  { %v788_v19 = vsel %vm6237_vm5, %v5211_v2, %v5813_v36  ;;  %v2735_v36 = vld [vmem:[%s7418_s7 + $0x50] sm:$0xff]  ;;  %v6270_v62 = vand.u32 3, %v377_v12  ;;  %v444_v53 = vadd.s32 %v6123_v15, %v6103_v13  ;;  %v3953_v63 = vmin.u32 %v454_v48, %v6231_v30  ;;  %v6283_v15 = vpop.permute.xlu0 %1689  ;;  %v2738_v12 = vld [vmem:[%s7418_s7 + $0x68] sm:$0xff]  ;;  %v6308_v20 = vpop.permute.xlu1 %1699 }
 0x191   :  { %vm6261_vm15 = vcmp.le.f32.partialorder %v7534_v8, 0.7853982  ;;  %v368_v34 = vxor.u32 2147483648, %v367_v28  ;;  %v592_v41 = vxor.u32 2147483648, %v4808_v61  ;;  %v787_v43 = vsel %vm702_vm10, %v786_v58, %v7533_v1  ;;  %7537 = vst [vmem:[#allocation12_spill] sm:$0xff] %v6283_v15  ;;  %2809 = vperm.xlu0 %4644, %v2735_v36   ;;  %v2753_v58 = vld [vmem:[%s7418_s7 + $0xe0] sm:$0xff] }
 0x192   :  { %v477_v44 = vsel %vm6261_vm15, 0, %v475_v46  ;;  %4815 = vcosq.f32 %v788_v19  ;;  %v456_v7 = vclz %v3953_v63  ;;  %vm587_vm0 = vcmp.lt.s32.totalorder %v6249_v5, 2  ;;  %2824 = vperm.xlu1 %4643, %v2738_v12  }
 0x193   :  { %v4812_v54 = vpop.eup %4811  ;;  %vm588_vm2 = vcmp.eq.s32.totalorder %v6249_v5, 0  ;;  %v589_v13 = vxor.u32 2147483648, %v4810_v33  ;;  %vm591_vm3 = vcmp.eq.s32.totalorder %v6249_v5, 2  ;;  %v369_v49 = vsel %vm286_vm6, %v368_v34, %v367_v28 }
 0x194   :  { %v4814_v14 = vpop.eup %4813  ;;  %v6290_v46 = vadd.s32 3, %v477_v44  ;;  %v690_v1 = vand.u32 3, %v689_v26  ;;  %4817 = vsinq.f32 %v788_v19  ;;  %v372_v48 = vsel %vm6137_vm14, %v7516_v22, %v369_v49  ;;  %v7541_v44 = vld [vmem:[#allocation14_spill] sm:$0xff]  ;;  %v6322_v49 = vpop.permute.xlu0 %1694 }
 0x195   :  { %v3954_v17 = vadd.s32 4294967294, %v456_v7  ;;  %v696_v8 = vxor.u32 2147483648, %v4812_v54  ;;  %v789_v36 = vsel %vm6237_vm5, 0, %v787_v43  ;;  %vm584_vm10 = vweird.f32 %v5134_v23  ;;  %2899 = vperm.xlu0 %4644, %v2753_v58   ;;  %v2737_v7 = vld [vmem:[%s7418_s7 + $0x60] sm:$0xff] }
 0x196   :  { %v593_v28 = vsel %vm591_vm3, %v592_v41, %v4810_v33  ;;  %v693_v63 = vxor.u32 2147483648, %v4814_v14  ;;  %v7538_v26 = vand.u32 2147483647, %v5290_v38  ;;  %v890_v34 = vsub.s32 4, %v7541_v44  ;;  %v2756_v33 = vld [vmem:[%s7418_s7 + $0xf8] sm:$0xff] }
 0x197   :  { %4819 = vcosq.f32 %v372_v48  ;;  %vm3955_vm14 = vcmp.lt.s32.totalorder %v3954_v17, 0  ;;  %v590_v29 = vsel %vm588_vm2, %v4808_v61, %v589_v13  ;;  %vm692_vm8 = vcmp.eq.s32.totalorder %v690_v1, 0  ;;  %2914 = vperm.xlu1 %4643, %v2756_v33  }
 0x198   :  { %vm6303_vm6 = vcmp.le.f32.partialorder %v7538_v26, 0.7853982  ;;  %v459_v41 = vsel %vm3955_vm14, 0, %v3954_v17  ;;  %vm695_vm5 = vcmp.eq.s32.totalorder %v690_v1, 2  ;;  %v793_v43 = vadd.s32 3, %v789_v36 }
 0x199   :  { %v892_v40 = vsel %vm6303_vm6, %v5290_v38, %v5817_v0  ;;  %4821 = vsinq.f32 %v372_v48  ;;  %v460_v61 = vsub.s32 32, %v459_v41  ;;  %v464_v13 = vsub.s32 4294967266, %v459_v41  ;;  %2819 = vperm.xlu0 %4644, %v2737_v7  }
 0x19a   :  { %v697_v12 = vsel %vm695_vm5, %v696_v8, %v4814_v14  ;;  %v461_v0 = vshll.u32 %v6231_v30, %v459_v41  ;;  %v694_v58 = vsel %vm692_vm8, %v4812_v54, %v693_v63  ;;  %v891_v17 = vsel %vm806_vm11, %v890_v34, %v7541_v44  ;;  %v2740_v14 = vld [vmem:[%s7418_s7 + $0x78] sm:$0xff]  ;;  %v6342_v44 = vpop.permute.xlu1 %1619  ;;  %v2755_v34 = vld [vmem:[%s7418_s7 + $0xf0] sm:$0xff] }
 0x19b   :  { %4823 = vcosq.f32 %v892_v40  ;;  %v462_v36 = vshrl.u32 %v444_v53, %v460_v61  ;;  %v465_v26 = vadd.s32 127, %v464_v13  ;;  %v893_v15 = vsel %vm6303_vm6, 0, %v891_v17  ;;  %v7545_v53 = vld [vmem:[#allocation16_spill] sm:$0xff]  ;;  %2834 = vperm.xlu1 %4643, %v2740_v14   ;;  %v6358_v13 = vpop.permute.xlu0 %1614 }
 0x19c   :  { %4825 = vsinq.f32 %v892_v40  ;;  %v4816_v48 = vpop.eup %4815  ;;  %v594_v30 = vsel %vm587_vm0, %v590_v29, %v593_v28  ;;  %v897_v54 = vadd.s32 3, %v893_v15  ;;  %v7542_v8 = vand.u32 2147483647, %v5359_v31 }
 0x19d   :  { %v994_v19 = vsub.s32 4, %v7545_v53  ;;  %v463_v40 = vor.u32 %v462_v36, %v461_v0  ;;  %v466_v33 = vshll.u32 %v465_v26, 23  ;;  %vm691_vm2 = vcmp.lt.s32.totalorder %v690_v1, 2  ;;  %2909 = vperm.xlu0 %4644, %v2755_v34   ;;  %v3319_v34 = vld [vmem:[%s7420_s9 + $0x8] sm:$0xff] }
 0x19e   :  { %vm6337_vm11 = vcmp.le.f32.partialorder %v7542_v8, 0.7853982  ;;  %v4818_v15 = vpop.eup %4817  ;;  %v698_v28 = vsel %vm691_vm2, %v694_v58, %v697_v12  ;;  %v794_v29 = vand.u32 3, %v793_v43  ;;  %vm383_vm0 = vcmp.eq.s32.totalorder %v6270_v62, 2  ;;  %v6379_v14 = vpop.permute.xlu1 %1709 }
 0x19f   :  { %v996_v5 = vsel %vm6337_vm11, %v5359_v31, %v5823_v35  ;;  %v995_v41 = vsel %vm910_vm12, %v994_v19, %v7545_v53  ;;  %v467_v7 = vor.u32 4788187, %v466_v33  ;;  %v595_v1 = vsel %vm584_vm10, nan, %v594_v30  ;;  %v3335_v35 = vld [vmem:[%s7420_s9 + $0x88] sm:$0xff]  ;;  %v7546_v53 = vld [vmem:[#allocation19_spill] sm:$0xff] }
 0x1a0   :  { %4827 = vcosq.f32 %v996_v5  ;;  %vm688_vm3 = vweird.f32 %v5119_v10  ;;  %v800_v61 = vxor.u32 2147483648, %v4816_v48  ;;  %v6364_v43 = vand.u32 3, %v6290_v46  ;;  %v2739_v10 = vld [vmem:[%s7418_s7 + $0x70] sm:$0xff]  ;;  %3437 = vperm.xlu1 %4643, %v3335_v35  }
 0x1a1   :  { %v797_v12 = vxor.u32 2147483648, %v4818_v15  ;;  %v6366_v0 = vand.u32 3, %v897_v54  ;;  %v997_v23 = vsel %vm6337_vm11, 0, %v995_v41  ;;  %v6373_v58 = vpop.eup %4819  ;;  %v468_v17 = vand.u32 2147483647, %v467_v7  ;;  %2829 = vperm.xlu0 %4644, %v2739_v10  }
 0x1a2   :  { %v470_v36 = vcvt.s32.f32 %v463_v40  ;;  %v699_v26 = vsel %vm688_vm3, nan, %v698_v28  ;;  %vm792_vm12 = vweird.f32 %v5211_v2  ;;  %4829 = vsinq.f32 %v996_v5 }
 0x1a3   :  { %vm380_vm10 = vcmp.eq.s32.totalorder %v6270_v62, 0  ;;  %v6377_v46 = vpack.c.bf16 %v699_v26, %v595_v1  ;;  %vm795_vm6 = vcmp.lt.s32.totalorder %v794_v29, 2  ;;  %vm796_vm14 = vcmp.eq.s32.totalorder %v794_v29, 0  ;;  %v4822_v30 = vpop.eup %4821 }
 0x1a4   :  { %vm799_vm8 = vcmp.eq.s32.totalorder %v794_v29, 2  ;;  %v471_v54 = vmul.f32 %v470_v36, %v468_v17  ;;  %v1001_v63 = vadd.s32 3, %v997_v23  ;;  %v1098_v19 = vsub.s32 4, %v7546_v53  ;;  %3357 = vperm.xlu1 %4643, %v3319_v34  }
 0x1a5   :  { %v801_v8 = vsel %vm799_vm8, %v800_v61, %v4818_v15  ;;  %v4824_v40 = vpop.eup %4823  ;;  %v384_v33 = vxor.u32 2147483648, %v6373_v58  ;;  %v798_v5 = vsel %vm796_vm14, %v4816_v48, %v797_v12  ;;  %vm899_vm5 = vcmp.lt.s32.totalorder %v6366_v0, 2  ;;  %v3334_v15 = vld [vmem:[%s7420_s9 + $0x80] sm:$0xff]  ;;  %v6403_v12 = vpop.permute.xlu0 %1704 }
 0x1a6   :  { %v7547_v28 = vand.u32 2147483647, %v5438_v45  ;;  %v4826_v7 = vpop.eup %4825  ;;  %v472_v1 = vxor.u32 2147483648, %v471_v54  ;;  %v904_v61 = vxor.u32 2147483648, %v4824_v40  ;;  %v1099_v35 = vsel %vm1014_vm13, %v1098_v19, %v7546_v53  ;;  %3432 = vperm.xlu0 %4644, %v3334_v15   ;;  %v3337_v53 = vld [vmem:[%s7420_s9 + $0x98] sm:$0xff] }
 0x1a7   :  { %vm379_vm2 = vcmp.lt.s32.totalorder %v6270_v62, 2  ;;  %v381_v23 = vxor.u32 2147483648, %v4822_v30  ;;  %vm896_vm3 = vweird.f32 %v5290_v38  ;;  %vm900_vm14 = vcmp.eq.s32.totalorder %v6366_v0, 0 }
 0x1a8   :  { %vm6389_vm11 = vcmp.le.f32.partialorder %v7547_v28, 0.7853982  ;;  %v901_v10 = vxor.u32 2147483648, %v4826_v7  ;;  %vm903_vm8 = vcmp.eq.s32.totalorder %v6366_v0, 2  ;;  %v473_v17 = vsel %vm390_vm7, %v472_v1, %v471_v54  ;;  %v6422_v54 = vpop.permute.xlu1 %1629  ;;  %3447 = vperm.xlu1 %4643, %v3337_v53  }
 0x1a9   :  { %v1100_v48 = vsel %vm6389_vm11, %v5438_v45, %v5829_v21  ;;  %v802_v36 = vsel %vm795_vm6, %v798_v5, %v801_v8  ;;  %v1002_v26 = vand.u32 3, %v1001_v63  ;;  %v1101_v21 = vsel %vm6389_vm11, 0, %v1099_v35  ;;  %v3318_v8 = vld [vmem:[%s7420_s9] sm:$0xff] }
 0x1aa   :  { %v4828_v19 = vpop.eup %4827  ;;  %v385_v28 = vsel %vm383_vm0, %v384_v33, %v4822_v30  ;;  %v476_v34 = vsel %vm6261_vm15, %v7512_v60, %v473_v17  ;;  %4831 = vcosq.f32 %v1100_v48  ;;  %v1105_v29 = vadd.s32 3, %v1101_v21  ;;  %3352 = vperm.xlu0 %4644, %v3318_v8  }
 0x1ab   :  { %vm376_vm13 = vweird.f32 %v7516_v22  ;;  %4833 = vcosq.f32 %v476_v34  ;;  %v902_v63 = vsel %vm900_vm14, %v4824_v40, %v901_v10  ;;  %v905_v30 = vsel %vm903_vm8, %v904_v61, %v4826_v7  ;;  %v6449_v7 = vpop.permute.xlu0 %1624  ;;  %v3321_v61 = vld [vmem:[%s7420_s9 + $0x18] sm:$0xff]  ;;  %v3323_v22 = vld [vmem:[%s7420_s9 + $0x28] sm:$0xff] }
 0x1ac   :  { %v1008_v33 = vxor.u32 2147483648, %v4828_v19  ;;  %4835 = vsinq.f32 %v476_v34  ;;  %v803_v25 = vsel %vm792_vm12, nan, %v802_v36  ;;  %v7550_v5 = vand.u32 2147483647, %v7524_v18  ;;  %v4830_v1 = vpop.eup %4829  ;;  %v6476_v34 = vpop.permute.xlu1 %1719  ;;  %3367 = vperm.xlu1 %4643, %v3321_v61  }
 0x1ad   :  { %v1202_v15 = vsub.s32 4, %v5707_v16  ;;  %v382_v40 = vsel %vm380_vm10, %v6373_v58, %v381_v23  ;;  %vm1000_vm15 = vweird.f32 %v5359_v31  ;;  %vm1004_vm0 = vcmp.eq.s32.totalorder %v1002_v26, 0 }
 0x1ae   :  { %vm6436_vm7 = vcmp.le.f32.partialorder %v7550_v5, 0.7853982  ;;  %4837 = vsinq.f32 %v1100_v48  ;;  %v906_v35 = vsel %vm899_vm5, %v902_v63, %v905_v30  ;;  %v1005_v58 = vxor.u32 2147483648, %v4830_v1  ;;  %v3336_v48 = vld [vmem:[%s7420_s9 + $0x90] sm:$0xff]  ;;  %v3339_v63 = vld [vmem:[%s7420_s9 + $0xa8] sm:$0xff] }
 0x1af   :  { %v1204_v2 = vsel %vm6436_vm7, %v7524_v18, %v6222_v3  ;;  %vm1007_vm12 = vcmp.eq.s32.totalorder %v1002_v26, 2  ;;  %v6456_v23 = vand.u32 3, %v1105_v29  ;;  %vm487_vm10 = vcmp.eq.s32.totalorder %v6364_v43, 2  ;;  %3442 = vperm.xlu0 %4644, %v3336_v48   ;;  %v6502_v5 = vpop.permute.xlu0 %1714 }
 0x1b0   :  { %v1009_v3 = vsel %vm1007_vm12, %v1008_v33, %v4830_v1  ;;  %v1203_v10 = vsel %vm1118_vm1, %v1202_v15, %v5707_v16  ;;  %4839 = vcosq.f32 %v1204_v2  ;;  %v7553_v17 = vand.u32 2147483647, %v7528_v56  ;;  %3457 = vperm.xlu1 %4643, %v3339_v63  }
 0x1b1   :  { %vm484_vm5 = vcmp.eq.s32.totalorder %v6364_v43, 0  ;;  %v1006_v36 = vsel %vm1004_vm0, %v4828_v19, %v1005_v58  ;;  %v1205_v21 = vsel %vm6436_vm7, 0, %v1203_v10  ;;  %4841 = vsinq.f32 %v1204_v2  ;;  %v6523_v58 = vpop.permute.xlu1 %1639 }
 0x1b2   :  { %vm6467_vm6 = vcmp.le.f32.partialorder %v7553_v17, 0.7853982  ;;  %v1306_v53 = vsub.s32 4, %v5790_v52  ;;  %v386_v16 = vsel %vm379_vm2, %v382_v40, %v385_v28  ;;  %vm483_vm1 = vcmp.lt.s32.totalorder %v6364_v43, 2  ;;  %v3320_v28 = vld [vmem:[%s7420_s9 + $0x10] sm:$0xff] }
 0x1b3   :  { %v907_v29 = vsel %vm896_vm3, nan, %v906_v35  ;;  %v1209_v8 = vadd.s32 3, %v1205_v21  ;;  %v1308_v19 = vsel %vm6467_vm6, %v7528_v56, %v6246_v6  ;;  %vm480_vm11 = vweird.f32 %v7512_v60  ;;  %3362 = vperm.xlu0 %4644, %v3320_v28   ;;  %v3341_v28 = vld [vmem:[%s7420_s9 + $0xb8] sm:$0xff] }
 0x1b4   :  { %vm1003_vm14 = vcmp.lt.s32.totalorder %v1002_v26, 2  ;;  %v1307_v62 = vsel %vm1222_vm4, %v1306_v53, %v5790_v52  ;;  %4843 = vcosq.f32 %v1308_v19  ;;  %v1324_v38 = vand.u32 2147483647, %v5658_v42  ;;  %v4832_v26 = vpop.eup %4831  ;;  %3377 = vperm.xlu1 %4643, %v3323_v22  }
 0x1b5   :  { %v1010_v6 = vsel %vm1003_vm14, %v1006_v36, %v1009_v3  ;;  %v6498_v30 = vand.u32 3, %v1209_v8  ;;  %v1309_v33 = vsel %vm6467_vm6, 0, %v1307_v62  ;;  %4845 = vsinq.f32 %v1308_v19  ;;  %v4834_v15 = vpop.eup %4833  ;;  %v3338_v3 = vld [vmem:[%s7420_s9 + $0xa0] sm:$0xff]  ;;  %v6542_v19 = vpop.permute.xlu0 %1634 }
 0x1b6   :  { %v387_v52 = vsel %vm376_vm13, nan, %v386_v16  ;;  %v6506_v41 = vpack.c.bf16 %v907_v29, %v803_v25  ;;  %vm1104_vm4 = vweird.f32 %v5438_v45  ;;  %vm1107_vm2 = vcmp.lt.s32.totalorder %v6456_v23, 2  ;;  %v4836_v25 = vpop.eup %4835  ;;  %v3340_v45 = vld [vmem:[%s7420_s9 + $0xb0] sm:$0xff] }
 0x1b7   :  { %vm1108_vm3 = vcmp.eq.s32.totalorder %v6456_v23, 0  ;;  %v1112_v1 = vxor.u32 2147483648, %v4832_v26  ;;  %v1313_v40 = vadd.s32 3, %v1309_v33  ;;  %v6513_v2 = vand.u32 8388607, %v1324_v38  ;;  %3452 = vperm.xlu0 %4644, %v3338_v3  }
 0x1b8   :  { %v488_v61 = vxor.u32 2147483648, %v4834_v15  ;;  %v6520_v35 = vsel %vm1000_vm15, nan, %v1010_v6  ;;  %vm1111_vm8 = vcmp.eq.s32.totalorder %v6456_v23, 2  ;;  %v6527_v48 = vshrl.u32 %v7490_v24, %v5963_v59  ;;  %v4838_v10 = vpop.eup %4837  ;;  %3467 = vperm.xlu1 %4643, %v3341_v28  }
 0x1b9   :  { %v485_v17 = vxor.u32 2147483648, %v4836_v25  ;;  %vm1212_vm13 = vcmp.eq.s32.totalorder %v6498_v30, 0  ;;  %vm1215_vm7 = vcmp.eq.s32.totalorder %v6498_v30, 2  ;;  %v1342_v31 = vshrl.u32 %v7495_v50, %v5963_v59 }
 0x1ba   :  { %v489_v0 = vsel %vm487_vm10, %v488_v61, %v4836_v25  ;;  %v1109_v36 = vxor.u32 2147483648, %v4838_v10  ;;  %v1113_v21 = vsel %vm1111_vm8, %v1112_v1, %v4838_v10  ;;  %v1345_v53 = vshrl.u32 %v7496_v4, %v5963_v59  ;;  %v4840_v16 = vpop.eup %4839 }
 0x1bb   :  { %v486_v29 = vsel %vm484_vm5, %v4834_v15, %v485_v17  ;;  %v1314_v8 = vand.u32 3, %v1313_v40  ;;  %v1332_v63 = vor.u32 8388608, %v6513_v2  ;;  %v1341_v62 = vshll.u32 %v7490_v24, %v5931_v11  ;;  %v4842_v6 = vpop.eup %4841  ;;  %v3322_v24 = vld [vmem:[%s7420_s9 + $0x20] sm:$0xff] }
 0x1bc   :  { %v490_v33 = vsel %vm483_vm1, %v486_v29, %v489_v0  ;;  %v1110_v15 = vsel %vm1108_vm3, %v4832_v26, %v1109_v36  ;;  %v1216_v1 = vxor.u32 2147483648, %v4840_v16  ;;  %v1344_v40 = vshll.u32 %v7495_v50, %v5931_v11  ;;  %v6564_v26 = vpop.permute.xlu1 %1729  ;;  %3372 = vperm.xlu0 %4644, %v3322_v24  }
 0x1bd   :  { %v491_v2 = vsel %vm480_vm11, nan, %v490_v33  ;;  %v1114_v22 = vsel %vm1107_vm2, %v1110_v15, %v1113_v21  ;;  %v1213_v25 = vxor.u32 2147483648, %v4842_v6  ;;  %v1343_v43 = vor.u32 %v1342_v31, %v1341_v62  ;;  %v3343_v15 = vld [vmem:[%s7420_s9 + $0xc8] sm:$0xff] }
 0x1be   :  { %v4844_v61 = vpop.eup %4843  ;;  %v1532_v3 = vpack.c.bf16 %v491_v2, %v387_v52  ;;  %vm1312_vm15 = vweird.f32 %v7528_v56  ;;  %v1346_v10 = vor.u32 %v1345_v53, %v1344_v40  ;;  %v1347_v50 = vshll.u32 %v7496_v4, %v5931_v11  ;;  %v3325_v52 = vld [vmem:[%s7420_s9 + $0x38] sm:$0xff]  ;;  %v6582_v53 = vpop.permute.xlu0 %1724 }
 0x1bf   :  { %v7556_v17 = vmov 2102212464   ;;  %v4846_v60 = vpop.eup %4845  ;;  %v1115_v23 = vsel %vm1104_vm4, nan, %v1114_v22  ;;  %vm1316_vm0 = vcmp.eq.s32.totalorder %v1314_v8, 0  ;;  %vm1319_vm12 = vcmp.eq.s32.totalorder %v1314_v8, 2  ;;  %3387 = vperm.xlu1 %4643, %v3325_v52  }
 0x1c0   :  { %v1348_v0 = vshrl.u32 %v7556_v17, %v5963_v59  ;;  %v1320_v31 = vxor.u32 2147483648, %v4844_v61  ;;  %4506 = vmatprep.subr.bf16.mxu0 %v1532_v3  ;;  %v1214_v4 = vsel %vm1212_vm13, %v4840_v16, %v1213_v25  ;;  %v1217_v11 = vsel %vm1215_vm7, %v1216_v1, %v4842_v6  ;;  %3462 = vperm.xlu0 %4644, %v3340_v45   ;;  %v6605_v24 = vpop.permute.xlu1 %1649 }
 0x1c1   :  { %v1317_v59 = vxor.u32 2147483648, %v4846_v60  ;;  %4507 = vmatpush3.bf16.msra.mxu0 %v1532_v3  ;;  %vm1356_vm10 = vcmp.lt.s32.totalorder %v5913_v32, 1  ;;  %vm1357_vm6 = vcmp.lt.s32.totalorder %v5913_v32, 2  ;;  %vm1358_vm5 = vcmp.lt.s32.totalorder %v5913_v32, 3  ;;  %v3327_v3 = vld [vmem:[%s7420_s9 + $0x48] sm:$0xff] }
 0x1c2   :  { %v1349_v36 = vor.u32 %v1348_v0, %v1347_v50  ;;  %v1321_v21 = vsel %vm1319_vm12, %v1320_v31, %v4846_v60  ;;  %4508 = vmatprep.subr.bf16.mxu0 %v6377_v46  ;;  %v1364_v62 = vsel %vm1356_vm10, %v1343_v43, %v1346_v10  ;;  %vm1211_vm1 = vcmp.lt.s32.totalorder %v6498_v30, 2  ;;  %v3342_v50 = vld [vmem:[%s7420_s9 + $0xc0] sm:$0xff] }
 0x1c3   :  { %v1318_v16 = vsel %vm1316_vm0, %v4844_v61, %v1317_v59  ;;  %vm1315_vm11 = vcmp.lt.s32.totalorder %v1314_v8, 2  ;;  %v1535_v1 = vpack.c.bf16 %v1115_v23, %v6520_v35  ;;  %v1372_v30 = vshll.u32 %v1332_v63, 8  ;;  %v3324_v8 = vld [vmem:[%s7420_s9 + $0x30] sm:$0xff]  ;;  %3477 = vperm.xlu1 %4643, %v3343_v15   ;;  %v7559_v59 = vld [vmem:[#allocation21_spill] sm:$0xff] }
 0x1c4   :  { %v1361_v29 = vsel %vm1359_vm9, %v1349_v36, 2102212464  ;;  %v1366_v28 = vsel %vm1358_vm5, %v1349_v36, %v6156_v37  ;;  %v1368_v33 = vsel %vm1356_vm10, %v1346_v10, %v1349_v36  ;;  %v1322_v40 = vsel %vm1315_vm11, %v1318_v16, %v1321_v21  ;;  %3382 = vperm.xlu0 %4644, %v3324_v8  }
 0x1c5   :  { %v1367_v6 = vsel %vm1357_vm6, %v1364_v62, %v1366_v28  ;;  %v1370_v37 = vsel %vm1358_vm5, %v6120_v47, %v6199_v9  ;;  %4509 = vmatpush3.bf16.msra.mxu0 %v6377_v46  ;;  %v1218_v2 = vsel %vm1211_vm1, %v1214_v4, %v1217_v11  ;;  %v1360_v35 = vsel %vm1356_vm10, %v6527_v48, %v1343_v43  ;;  %v4645_v47 = vld [vmem:[%s7413_s2] sm:$0xff]   ;;  %v6635_v43 = vpop.permute.xlu0 %1644  ;;  %v7558_v11 = vld [vmem:[#allocation22_spill] sm:$0xff]  ;;  %v3329_v28 = vld [vmem:[%s7420_s9 + $0x58] sm:$0xff] }
 0x1c6   :  { %v1362_v22 = vsel %vm1358_vm5, %v1346_v10, %v1361_v29  ;;  %v1371_v25 = vsel %vm1357_vm6, %v1368_v33, %v1370_v37  ;;  %4510 = vmatprep.subr.bf16.mxu0 %v6506_v41  ;;  %v6629_v46 = vmul.u32.u64.low %v1372_v30, %v1367_v6  ;;  %v6630_v61 = vmul.u32.u64.high %v1372_v30, %v1367_v6, %v6629_v46  ;;  %v3326_v4 = vld [vmem:[%s7420_s9 + $0x40] sm:$0xff]  ;;  %v3344_v33 = vld [vmem:[%s7420_s9 + $0xd0] sm:$0xff] }
 0x1c7   :  { %v6626_v9 = vmul.u32.u64.low %v1372_v30, %v1371_v25  ;;  %v6627_v63 = vmul.u32.u64.high %v1372_v30, %v1371_v25, %v6626_v9  ;;  %v1323_v48 = vsel %vm1312_vm15, nan, %v1322_v40  ;;  %vm1208_vm9 = vweird.f32 %v7524_v18  ;;  %v6653_v18 = vpop.permute.xlu1 %1739  ;;  %3397 = vperm.xlu1 %4643, %v3327_v3  }
 0x1c8   :  { %v1363_v10 = vsel %vm1357_vm6, %v1360_v35, %v1362_v22  ;;  %vm1842_vm14 = vcmask 785408   ;;  %v7557_v56 = vsub.s32 4294967266, %v6225_v39  ;;  %v1219_v0 = vsel %vm1208_vm9, nan, %v1218_v2  ;;  %3472 = vperm.xlu0 %4644, %v3342_v50   ;;  %v3347_v2 = vld [vmem:[%s7420_s9 + $0xe8] sm:$0xff]  ;;  %v3328_v35 = vld [vmem:[%s7420_s9 + $0x50] sm:$0xff] }
 0x1c9   :  { %4511 = vmatpush3.bf16.msra.mxu0 %v6506_v41  ;;  %4518 = vmatprep.mubr.msk.bf16.mxu0 %vm1842_vm14, %v4645_v47  ;;  %v1536_v60 = vpack.c.bf16 %v1323_v48, %v1219_v0  ;;  %vm1381_vm4 = vc.u32 %v6627_v63, %v6629_v46  ;;  %v1382_v32 = vadd.s32 1, %v6630_v61  ;;  %v1500_v23 = vsub.s32 32, %v6225_v39  ;;  %v3345_v41 = vld [vmem:[%s7420_s9 + $0xd8] sm:$0xff]  ;;  %v6665_v16 = vpop.permute.xlu0 %1734  ;;  %v3331_v9 = vld [vmem:[%s7420_s9 + $0x68] sm:$0xff]  ;;  %v3330_v0 = vld [vmem:[%s7420_s9 + $0x60] sm:$0xff] }
 0x1ca   :  { %v1505_v17 = vadd.s32 127, %v7557_v56  ;;  %4512 = vmatprep.subr.bf16.mxu0 %v1535_v1  ;;  %v1379_v31 = vmul.u32 %v1372_v30, %v1363_v10  ;;  %v1484_v36 = vadd.s32 %v7559_v59, %v7558_v11  ;;  %v1501_v15 = vshll.u32 %v6050_v55, %v6225_v39  ;;  %v3349_v56 = vld [vmem:[%s7420_s9 + $0xf8] sm:$0xff] }
 0x1cb   :  { %v1383_v52 = vsel %vm1381_vm4, %v1382_v32, %v6630_v61  ;;  %3487 = vperm.xlu1 %4643, %v3345_v41   ;;  %v6670_v6 = vpop.permute.xlu1 %1659  ;;  %v3346_v61 = vld [vmem:[%s7420_s9 + $0xe0] sm:$0xff]  ;;  %v1380_v59 = vadd.s32 %v6629_v46, %v6627_v63  ;;  %v3332_v63 = vld [vmem:[%s7420_s9 + $0x70] sm:$0xff]  ;;  %vm1326_vm13 = vcmp.lt.s32.totalorder %v5658_v42, 0  ;;  %vm1325_vm7 = vcmp.le.f32.partialorder %v1324_v38, 0.7853982 }
 0x1cc   :  { %v1506_v45 = vshll.u32 %v1505_v17, 23  ;;  %v1384_v21 = vadd.s32 %v1383_v52, %v1379_v31  ;;  %v1502_v29 = vshrl.u32 %v1484_v36, %v1500_v23  ;;  %3392 = vperm.xlu0 %4644, %v3326_v4   ;;  %v3333_v31 = vld [vmem:[%s7420_s9 + $0x78] sm:$0xff]  ;;  %v7560_v41 = vld [vmem:[#allocation20_spill] sm:$0xff]  ;;  %v3348_v4 = vld [vmem:[%s7420_s9 + $0xf0] sm:$0xff]  ;;  %vm1416_vm11 = vweird.f32 %v5658_v42 }
 0x1cd   :  { %4513 = vmatpush3.bf16.msra.mxu0 %v1535_v1  ;;  %v6680_v8 = vpop.permute.xlu0 %1654  ;;  %vm1430_vm3 = vcmp.lt.s32.totalorder %v7560_v41, 0  ;;  %vm1520_vm5 = vweird.f32 %v7560_v41 }
 0x1ce   :  { %4514 = vmatprep.subr.bf16.mxu0 %v1536_v60  ;;  %v1385_v62 = vadd.s32 536870912, %v1384_v21  ;;  %v1507_v1 = vor.u32 4788187, %v1506_v45  ;;  %v1503_v37 = vor.u32 %v1502_v29, %v1501_v15 }
 0x1cf   :  { %3407 = vperm.xlu1 %4643, %v3329_v28   ;;  %v6688_v22 = vpop.permute.xlu1 %1749 }
 0x1d0   :  { %v6677_v40 = vshrl.u32 %v1385_v62, 30  ;;  %3482 = vperm.xlu0 %4644, %v3344_v33   ;;  %v1508_v55 = vand.u32 2147483647, %v1507_v1  ;;  %v1510_v25 = vcvt.s32.f32 %v1503_v37  ;;  %v7561_v33 = vand.u32 2147483647, %v7560_v41 }
 0x1d1   :  { %4515 = vmatpush3.bf16.msra.mxu0 %v1536_v60  ;;  %v6696_v10 = vpop.permute.xlu0 %1744 }
 0x1d2   :  { %v1387_v30 = vshll.u32 %v6677_v40, 30  ;;  %v1511_v48 = vmul.f32 %v1510_v25, %v1508_v55  ;;  %vm6723_vm8 = vcmp.le.f32.partialorder %v7561_v33, 0.7853982 }
 0x1d3   :  { %3497 = vperm.xlu1 %4643, %v3347_v2   ;;  %v6701_v17 = vpop.permute.xlu1 %1669  ;;  %v7564_v2 = vld [vmem:[#allocation15_spill] sm:$0xff] }
 0x1d4   :  { %v1388_v39 = vsub.s32 %v1384_v21, %v1387_v30  ;;  %3402 = vperm.xlu0 %4644, %v3328_v35   ;;  %v1512_v60 = vxor.u32 2147483648, %v1511_v48  ;;  %v1514_v35 = vsub.s32 4, %v7564_v2 }
 0x1d5   :  { %v6706_v23 = vpop.permute.xlu0 %1664 }
 0x1d6   :  { %v1390_v47 = vsub.s32 0, %v1388_v39  ;;  %v1513_v11 = vsel %vm1430_vm3, %v1512_v60, %v1511_v48  ;;  %v1410_v48 = vsub.s32 4, %v6677_v40 }
 0x1d7   :  { %3417 = vperm.xlu1 %4643, %v3331_v9   ;;  %v6719_v21 = vpop.permute.xlu1 %1759  ;;  %v1516_v1 = vsel %vm6723_vm8, %v7560_v41, %v1513_v11  ;;  %v1515_v9 = vsel %vm1430_vm3, %v1514_v35, %v7564_v2  ;;  %v4649_v41 = vld [vmem:[%s7413_s2 + $0x20] sm:$0xff]  }
 0x1d8   :  { %v3989_v3 = vmin.u32 %v1390_v47, %v1388_v39  ;;  %3492 = vperm.xlu0 %4644, %v3346_v61   ;;  %4847 = vcosq.f32 %v1516_v1  ;;  %v1411_v60 = vsel %vm1326_vm13, %v1410_v48, %v6677_v40  ;;  %v4652_v48 = vld [vmem:[%s7413_s2 + $0x38] sm:$0xff]  }
 0x1d9   :  { %v6733_v30 = vpop.permute.xlu0 %1754  ;;  %4849 = vsinq.f32 %v1516_v1  ;;  %v1413_v11 = vsel %vm1325_vm7, 0, %v1411_v60  ;;  %v4656_v60 = vld [vmem:[%s7413_s2 + $0x58] sm:$0xff]  }
 0x1da   :  { %v1392_v50 = vclz %v3989_v3 }
 0x1db   :  { %3507 = vperm.xlu1 %4643, %v3349_v56   ;;  %v1517_v56 = vsel %vm6723_vm8, 0, %v1515_v9  ;;  %v4650_v9 = vld [vmem:[%s7413_s2 + $0x28] sm:$0xff]  }
 0x1dc   :  { %v3990_v32 = vadd.s32 4294967294, %v1392_v50  ;;  %3412 = vperm.xlu0 %4644, %v3330_v0  }
 0x1dd   :  { %v6743_v3 = vpop.permute.xlu0 %1674 }
 0x1de   :  { %vm3991_vm2 = vcmp.lt.s32.totalorder %v3990_v32, 0 }
 0x1df   :  { %v1395_v52 = vsel %vm3991_vm2, 0, %v3990_v32  ;;  %3427 = vperm.xlu1 %4643, %v3333_v31   ;;  %v1521_v31 = vadd.s32 3, %v1517_v56  ;;  %v4654_v56 = vld [vmem:[%s7413_s2 + $0x48] sm:$0xff]  }
 0x1e0   :  { %v1396_v36 = vsub.s32 32, %v1395_v52  ;;  %v1400_v45 = vsub.s32 4294967266, %v1395_v52  ;;  %v1397_v29 = vshll.u32 %v1388_v39, %v1395_v52  ;;  %3502 = vperm.xlu0 %4644, %v3348_v4   ;;  %v3880_v39 = vld [vmem:[%s7422_s11] sm:$0xff] }
 0x1e2   :  { %v1398_v62 = vshrl.u32 %v1380_v59, %v1396_v36  ;;  %v1401_v28 = vadd.s32 127, %v1400_v45  ;;  %v4848_v52 = vpop.eup %4847  ;;  %v1522_v59 = vand.u32 3, %v1521_v31  ;;  %v1417_v36 = vadd.s32 3, %v1413_v11  ;;  %v4658_v31 = vld [vmem:[%s7413_s2 + $0x68] sm:$0xff]  }
 0x1e3   :  { %v4850_v4 = vpop.eup %4849  ;;  %v4663_v11 = vld [vmem:[%s7415_s4 + $0x4] ss:$8 sps:$4 sm:$0xff]  }
 0x1e4   :  { %v1399_v46 = vor.u32 %v1398_v62, %v1397_v29  ;;  %v1402_v37 = vshll.u32 %v1401_v28, 23  ;;  %3422 = vperm.xlu0 %4644, %v3332_v63   ;;  %v1525_v45 = vxor.u32 2147483648, %v4850_v4  ;;  %v1528_v29 = vxor.u32 2147483648, %v4848_v52 }
 0x1e5   :  { %vm1524_vm15 = vcmp.eq.s32.totalorder %v1522_v59, 0  ;;  %vm1527_vm0 = vcmp.eq.s32.totalorder %v1522_v59, 2  ;;  %v1418_v62 = vand.u32 3, %v1417_v36  ;;  %vm1523_vm12 = vcmp.lt.s32.totalorder %v1522_v59, 2  ;;  %v4666_v59 = vld [vmem:[%s7415_s4 + $0x44] ss:$8 sps:$4 sm:$0xff]  }
 0x1e6   :  { %v1403_v55 = vor.u32 4788187, %v1402_v37  ;;  %v1406_v47 = vcvt.s32.f32 %v1399_v46  ;;  %v1526_v28 = vsel %vm1524_vm15, %v4848_v52, %v1525_v45  ;;  %v1529_v38 = vsel %vm1527_vm0, %v1528_v29, %v4850_v4  ;;  %v4659_v52 = vld [vmem:[%s7413_s2 + $0x70] sm:$0xff]   ;;  %v4660_v4 = vld [vmem:[%s7413_s2 + $0x78] sm:$0xff]   ;;  %2548 = vmatprep.mubr.bf16.mxu1 %v4666_v59 }
 0x1e7   :  { %v1530_v1 = vsel %vm1523_vm12, %v1526_v28, %v1529_v38  ;;  %vm1423_vm10 = vcmp.eq.s32.totalorder %v1418_v62, 2  ;;  %vm1420_vm6 = vcmp.eq.s32.totalorder %v1418_v62, 0  ;;  %vm1419_vm1 = vcmp.lt.s32.totalorder %v1418_v62, 2 }
 0x1e8   :  { %v1404_v25 = vand.u32 2147483647, %v1403_v55  ;;  %3883 = vperm.xlu0 %4644, %v3880_v39   ;;  %v1531_v2 = vsel %vm1520_vm5, nan, %v1530_v1 }
 0x1ea   :  { %v1407_v61 = vmul.f32 %v1406_v47, %v1404_v25  ;;  %v4646_v25 = vld [vmem:[%s7413_s2 + $0x8] sm:$0xff]   ;;  %v4647_v47 = vld [vmem:[%s7413_s2 + $0x10] sm:$0xff]  }
 0x1ec   :  { %v1408_v50 = vxor.u32 2147483648, %v1407_v61 }
 0x1ee   :  { %v1409_v0 = vsel %vm1326_vm13, %v1408_v50, %v1407_v61  ;;  %v4651_v61 = vld [vmem:[%s7413_s2 + $0x30] sm:$0xff]   ;;  %v4653_v50 = vld [vmem:[%s7413_s2 + $0x40] sm:$0xff]  }
 0x1ef   :  { %v1412_v32 = vsel %vm1325_vm7, %v5658_v42, %v1409_v0  ;;  %v4648_v42 = vld [vmem:[%s7413_s2 + $0x18] sm:$0xff]   ;;  %v4655_v0 = vld [vmem:[%s7413_s2 + $0x50] sm:$0xff]  }
 0x1f0   :  { %4851 = vcosq.f32 %v1412_v32 }
 0x1f1   :  { %4853 = vsinq.f32 %v1412_v32  ;;  %v4657_v32 = vld [vmem:[%s7413_s2 + $0x60] sm:$0xff]  }
 0x1fa   :  { %v4852_v33 = vpop.eup %4851 }
 0x1fb   :  { %v4854_v40 = vpop.eup %4853  ;;  %v1424_v15 = vxor.u32 2147483648, %v4852_v33 }
 0x1fc   :  { %v1421_v63 = vxor.u32 2147483648, %v4854_v40 }
 0x1fd   :  { %v1425_v46 = vsel %vm1423_vm10, %v1424_v15, %v4854_v40 }
 0x1fe   :  { %v1422_v37 = vsel %vm1420_vm6, %v4852_v33, %v1421_v63 }
 0x1ff   :  { %v1426_v35 = vsel %vm1419_vm1, %v1422_v37, %v1425_v46 }
 0x200   :  { %v1427_v55 = vsel %vm1416_vm11, nan, %v1426_v35 }
 0x201   :  { %v1537_v39 = vpack.c.bf16 %v1531_v2, %v1427_v55 }
 0x203   :  { %4516 = vmatprep.subr.bf16.mxu0 %v1537_v39 }
 0x204   :  { %4517 = vmatpush3.bf16.msra.mxu0 %v1537_v39 }
 0x207   :  { %4519 = vmatmul.mubr.msk.bf16.vlgmr.msra.gmra.mrb[0].mxu0 %vm1842_vm14, %v4646_v25 }
 0x208   :  { %4522 = vmatprep.mubr.msk.bf16.mxu0 %vm1842_vm14, %v4647_v47 }
 0x20f   :  { %4523 = vmatmul.mubr.msk.bf16.gmra.mrb[4].mxu0 %vm1842_vm14, %v4648_v42 }
 0x210   :  { %4526 = vmatprep.mubr.msk.bf16.mxu0 %vm1842_vm14, %v4649_v41 }
 0x217   :  { %4527 = vmatmul.mubr.msk.bf16.gmra.mrb[8].mxu0 %vm1842_vm14, %v4650_v9 }
 0x218   :  { %4530 = vmatprep.mubr.msk.bf16.mxu0 %vm1842_vm14, %v4651_v61 }
 0x21f   :  { %4531 = vmatmul.mubr.msk.bf16.gmra.mrb[12].mxu0 %vm1842_vm14, %v4652_v48 }
 0x220   :  { %4534 = vmatprep.mubr.msk.bf16.mxu0 %vm1842_vm14, %v4653_v50 }
 0x227   :  { %4535 = vmatmul.mubr.msk.bf16.gmra.mrb[16].mxu0 %vm1842_vm14, %v4654_v56 }
 0x228   :  { %4538 = vmatprep.mubr.msk.bf16.mxu0 %vm1842_vm14, %v4655_v0 }
 0x22f   :  { %4539 = vmatmul.mubr.msk.bf16.gmra.mrb[20].mxu0 %vm1842_vm14, %v4656_v60 }
 0x230   :  { %4542 = vmatprep.mubr.msk.bf16.mxu0 %vm1842_vm14, %v4657_v32 }
 0x237   :  { %4543 = vmatmul.mubr.msk.bf16.gmra.mrb[24].mxu0 %vm1842_vm14, %v4658_v31 }
 0x238   :  { %4546 = vmatprep.mubr.msk.bf16.mxu0 %vm1842_vm14, %v4659_v52 }
 0x23f   :  { %4547 = vmatmul.mubr.msk.bf16.gmra.mrb[28].mxu0 %vm1842_vm14, %v4660_v4 }
 0x240   :  { %2516 = vmatprep.mubr.bf16.mxu0 %v4663_v11 }
 0x2da   :  { %v4520_v36 = vpop.f32.mrb[0].mxu0 }
 0x2db   :  { %v1934_v45 = vadd.f32 %v4520_v36, %v6358_v13  ;;  %v1925_v29 = vpop.f32.mrb[1].mxu0 }
 0x2dc   :  { %v1926_v62 = vadd.f32 %v1925_v29, %v6215_v57  ;;  %v4521_v28 = vpop.f32.mrb[2].mxu0  ;;  %v1680_v29 = vpop.permute.xlu1 %1679 }
 0x2dd   :  { %v1937_v38 = vadd.f32 %v4521_v28, %v6342_v44  ;;  %v1928_v33 = vpop.f32.mrb[3].mxu0  ;;  %v2054_v15 = vmax.f32 %v1934_v45, 0.0 }
 0x2de   :  { %v1929_v40 = vadd.f32 %v1928_v33, %v6265_v51  ;;  %v2052_v63 = vmax.f32 %v1926_v62, 0.0 }
 0x2df   :  { %v2055_v1 = vmax.f32 %v1937_v38, 0.0 }
 0x2e0   :  { %v2053_v46 = vmax.f32 %v1929_v40, 0.0 }
 0x2e1   :  { %v6824_v37 = vpack.c.bf16 %v2055_v1, %v2054_v15 }
 0x2e2   :  { %v6826_v2 = vpack.c.bf16 %v2053_v46, %v2052_v63  ;;  %v4524_v35 = vpop.f32.mrb[4].mxu0 }
 0x2e3   :  { %v1950_v13 = vadd.f32 %v4524_v35, %v6542_v19  ;;  %v1941_v55 = vpop.f32.mrb[5].mxu0 }
 0x2e4   :  { %v1942_v57 = vadd.f32 %v1941_v55, %v6449_v7  ;;  %v4525_v39 = vpop.f32.mrb[6].mxu0 }
 0x2e5   :  { %v1953_v44 = vadd.f32 %v4525_v39, %v6523_v58  ;;  %v1944_v25 = vpop.f32.mrb[7].mxu0  ;;  %v2058_v47 = vmax.f32 %v1950_v13, 0.0  ;;  %v7565_v39 = vld [vmem:[#allocation12_spill] sm:$0xff] }
 0x2e6   :  { %v1945_v51 = vadd.f32 %v1944_v25, %v6422_v54  ;;  %v2056_v41 = vmax.f32 %v1942_v57, 0.0 }
 0x2e7   :  { %v2059_v42 = vmax.f32 %v1953_v44, 0.0 }
 0x2e8   :  { %v2057_v9 = vmax.f32 %v1945_v51, 0.0 }
 0x2e9   :  { %v6832_v61 = vpack.c.bf16 %v2059_v42, %v2058_v47 }
 0x2ea   :  { %v6834_v48 = vpack.c.bf16 %v2057_v9, %v2056_v41  ;;  %v4528_v50 = vpop.f32.mrb[8].mxu0 }
 0x2eb   :  { %v1966_v19 = vadd.f32 %v4528_v50, %v6680_v8  ;;  %v1957_v56 = vpop.f32.mrb[9].mxu0 }
 0x2ec   :  { %v1958_v7 = vadd.f32 %v1957_v56, %v6635_v43  ;;  %v4529_v0 = vpop.f32.mrb[10].mxu0 }
 0x2ed   :  { %v1969_v58 = vadd.f32 %v4529_v0, %v6670_v6  ;;  %v1960_v60 = vpop.f32.mrb[11].mxu0  ;;  %v2062_v32 = vmax.f32 %v1966_v19, 0.0 }
 0x2ee   :  { %v1961_v54 = vadd.f32 %v1960_v60, %v6605_v24  ;;  %v2060_v52 = vmax.f32 %v1958_v7, 0.0 }
 0x2ef   :  { %v2063_v31 = vmax.f32 %v1969_v58, 0.0 }
 0x2f0   :  { %v2061_v4 = vmax.f32 %v1961_v54, 0.0 }
 0x2f1   :  { %v6840_v11 = vpack.c.bf16 %v2063_v31, %v2062_v32 }
 0x2f2   :  { %v6842_v59 = vpack.c.bf16 %v2061_v4, %v2060_v52  ;;  %v4532_v36 = vpop.f32.mrb[12].mxu0 }
 0x2f3   :  { %v1982_v8 = vadd.f32 %v4532_v36, %v6743_v3  ;;  %v1973_v45 = vpop.f32.mrb[13].mxu0 }
 0x2f4   :  { %v1974_v43 = vadd.f32 %v1973_v45, %v6706_v23  ;;  %v4533_v62 = vpop.f32.mrb[14].mxu0 }
 0x2f5   :  { %v1985_v6 = vadd.f32 %v4533_v62, %v1680_v29  ;;  %v1976_v28 = vpop.f32.mrb[15].mxu0  ;;  %v2066_v38 = vmax.f32 %v1982_v8, 0.0 }
 0x2f6   :  { %v1977_v24 = vadd.f32 %v1976_v28, %v6701_v17  ;;  %v2064_v40 = vmax.f32 %v1974_v43, 0.0 }
 0x2f7   :  { %v2067_v33 = vmax.f32 %v1985_v6, 0.0 }
 0x2f8   :  { %v2065_v15 = vmax.f32 %v1977_v24, 0.0 }
 0x2f9   :  { %v6847_v1 = vpack.c.bf16 %v2067_v33, %v2066_v38 }
 0x2fa   :  { %v6849_v63 = vpack.c.bf16 %v2065_v15, %v2064_v40  ;;  %v4536_v46 = vpop.f32.mrb[16].mxu0  ;;  %v4671_v15 = vld [vmem:[%s7415_s4 + $0x10] ss:$8 sps:$4 sm:$0xff]  }
 0x2fb   :  { %v1998_v3 = vadd.f32 %v4536_v46, %v6322_v49  ;;  %v1989_v35 = vpop.f32.mrb[17].mxu0  ;;  %v4675_v46 = vld [vmem:[%s7415_s4 + $0x64] ss:$8 sps:$4 sm:$0xff]  }
 0x2fc   :  { %v1990_v13 = vadd.f32 %v1989_v35, %v6177_v27  ;;  %v4537_v23 = vpop.f32.mrb[18].mxu0  ;;  %v4678_v35 = vld [vmem:[%s7415_s4 + $0x60] ss:$8 sps:$4 sm:$0xff]  }
 0x2fd   :  { %v2001_v55 = vadd.f32 %v4537_v23, %v6308_v20  ;;  %v1992_v57 = vpop.f32.mrb[19].mxu0  ;;  %v2070_v44 = vmax.f32 %v1998_v3, 0.0  ;;  %v4677_v3 = vld [vmem:[%s7415_s4 + $0x20] ss:$8 sps:$4 sm:$0xff]   ;;  %v4681_v23 = vld [vmem:[%s7415_s4 + $0x74] ss:$8 sps:$4 sm:$0xff]  }
 0x2fe   :  { %v1993_v17 = vadd.f32 %v1992_v57, %v7565_v39  ;;  %v2068_v51 = vmax.f32 %v1990_v13, 0.0  ;;  %v4679_v13 = vld [vmem:[%s7415_s4 + $0x34] ss:$8 sps:$4 sm:$0xff]   ;;  %v4684_v57 = vld [vmem:[%s7415_s4 + $0x70] ss:$8 sps:$4 sm:$0xff]  }
 0x2ff   :  { %v2071_v25 = vmax.f32 %v2001_v55, 0.0  ;;  %v4683_v55 = vld [vmem:[%s7415_s4 + $0x30] ss:$8 sps:$4 sm:$0xff]   ;;  %v4685_v39 = vld [vmem:[%s7415_s4 + $0x84] ss:$8 sps:$4 sm:$0xff]  }
 0x300   :  { %v2069_v47 = vmax.f32 %v1993_v17, 0.0  ;;  %v4687_v17 = vld [vmem:[%s7415_s4 + $0x80] ss:$8 sps:$4 sm:$0xff]  }
 0x301   :  { %v2093_v42 = vpack.c.bf16 %v2071_v25, %v2070_v44  ;;  %v4688_v44 = vld [vmem:[%s7415_s4 + $0x94] ss:$8 sps:$4 sm:$0xff]   ;;  %v4690_v25 = vld [vmem:[%s7415_s4 + $0x90] ss:$8 sps:$4 sm:$0xff]  }
 0x302   :  { %v2092_v41 = vpack.c.bf16 %v2069_v47, %v2068_v51  ;;  %v4540_v9 = vpop.f32.mrb[20].mxu0  ;;  %v4691_v51 = vld [vmem:[%s7415_s4 + $0xa4] ss:$8 sps:$4 sm:$0xff]   ;;  %v4693_v47 = vld [vmem:[%s7415_s4 + $0xa0] ss:$8 sps:$4 sm:$0xff]  }
 0x303   :  { %v2014_v50 = vadd.f32 %v4540_v9, %v6502_v5  ;;  %v2005_v19 = vpop.f32.mrb[21].mxu0  ;;  %v4697_v9 = vld [vmem:[%s7415_s4 + $0xc4] ss:$8 sps:$4 sm:$0xff]  }
 0x304   :  { %v2006_v49 = vadd.f32 %v2005_v19, %v6403_v12  ;;  %v4541_v56 = vpop.f32.mrb[22].mxu0  ;;  %4148 = vmatprep.subr.bf16.mxu0 %v2092_v41  ;;  %4550 = vmatprep.subr.bf16.mxu1 %v2092_v41  ;;  %v4696_v41 = vld [vmem:[%s7415_s4 + $0xb0] ss:$8 sps:$4 sm:$0xff]   ;;  %v4700_v19 = vld [vmem:[%s7415_s4 + $0xd4] ss:$8 sps:$4 sm:$0xff]  }
 0x305   :  { %v2017_v27 = vadd.f32 %v4541_v56, %v6476_v34  ;;  %v2008_v20 = vpop.f32.mrb[23].mxu0  ;;  %4149 = vmatpush3.bf16.msra.mxu0 %v6826_v2  ;;  %4558 = vmatpush3.bf16.msra.mxu1 %v6826_v2  ;;  %v2074_v0 = vmax.f32 %v2014_v50, 0.0  ;;  %v4699_v50 = vld [vmem:[%s7415_s4 + $0xc0] ss:$8 sps:$4 sm:$0xff]   ;;  %v4703_v56 = vld [vmem:[%s7415_s4 + $0xe4] ss:$8 sps:$4 sm:$0xff]  }
 0x306   :  { %v2009_v7 = vadd.f32 %v2008_v20, %v6379_v14  ;;  %4150 = vmatprep.subr.bf16.mxu0 %v2093_v42  ;;  %4551 = vmatprep.subr.bf16.mxu1 %v2093_v42  ;;  %v2072_v5 = vmax.f32 %v2006_v49, 0.0  ;;  %v4694_v42 = vld [vmem:[%s7415_s4 + $0xb4] ss:$8 sps:$4 sm:$0xff]   ;;  %v4702_v49 = vld [vmem:[%s7415_s4 + $0xd0] ss:$8 sps:$4 sm:$0xff]  }
 0x307   :  { %v2075_v58 = vmax.f32 %v2017_v27, 0.0  ;;  %v4705_v27 = vld [vmem:[%s7415_s4 + $0xe0] ss:$8 sps:$4 sm:$0xff]   ;;  %v4706_v20 = vld [vmem:[%s7415_s4 + $0xf4] ss:$8 sps:$4 sm:$0xff]  }
 0x308   :  { %v2073_v60 = vmax.f32 %v2009_v7, 0.0  ;;  %v4708_v7 = vld [vmem:[%s7415_s4 + $0xf0] ss:$8 sps:$4 sm:$0xff]  }
 0x309   :  { %v2095_v54 = vpack.c.bf16 %v2075_v58, %v2074_v0  ;;  %4151 = vmatpush3.bf16.msra.mxu0 %v6824_v37  ;;  %4559 = vmatpush3.bf16.msra.mxu1 %v6824_v37  ;;  %v6973_v0 = vpop.permute.xlu0 %2246  ;;  %v6975_v58 = vpop.permute.xlu1 %2251 }
 0x30a   :  { %v2094_v12 = vpack.c.bf16 %v2073_v60, %v2072_v5  ;;  %v4544_v34 = vpop.f32.mrb[24].mxu0 }
 0x30b   :  { %v2030_v32 = vadd.f32 %v4544_v34, %v6665_v16  ;;  %v2021_v31 = vpop.f32.mrb[25].mxu0 }
 0x30c   :  { %v2022_v2 = vadd.f32 %v2021_v31, %v6582_v53  ;;  %v4545_v52 = vpop.f32.mrb[26].mxu0  ;;  %4152 = vmatprep.subr.bf16.mxu0 %v2094_v12  ;;  %4552 = vmatprep.subr.bf16.mxu1 %v2094_v12 }
 0x30d   :  { %v2033_v14 = vadd.f32 %v4545_v52, %v6653_v18  ;;  %v2024_v4 = vpop.f32.mrb[27].mxu0  ;;  %4153 = vmatpush3.bf16.msra.mxu0 %v6834_v48  ;;  %4560 = vmatpush3.bf16.msra.mxu1 %v6834_v48  ;;  %v2078_v37 = vmax.f32 %v2030_v32, 0.0  ;;  %v2167_v5 = vpop.permute.xlu0 %2166 }
 0x30e   :  { %v2025_v36 = vadd.f32 %v2024_v4, %v6564_v26  ;;  %4154 = vmatprep.subr.bf16.mxu0 %v2095_v54  ;;  %4553 = vmatprep.subr.bf16.mxu1 %v2095_v54  ;;  %v2076_v16 = vmax.f32 %v2022_v2, 0.0  ;;  %v2172_v60 = vpop.permute.xlu1 %2171 }
 0x30f   :  { %v2079_v8 = vmax.f32 %v2033_v14, 0.0 }
 0x310   :  { %v2077_v45 = vmax.f32 %v2025_v36, 0.0 }
 0x311   :  { %v2097_v29 = vpack.c.bf16 %v2079_v8, %v2078_v37  ;;  %4155 = vmatpush3.bf16.msra.mxu0 %v6832_v61  ;;  %4561 = vmatpush3.bf16.msra.mxu1 %v6832_v61  ;;  %v6977_v54 = vpop.permute.xlu0 %2256  ;;  %v4711_v8 = vld [vmem:[%s7417_s6 + $0x4] ss:$8 sps:$4 sm:$0xff]  }
 0x312   :  { %v2096_v53 = vpack.c.bf16 %v2077_v45, %v2076_v16  ;;  %v4548_v18 = vpop.f32.mrb[28].mxu0  ;;  %v6979_v12 = vpop.permute.xlu1 %2261 }
 0x313   :  { %v2046_v43 = vadd.f32 %v4548_v18, %v6733_v30  ;;  %v2037_v62 = vpop.f32.mrb[29].mxu0 }
 0x314   :  { %v2038_v48 = vadd.f32 %v2037_v62, %v6696_v10  ;;  %v4549_v6 = vpop.f32.mrb[30].mxu0  ;;  %4156 = vmatprep.subr.bf16.mxu0 %v2096_v53  ;;  %4554 = vmatprep.subr.bf16.mxu1 %v2096_v53 }
 0x315   :  { %v2049_v26 = vadd.f32 %v4549_v6, %v6719_v21  ;;  %v2040_v28 = vpop.f32.mrb[31].mxu0  ;;  %4157 = vmatpush3.bf16.msra.mxu0 %v6842_v59  ;;  %4562 = vmatpush3.bf16.msra.mxu1 %v6842_v59  ;;  %v2082_v61 = vmax.f32 %v2046_v43, 0.0  ;;  %v4664_v21 = vld [vmem:[%s7415_s4 + $0x40] ss:$8 sps:$4 sm:$0xff]   ;;  %v4669_v59 = vld [vmem:[%s7415_s4 + $0x54] ss:$8 sps:$4 sm:$0xff]   ;;  %v2177_v34 = vpop.permute.xlu0 %2176 }
 0x316   :  { %v2041_v24 = vadd.f32 %v2040_v28, %v6688_v22  ;;  %4158 = vmatprep.subr.bf16.mxu0 %v2097_v29  ;;  %4555 = vmatprep.subr.bf16.mxu1 %v2097_v29  ;;  %v2080_v30 = vmax.f32 %v2038_v48, 0.0  ;;  %v4661_v22 = vld [vmem:[%s7415_s4] ss:$8 sps:$4 sm:$0xff]   ;;  %v2182_v32 = vpop.permute.xlu1 %2181 }
 0x317   :  { %v2083_v38 = vmax.f32 %v2049_v26, 0.0 }
 0x318   :  { %v2081_v33 = vmax.f32 %v2041_v24, 0.0 }
 0x319   :  { %v2099_v40 = vpack.c.bf16 %v2083_v38, %v2082_v61  ;;  %4159 = vmatpush3.bf16.msra.mxu0 %v6840_v11  ;;  %4563 = vmatpush3.bf16.msra.mxu1 %v6840_v11  ;;  %v4667_v11 = vld [vmem:[%s7415_s4 + $0x14] ss:$8 sps:$4 sm:$0xff]   ;;  %v6981_v31 = vpop.permute.xlu0 %2266 }
 0x31a   :  { %v2098_v10 = vpack.c.bf16 %v2081_v33, %v2080_v30  ;;  %v6983_v2 = vpop.permute.xlu1 %2271 }
 0x31c   :  { %4160 = vmatprep.subr.bf16.mxu0 %v2098_v10  ;;  %4556 = vmatprep.subr.bf16.mxu1 %v2098_v10 }
 0x31d   :  { %4161 = vmatpush3.bf16.msra.mxu0 %v6849_v63  ;;  %4564 = vmatpush3.bf16.msra.mxu1 %v6849_v63  ;;  %v4673_v63 = vld [vmem:[%s7415_s4 + $0x24] ss:$8 sps:$4 sm:$0xff]   ;;  %v6985_v52 = vpop.permute.xlu0 %2186 }
 0x31e   :  { %4162 = vmatprep.subr.bf16.mxu0 %v2099_v40  ;;  %4557 = vmatprep.subr.bf16.mxu1 %v2099_v40  ;;  %v6987_v14 = vpop.permute.xlu1 %2191 }
 0x321   :  { %4163 = vmatpush3.bf16.msra.mxu0 %v6847_v1  ;;  %4565 = vmatpush3.bf16.msra.mxu1 %v6847_v1  ;;  %v4672_v1 = vld [vmem:[%s7415_s4 + $0x50] ss:$8 sps:$4 sm:$0xff]   ;;  %v6989_v4 = vpop.permute.xlu0 %2276 }
 0x322   :  { %v6991_v36 = vpop.permute.xlu1 %2281 }
 0x324   :  { %2517 = vmatmul.mubr.bf16.vlgmr.msra.gmra.mrb[32].mxu0 %v4661_v22  ;;  %2549 = vmatmul.mubr.bf16.vlgmr.msra.gmra.mrb[0].mxu1 %v4664_v21 }
 0x325   :  { %2524 = vmatprep.mubr.bf16.mxu0 %v4667_v11  ;;  %2556 = vmatprep.mubr.bf16.mxu1 %v4669_v59  ;;  %v6993_v37 = vpop.permute.xlu0 %2196 }
 0x326   :  { %v6998_v16 = vpop.permute.xlu1 %2201 }
 0x329   :  { %v7000_v45 = vpop.permute.xlu0 %2286 }
 0x32a   :  { %v7002_v29 = vpop.permute.xlu1 %2291 }
 0x32c   :  { %2525 = vmatmul.mubr.bf16.gmra.mrb[36].mxu0 %v4671_v15  ;;  %2557 = vmatmul.mubr.bf16.gmra.mrb[4].mxu1 %v4672_v1 }
 0x32d   :  { %2532 = vmatprep.mubr.bf16.mxu0 %v4673_v63  ;;  %2564 = vmatprep.mubr.bf16.mxu1 %v4675_v46  ;;  %v2207_v53 = vpop.permute.xlu0 %2206 }
 0x32e   :  { %v2212_v18 = vpop.permute.xlu1 %2211 }
 0x331   :  { %v7004_v43 = vpop.permute.xlu0 %2296 }
 0x332   :  { %v7006_v62 = vpop.permute.xlu1 %2301 }
 0x334   :  { %2533 = vmatmul.mubr.bf16.gmra.mrb[40].mxu0 %v4677_v3  ;;  %2565 = vmatmul.mubr.bf16.gmra.mrb[8].mxu1 %v4678_v35 }
 0x335   :  { %2540 = vmatprep.mubr.bf16.mxu0 %v4679_v13  ;;  %2572 = vmatprep.mubr.bf16.mxu1 %v4681_v23  ;;  %v2217_v48 = vpop.permute.xlu0 %2216 }
 0x336   :  { %v2222_v6 = vpop.permute.xlu1 %2221 }
 0x339   :  { %v7008_v26 = vpop.permute.xlu0 %2306 }
 0x33a   :  { %v7010_v3 = vpop.permute.xlu1 %2311 }
 0x33c   :  { %2541 = vmatmul.mubr.bf16.gmra.mrb[44].mxu0 %v4683_v55  ;;  %2573 = vmatmul.mubr.bf16.gmra.mrb[12].mxu1 %v4684_v57 }
 0x33d   :  { %2580 = vmatprep.mubr.bf16.mxu1 %v4685_v39  ;;  %3109 = vmatprep.mubr.bf16.mxu0 %v4711_v8  ;;  %v2227_v35 = vpop.permute.xlu0 %2226 }
 0x33e   :  { %v2232_v8 = vpop.permute.xlu1 %2231 }
 0x344   :  { %2581 = vmatmul.mubr.bf16.gmra.mrb[16].mxu1 %v4687_v17 }
 0x345   :  { %2588 = vmatprep.mubr.bf16.mxu1 %v4688_v44 }
 0x34c   :  { %2589 = vmatmul.mubr.bf16.gmra.mrb[20].mxu1 %v4690_v25 }
 0x34d   :  { %2596 = vmatprep.mubr.bf16.mxu1 %v4691_v51 }
 0x354   :  { %2597 = vmatmul.mubr.bf16.gmra.mrb[24].mxu1 %v4693_v47 }
 0x355   :  { %2604 = vmatprep.mubr.bf16.mxu1 %v4694_v42 }
 0x35c   :  { %2605 = vmatmul.mubr.bf16.gmra.mrb[28].mxu1 %v4696_v41 }
 0x35d   :  { %2612 = vmatprep.mubr.bf16.mxu1 %v4697_v9 }
 0x364   :  { %2613 = vmatmul.mubr.bf16.gmra.mrb[32].mxu1 %v4699_v50 }
 0x365   :  { %2620 = vmatprep.mubr.bf16.mxu1 %v4700_v19 }
 0x36c   :  { %2621 = vmatmul.mubr.bf16.gmra.mrb[36].mxu1 %v4702_v49 }
 0x36d   :  { %2628 = vmatprep.mubr.bf16.mxu1 %v4703_v56 }
 0x374   :  { %2629 = vmatmul.mubr.bf16.gmra.mrb[40].mxu1 %v4705_v27 }
 0x375   :  { %2636 = vmatprep.mubr.bf16.mxu1 %v4706_v20 }
 0x37c   :  { %2637 = vmatmul.mubr.bf16.gmra.mrb[44].mxu1 %v4708_v7 }
 0x3f7   :  { %v4164_v28 = vpop.f32.mrb[32].mxu0  ;;  %v4188_v24 = vpop.f32.mrb[0].mxu1 }
 0x3f8   :  { %v4165_v61 = vpop.f32.mrb[33].mxu0  ;;  %v4189_v38 = vpop.f32.mrb[1].mxu1 }
 0x3f9   :  { %v4166_v30 = vadd.f32 %v4165_v61, %v4164_v28  ;;  %v4190_v33 = vadd.f32 %v4189_v38, %v4188_v24  ;;  %v4167_v40 = vpop.f32.mrb[34].mxu0  ;;  %v4191_v10 = vpop.f32.mrb[2].mxu1 }
 0x3fa   :  { %v4168_v22 = vpop.f32.mrb[35].mxu0  ;;  %v4192_v21 = vpop.f32.mrb[3].mxu1 }
 0x3fb   :  { %v2519_v11 = vadd.f32 %v4166_v30, %v2167_v5  ;;  %v2551_v59 = vadd.f32 %v4190_v33, %v2207_v53  ;;  %v4169_v15 = vadd.f32 %v4168_v22, %v4167_v40  ;;  %v4193_v1 = vadd.f32 %v4192_v21, %v4191_v10  ;;  %v7016_v53 = vpop.permute.xlu0 %2316 }
 0x3fd   :  { %v2522_v63 = vadd.f32 %v4169_v15, %v2172_v60  ;;  %v2554_v46 = vadd.f32 %v4193_v1, %v2212_v18  ;;  %v2645_v13 = vmax.f32 %v2519_v11, 0.0  ;;  %v2653_v23 = vmax.f32 %v2551_v59, 0.0 }
 0x3ff   :  { %v2646_v55 = vmax.f32 %v2522_v63, 0.0  ;;  %v2654_v57 = vmax.f32 %v2554_v46, 0.0  ;;  %v4170_v39 = vpop.f32.mrb[36].mxu0  ;;  %v4194_v17 = vpop.f32.mrb[4].mxu1 }
 0x400   :  { %v4171_v44 = vpop.f32.mrb[37].mxu0  ;;  %v4195_v25 = vpop.f32.mrb[5].mxu1 }
 0x401   :  { %v7012_v51 = vpack.c.bf16 %v2646_v55, %v2645_v13  ;;  %v7014_v47 = vpack.c.bf16 %v2654_v57, %v2653_v23  ;;  %v4172_v42 = vadd.f32 %v4171_v44, %v4170_v39  ;;  %v4196_v41 = vadd.f32 %v4195_v25, %v4194_v17  ;;  %v4173_v9 = vpop.f32.mrb[38].mxu0  ;;  %v4197_v50 = vpop.f32.mrb[6].mxu1 }
 0x402   :  { %v4174_v19 = vpop.f32.mrb[39].mxu0  ;;  %v4198_v49 = vpop.f32.mrb[7].mxu1 }
 0x403   :  { %v2527_v56 = vadd.f32 %v4172_v42, %v2177_v34  ;;  %v2559_v27 = vadd.f32 %v4196_v41, %v2217_v48  ;;  %v4175_v20 = vadd.f32 %v4174_v19, %v4173_v9  ;;  %v4199_v7 = vadd.f32 %v4198_v49, %v4197_v50  ;;  %v7024_v23 = vpop.permute.xlu1 %2321  ;;  %v2237_v55 = vpop.permute.xlu0 %2236 }
 0x405   :  { %v2530_v5 = vadd.f32 %v4175_v20, %v2182_v32  ;;  %v2562_v60 = vadd.f32 %v4199_v7, %v2222_v6  ;;  %v2647_v18 = vmax.f32 %v2527_v56, 0.0  ;;  %v2655_v28 = vmax.f32 %v2559_v27, 0.0 }
 0x407   :  { %v2648_v24 = vmax.f32 %v2530_v5, 0.0  ;;  %v2656_v61 = vmax.f32 %v2562_v60, 0.0  ;;  %v4176_v38 = vpop.f32.mrb[40].mxu0  ;;  %v4200_v30 = vpop.f32.mrb[8].mxu1 }
 0x408   :  { %v4177_v33 = vpop.f32.mrb[41].mxu0  ;;  %v4201_v40 = vpop.f32.mrb[9].mxu1 }
 0x409   :  { %v7018_v10 = vpack.c.bf16 %v2648_v24, %v2647_v18  ;;  %v7020_v22 = vpack.c.bf16 %v2656_v61, %v2655_v28  ;;  %v4178_v34 = vadd.f32 %v4177_v33, %v4176_v38  ;;  %v4202_v48 = vadd.f32 %v4201_v40, %v4200_v30  ;;  %v4179_v21 = vpop.f32.mrb[42].mxu0  ;;  %v4203_v32 = vpop.f32.mrb[10].mxu1 }
 0x40a   :  { %v4180_v6 = vpop.f32.mrb[43].mxu0  ;;  %v4204_v11 = vpop.f32.mrb[11].mxu1 }
 0x40b   :  { %v2535_v59 = vadd.f32 %v4178_v34, %v6985_v52  ;;  %v2567_v15 = vadd.f32 %v4202_v48, %v2227_v35  ;;  %v4181_v1 = vadd.f32 %v4180_v6, %v4179_v21  ;;  %v4205_v63 = vadd.f32 %v4204_v11, %v4203_v32 }
 0x40d   :  { %v2538_v46 = vadd.f32 %v4181_v1, %v6987_v14  ;;  %v2570_v13 = vadd.f32 %v4205_v63, %v2232_v8  ;;  %v2649_v57 = vmax.f32 %v2535_v59, 0.0  ;;  %v2657_v39 = vmax.f32 %v2567_v15, 0.0  ;;  %v2242_v8 = vpop.permute.xlu1 %2241 }
 0x40f   :  { %v2650_v17 = vmax.f32 %v2538_v46, 0.0  ;;  %v2658_v44 = vmax.f32 %v2570_v13, 0.0  ;;  %v4182_v25 = vpop.f32.mrb[44].mxu0  ;;  %v4206_v42 = vpop.f32.mrb[12].mxu1 }
 0x410   :  { %v4183_v41 = vpop.f32.mrb[45].mxu0  ;;  %v4207_v9 = vpop.f32.mrb[13].mxu1 }
 0x411   :  { %v7026_v50 = vpack.c.bf16 %v2650_v17, %v2649_v57  ;;  %v7028_v52 = vpack.c.bf16 %v2658_v44, %v2657_v39  ;;  %v4184_v35 = vadd.f32 %v4183_v41, %v4182_v25  ;;  %v4208_v19 = vadd.f32 %v4207_v9, %v4206_v42  ;;  %v4185_v49 = vpop.f32.mrb[46].mxu0  ;;  %v4209_v14 = vpop.f32.mrb[14].mxu1 }
 0x412   :  { %v4186_v56 = vpop.f32.mrb[47].mxu0  ;;  %v4210_v27 = vpop.f32.mrb[15].mxu1 }
 0x413   :  { %v2543_v20 = vadd.f32 %v4184_v35, %v6993_v37  ;;  %v2575_v7 = vadd.f32 %v4208_v19, %v2237_v55  ;;  %v4187_v5 = vadd.f32 %v4186_v56, %v4185_v49  ;;  %v4211_v60 = vadd.f32 %v4210_v27, %v4209_v14 }
 0x415   :  { %v2546_v18 = vadd.f32 %v4187_v5, %v6998_v16  ;;  %v2578_v28 = vadd.f32 %v4211_v60, %v2242_v8  ;;  %v2651_v24 = vmax.f32 %v2543_v20, 0.0  ;;  %v2659_v61 = vmax.f32 %v2575_v7, 0.0 }
 0x417   :  { %v2652_v38 = vmax.f32 %v2546_v18, 0.0  ;;  %v2660_v30 = vmax.f32 %v2578_v28, 0.0  ;;  %v4212_v33 = vpop.f32.mrb[16].mxu1 }
 0x418   :  { %v4213_v40 = vpop.f32.mrb[17].mxu1 }
 0x419   :  { %v2680_v34 = vpack.c.bf16 %v2652_v38, %v2651_v24  ;;  %v7032_v48 = vpack.c.bf16 %v2660_v30, %v2659_v61  ;;  %v4214_v21 = vadd.f32 %v4213_v40, %v4212_v33  ;;  %v4215_v32 = vpop.f32.mrb[18].mxu1 }
 0x41a   :  { %v4216_v6 = vpop.f32.mrb[19].mxu1 }
 0x41b   :  { %v2583_v37 = vadd.f32 %v4214_v21, %v6973_v0  ;;  %v4217_v11 = vadd.f32 %v4216_v6, %v4215_v32 }
 0x41d   :  { %v2586_v59 = vadd.f32 %v4217_v11, %v6975_v58  ;;  %v2661_v15 = vmax.f32 %v2583_v37, 0.0 }
 0x41f   :  { %v2662_v16 = vmax.f32 %v2586_v59, 0.0  ;;  %v4218_v1 = vpop.f32.mrb[20].mxu1 }
 0x420   :  { %v4219_v63 = vpop.f32.mrb[21].mxu1 }
 0x421   :  { %v4220_v46 = vadd.f32 %v4219_v63, %v4218_v1  ;;  %v4221_v13 = vpop.f32.mrb[22].mxu1  ;;  %v2685_v55 = vpack.c.bf16 %v2662_v16, %v2661_v15 }
 0x422   :  { %v4222_v57 = vpop.f32.mrb[23].mxu1 }
 0x423   :  { %v2591_v39 = vadd.f32 %v4220_v46, %v6977_v54  ;;  %v4223_v17 = vadd.f32 %v4222_v57, %v4221_v13  ;;  %4260 = vmatprep.subr.bf16.mxu0 %v2685_v55 }
 0x424   :  { %4261 = vmatpush3.bf16.msra.mxu0 %v7012_v51 }
 0x425   :  { %v2594_v44 = vadd.f32 %v4223_v17, %v6979_v12  ;;  %v2663_v0 = vmax.f32 %v2591_v39, 0.0 }
 0x427   :  { %v2664_v25 = vmax.f32 %v2594_v44, 0.0  ;;  %v4224_v42 = vpop.f32.mrb[24].mxu1 }
 0x428   :  { %v4225_v58 = vpop.f32.mrb[25].mxu1 }
 0x429   :  { %v4226_v41 = vadd.f32 %v4225_v58, %v4224_v42  ;;  %v4227_v9 = vpop.f32.mrb[26].mxu1  ;;  %v2686_v35 = vpack.c.bf16 %v2664_v25, %v2663_v0 }
 0x42a   :  { %v4228_v19 = vpop.f32.mrb[27].mxu1 }
 0x42b   :  { %v2599_v49 = vadd.f32 %v4226_v41, %v6981_v31  ;;  %v4229_v14 = vadd.f32 %v4228_v19, %v4227_v9  ;;  %4262 = vmatprep.subr.bf16.mxu0 %v2686_v35 }
 0x42c   :  { %4263 = vmatpush3.bf16.msra.mxu0 %v7018_v10 }
 0x42d   :  { %v2602_v54 = vadd.f32 %v4229_v14, %v6983_v2  ;;  %v2665_v56 = vmax.f32 %v2599_v49, 0.0 }
 0x42f   :  { %v2666_v51 = vmax.f32 %v2602_v54, 0.0  ;;  %v4230_v27 = vpop.f32.mrb[28].mxu1  ;;  %v4718_v54 = vld [vmem:[%s7417_s6 + $0x34] ss:$8 sps:$4 sm:$0xff]  }
 0x430   :  { %v4231_v12 = vpop.f32.mrb[29].mxu1 }
 0x431   :  { %v4232_v20 = vadd.f32 %v4231_v12, %v4230_v27  ;;  %v4233_v7 = vpop.f32.mrb[30].mxu1  ;;  %v2687_v5 = vpack.c.bf16 %v2666_v51, %v2665_v56  ;;  %v4720_v56 = vld [vmem:[%s7417_s6 + $0x30] ss:$8 sps:$4 sm:$0xff]   ;;  %v4721_v51 = vld [vmem:[%s7417_s6 + $0x44] ss:$8 sps:$4 sm:$0xff]  }
 0x432   :  { %v4234_v60 = vpop.f32.mrb[31].mxu1  ;;  %v4723_v27 = vld [vmem:[%s7417_s6 + $0x40] ss:$8 sps:$4 sm:$0xff]   ;;  %v4724_v12 = vld [vmem:[%s7417_s6 + $0x54] ss:$8 sps:$4 sm:$0xff]  }
 0x433   :  { %v2607_v8 = vadd.f32 %v4232_v20, %v6989_v4  ;;  %v4235_v18 = vadd.f32 %v4234_v60, %v4233_v7  ;;  %4264 = vmatprep.subr.bf16.mxu0 %v2687_v5  ;;  %v4726_v20 = vld [vmem:[%s7417_s6 + $0x50] ss:$8 sps:$4 sm:$0xff]   ;;  %v4727_v7 = vld [vmem:[%s7417_s6 + $0x64] ss:$8 sps:$4 sm:$0xff]   ;;  %v4729_v5 = vld [vmem:[%s7417_s6 + $0x60] ss:$8 sps:$4 sm:$0xff]  }
 0x434   :  { %4265 = vmatpush3.bf16.msra.mxu0 %v7026_v50  ;;  %v4730_v60 = vld [vmem:[%s7417_s6 + $0x74] ss:$8 sps:$4 sm:$0xff]  }
 0x435   :  { %v2610_v31 = vadd.f32 %v4235_v18, %v6991_v36  ;;  %v2667_v28 = vmax.f32 %v2607_v8, 0.0  ;;  %v4732_v8 = vld [vmem:[%s7417_s6 + $0x70] ss:$8 sps:$4 sm:$0xff]   ;;  %v4733_v18 = vld [vmem:[%s7417_s6 + $0x84] ss:$8 sps:$4 sm:$0xff]  }
 0x437   :  { %v2668_v10 = vmax.f32 %v2610_v31, 0.0  ;;  %v4236_v24 = vpop.f32.mrb[32].mxu1  ;;  %v4735_v31 = vld [vmem:[%s7417_s6 + $0x80] ss:$8 sps:$4 sm:$0xff]  }
 0x438   :  { %v4237_v2 = vpop.f32.mrb[33].mxu1 }
 0x439   :  { %v4238_v61 = vadd.f32 %v4237_v2, %v4236_v24  ;;  %v4239_v38 = vpop.f32.mrb[34].mxu1  ;;  %v2688_v30 = vpack.c.bf16 %v2668_v10, %v2667_v28  ;;  %v4736_v28 = vld [vmem:[%s7417_s6 + $0x94] ss:$8 sps:$4 sm:$0xff]   ;;  %v4738_v10 = vld [vmem:[%s7417_s6 + $0x90] ss:$8 sps:$4 sm:$0xff]  }
 0x43a   :  { %v4240_v33 = vpop.f32.mrb[35].mxu1  ;;  %v4739_v24 = vld [vmem:[%s7417_s6 + $0xa4] ss:$8 sps:$4 sm:$0xff]   ;;  %v4741_v2 = vld [vmem:[%s7417_s6 + $0xa0] ss:$8 sps:$4 sm:$0xff]  }
 0x43b   :  { %v2615_v40 = vadd.f32 %v4238_v61, %v7000_v45  ;;  %v4241_v21 = vadd.f32 %v4240_v33, %v4239_v38  ;;  %4266 = vmatprep.subr.bf16.mxu0 %v2688_v30  ;;  %v4742_v61 = vld [vmem:[%s7417_s6 + $0xb4] ss:$8 sps:$4 sm:$0xff]   ;;  %v4744_v38 = vld [vmem:[%s7417_s6 + $0xb0] ss:$8 sps:$4 sm:$0xff]   ;;  %v4745_v30 = vld [vmem:[%s7417_s6 + $0xc4] ss:$8 sps:$4 sm:$0xff]  }
 0x43c   :  { %4267 = vmatpush3.bf16.msra.mxu0 %v2680_v34  ;;  %v4747_v33 = vld [vmem:[%s7417_s6 + $0xc0] ss:$8 sps:$4 sm:$0xff]  }
 0x43d   :  { %v2618_v4 = vadd.f32 %v4241_v21, %v7002_v29  ;;  %v2669_v32 = vmax.f32 %v2615_v40, 0.0  ;;  %v4748_v40 = vld [vmem:[%s7417_s6 + $0xd4] ss:$8 sps:$4 sm:$0xff]   ;;  %v4750_v21 = vld [vmem:[%s7417_s6 + $0xd0] ss:$8 sps:$4 sm:$0xff]  }
 0x43f   :  { %v2670_v6 = vmax.f32 %v2618_v4, 0.0  ;;  %v4242_v50 = vpop.f32.mrb[36].mxu1  ;;  %v4751_v4 = vld [vmem:[%s7417_s6 + $0xe4] ss:$8 sps:$4 sm:$0xff]  }
 0x440   :  { %v4243_v37 = vpop.f32.mrb[37].mxu1 }
 0x441   :  { %v4244_v36 = vadd.f32 %v4243_v37, %v4242_v50  ;;  %v4245_v11 = vpop.f32.mrb[38].mxu1  ;;  %v2689_v59 = vpack.c.bf16 %v2670_v6, %v2669_v32  ;;  %v4753_v32 = vld [vmem:[%s7417_s6 + $0xe0] ss:$8 sps:$4 sm:$0xff]   ;;  %v4754_v6 = vld [vmem:[%s7417_s6 + $0xf4] ss:$8 sps:$4 sm:$0xff]   ;;  %v7150_v37 = vpop.permute.xlu0 %2839 }
 0x442   :  { %v4246_v15 = vpop.f32.mrb[39].mxu1  ;;  %v4756_v50 = vld [vmem:[%s7417_s6 + $0xf0] ss:$8 sps:$4 sm:$0xff]  }
 0x443   :  { %v2623_v16 = vadd.f32 %v4244_v36, %v7004_v43  ;;  %v4247_v1 = vadd.f32 %v4246_v15, %v4245_v11  ;;  %4268 = vmatprep.subr.bf16.mxu0 %v2689_v59  ;;  %v7152_v36 = vpop.permute.xlu1 %2844 }
 0x444   :  { %4269 = vmatpush3.bf16.msra.mxu0 %v7014_v47 }
 0x445   :  { %v2626_v45 = vadd.f32 %v4247_v1, %v7006_v62  ;;  %v2671_v63 = vmax.f32 %v2623_v16, 0.0  ;;  %v2760_v11 = vpop.permute.xlu0 %2759 }
 0x447   :  { %v2672_v34 = vmax.f32 %v2626_v45, 0.0  ;;  %v4248_v46 = vpop.f32.mrb[40].mxu1  ;;  %v2765_v59 = vpop.permute.xlu1 %2764 }
 0x448   :  { %v4249_v29 = vpop.f32.mrb[41].mxu1 }
 0x449   :  { %v4250_v13 = vadd.f32 %v4249_v29, %v4248_v46  ;;  %v4251_v55 = vpop.f32.mrb[42].mxu1  ;;  %v2690_v57 = vpack.c.bf16 %v2672_v34, %v2671_v63  ;;  %v7154_v15 = vpop.permute.xlu0 %2849 }
 0x44a   :  { %v4252_v39 = vpop.f32.mrb[43].mxu1 }
 0x44b   :  { %v2631_v17 = vadd.f32 %v4250_v13, %v7008_v26  ;;  %v4253_v44 = vadd.f32 %v4252_v39, %v4251_v55  ;;  %4270 = vmatprep.subr.bf16.mxu0 %v2690_v57  ;;  %v7156_v16 = vpop.permute.xlu1 %2854 }
 0x44c   :  { %4271 = vmatpush3.bf16.msra.mxu0 %v7020_v22 }
 0x44d   :  { %v2634_v43 = vadd.f32 %v4253_v44, %v7010_v3  ;;  %v2673_v0 = vmax.f32 %v2631_v17, 0.0  ;;  %v4709_v3 = vld [vmem:[%s7417_s6] ss:$8 sps:$4 sm:$0xff]   ;;  %v2770_v1 = vpop.permute.xlu0 %2769 }
 0x44f   :  { %v2674_v47 = vmax.f32 %v2634_v43, 0.0  ;;  %v4254_v25 = vpop.f32.mrb[44].mxu1  ;;  %v2775_v45 = vpop.permute.xlu1 %2774 }
 0x450   :  { %v4255_v62 = vpop.f32.mrb[45].mxu1 }
 0x451   :  { %v4256_v42 = vadd.f32 %v4255_v62, %v4254_v25  ;;  %v4257_v58 = vpop.f32.mrb[46].mxu1  ;;  %v2691_v41 = vpack.c.bf16 %v2674_v47, %v2673_v0  ;;  %v7158_v63 = vpop.permute.xlu0 %2859  ;;  %v4759_v47 = vld [vmem:[%s7419_s8 + $0x4] ss:$8 sps:$4 sm:$0xff]  }
 0x452   :  { %v4258_v9 = vpop.f32.mrb[47].mxu1  ;;  %3702 = vmatprep.mubr.bf16.mxu1 %v4759_v47 }
 0x453   :  { %v2639_v35 = vadd.f32 %v4256_v42, %v7016_v53  ;;  %v4259_v19 = vadd.f32 %v4258_v9, %v4257_v58  ;;  %4272 = vmatprep.subr.bf16.mxu0 %v2691_v41  ;;  %v4712_v53 = vld [vmem:[%s7417_s6 + $0x14] ss:$8 sps:$4 sm:$0xff]   ;;  %v7160_v34 = vpop.permute.xlu1 %2864 }
 0x454   :  { %4273 = vmatpush3.bf16.msra.mxu0 %v7028_v52  ;;  %v4715_v52 = vld [vmem:[%s7417_s6 + $0x24] ss:$8 sps:$4 sm:$0xff]  }
 0x455   :  { %v2642_v26 = vadd.f32 %v4259_v19, %v7024_v23  ;;  %v2675_v49 = vmax.f32 %v2639_v35, 0.0  ;;  %v4714_v23 = vld [vmem:[%s7417_s6 + $0x10] ss:$8 sps:$4 sm:$0xff]   ;;  %v2780_v46 = vpop.permute.xlu0 %2779 }
 0x457   :  { %v2676_v22 = vmax.f32 %v2642_v26, 0.0  ;;  %v2785_v13 = vpop.permute.xlu1 %2784 }
 0x459   :  { %v2692_v14 = vpack.c.bf16 %v2676_v22, %v2675_v49  ;;  %v7162_v0 = vpop.permute.xlu0 %2869 }
 0x45b   :  { %4274 = vmatprep.subr.bf16.mxu0 %v2692_v14  ;;  %v7167_v62 = vpop.permute.xlu1 %2874 }
 0x45c   :  { %4275 = vmatpush3.bf16.msra.mxu0 %v7032_v48  ;;  %v4717_v48 = vld [vmem:[%s7417_s6 + $0x20] ss:$8 sps:$4 sm:$0xff]  }
 0x45d   :  { %v2790_v49 = vpop.permute.xlu0 %2789 }
 0x45f   :  { %3110 = vmatmul.mubr.bf16.vlgmr.msra.gmra.mrb[48].mxu0 %v4709_v3 }
 0x460   :  { %3117 = vmatprep.mubr.bf16.mxu0 %v4712_v53  ;;  %v2795_v53 = vpop.permute.xlu1 %2794 }
 0x467   :  { %3118 = vmatmul.mubr.bf16.gmra.mrb[52].mxu0 %v4714_v23 }
 0x468   :  { %3125 = vmatprep.mubr.bf16.mxu0 %v4715_v52 }
 0x46f   :  { %3126 = vmatmul.mubr.bf16.gmra.mrb[56].mxu0 %v4717_v48 }
 0x470   :  { %3133 = vmatprep.mubr.bf16.mxu0 %v4718_v54 }
 0x477   :  { %3134 = vmatmul.mubr.bf16.gmra.mrb[60].mxu0 %v4720_v56  ;;  %v7171_v56 = vpop.permute.xlu0 %2879 }
 0x478   :  { %3141 = vmatprep.mubr.bf16.mxu0 %v4721_v51 }
 0x47f   :  { %3142 = vmatmul.mubr.bf16.gmra.mrb[64].mxu0 %v4723_v27 }
 0x480   :  { %3149 = vmatprep.mubr.bf16.mxu0 %v4724_v12 }
 0x487   :  { %3150 = vmatmul.mubr.bf16.gmra.mrb[68].mxu0 %v4726_v20 }
 0x488   :  { %3157 = vmatprep.mubr.bf16.mxu0 %v4727_v7  ;;  %v7175_v7 = vpop.permute.xlu1 %2884 }
 0x48f   :  { %3158 = vmatmul.mubr.bf16.gmra.mrb[72].mxu0 %v4729_v5 }
 0x490   :  { %3165 = vmatprep.mubr.bf16.mxu0 %v4730_v60 }
 0x497   :  { %3166 = vmatmul.mubr.bf16.gmra.mrb[76].mxu0 %v4732_v8 }
 0x498   :  { %3173 = vmatprep.mubr.bf16.mxu0 %v4733_v18 }
 0x49f   :  { %3174 = vmatmul.mubr.bf16.gmra.mrb[80].mxu0 %v4735_v31  ;;  %v2800_v31 = vpop.permute.xlu0 %2799 }
 0x4a0   :  { %3181 = vmatprep.mubr.bf16.mxu0 %v4736_v28 }
 0x4a7   :  { %3182 = vmatmul.mubr.bf16.gmra.mrb[84].mxu0 %v4738_v10 }
 0x4a8   :  { %3189 = vmatprep.mubr.bf16.mxu0 %v4739_v24 }
 0x4af   :  { %3190 = vmatmul.mubr.bf16.gmra.mrb[88].mxu0 %v4741_v2  ;;  %v2805_v2 = vpop.permute.xlu1 %2804 }
 0x4b0   :  { %3197 = vmatprep.mubr.bf16.mxu0 %v4742_v61 }
 0x4b7   :  { %3198 = vmatmul.mubr.bf16.gmra.mrb[92].mxu0 %v4744_v38 }
 0x4b8   :  { %3205 = vmatprep.mubr.bf16.mxu0 %v4745_v30 }
 0x4bf   :  { %3206 = vmatmul.mubr.bf16.gmra.mrb[96].mxu0 %v4747_v33 }
 0x4c0   :  { %3213 = vmatprep.mubr.bf16.mxu0 %v4748_v40 }
 0x4c7   :  { %3214 = vmatmul.mubr.bf16.gmra.mrb[100].mxu0 %v4750_v21 }
 0x4c8   :  { %3221 = vmatprep.mubr.bf16.mxu0 %v4751_v4 }
 0x4cf   :  { %3222 = vmatmul.mubr.bf16.gmra.mrb[104].mxu0 %v4753_v32  ;;  %v7179_v32 = vpop.permute.xlu0 %2889 }
 0x4d0   :  { %3229 = vmatprep.mubr.bf16.mxu0 %v4754_v6 }
 0x4d7   :  { %3230 = vmatmul.mubr.bf16.gmra.mrb[108].mxu0 %v4756_v50  ;;  %v7181_v50 = vpop.permute.xlu1 %2894 }
 0x532   :  { %v4276_v29 = vpop.f32.mrb[48].mxu0 }
 0x533   :  { %v4277_v55 = vpop.f32.mrb[49].mxu0 }
 0x534   :  { %v4278_v57 = vadd.f32 %v4277_v55, %v4276_v29  ;;  %v4279_v39 = vpop.f32.mrb[50].mxu0  ;;  %v2810_v55 = vpop.permute.xlu0 %2809 }
 0x535   :  { %v4280_v17 = vpop.f32.mrb[51].mxu0 }
 0x536   :  { %v3112_v44 = vadd.f32 %v4278_v57, %v2760_v11  ;;  %v4281_v43 = vadd.f32 %v4280_v17, %v4279_v39 }
 0x538   :  { %v3115_v25 = vadd.f32 %v4281_v43, %v2765_v59  ;;  %v3238_v42 = vmax.f32 %v3112_v44, 0.0  ;;  %v2815_v44 = vpop.permute.xlu1 %2814 }
 0x53a   :  { %v3239_v58 = vmax.f32 %v3115_v25, 0.0  ;;  %v4282_v41 = vpop.f32.mrb[52].mxu0 }
 0x53b   :  { %v4283_v9 = vpop.f32.mrb[53].mxu0 }
 0x53c   :  { %v7169_v35 = vpack.c.bf16 %v3239_v58, %v3238_v42  ;;  %v4284_v19 = vadd.f32 %v4283_v9, %v4282_v41  ;;  %v4285_v26 = vpop.f32.mrb[54].mxu0  ;;  %v7185_v58 = vpop.permute.xlu0 %2899 }
 0x53d   :  { %v4286_v22 = vpop.f32.mrb[55].mxu0 }
 0x53e   :  { %v3120_v14 = vadd.f32 %v4284_v19, %v2770_v1  ;;  %v4287_v3 = vadd.f32 %v4286_v22, %v4285_v26 }
 0x540   :  { %v3123_v23 = vadd.f32 %v4287_v3, %v2775_v45  ;;  %v3240_v52 = vmax.f32 %v3120_v14, 0.0 }
 0x542   :  { %v3241_v48 = vmax.f32 %v3123_v23, 0.0  ;;  %v4288_v54 = vpop.f32.mrb[56].mxu0  ;;  %v2820_v23 = vpop.permute.xlu0 %2819 }
 0x543   :  { %v4289_v51 = vpop.f32.mrb[57].mxu0 }
 0x544   :  { %v7173_v27 = vpack.c.bf16 %v3241_v48, %v3240_v52  ;;  %v4290_v12 = vadd.f32 %v4289_v51, %v4288_v54  ;;  %v4291_v20 = vpop.f32.mrb[58].mxu0 }
 0x545   :  { %v4292_v5 = vpop.f32.mrb[59].mxu0 }
 0x546   :  { %v3128_v60 = vadd.f32 %v4290_v12, %v2780_v46  ;;  %v4293_v8 = vadd.f32 %v4292_v5, %v4291_v20 }
 0x548   :  { %v3131_v18 = vadd.f32 %v4293_v8, %v2785_v13  ;;  %v3242_v28 = vmax.f32 %v3128_v60, 0.0 }
 0x54a   :  { %v3243_v10 = vmax.f32 %v3131_v18, 0.0  ;;  %v4294_v24 = vpop.f32.mrb[60].mxu0 }
 0x54b   :  { %v4295_v61 = vpop.f32.mrb[61].mxu0 }
 0x54c   :  { %v7177_v38 = vpack.c.bf16 %v3243_v10, %v3242_v28  ;;  %v4296_v30 = vadd.f32 %v4295_v61, %v4294_v24  ;;  %v4297_v33 = vpop.f32.mrb[62].mxu0  ;;  %v7193_v28 = vpop.permute.xlu0 %2909 }
 0x54d   :  { %v4298_v40 = vpop.f32.mrb[63].mxu0 }
 0x54e   :  { %v3136_v21 = vadd.f32 %v4296_v30, %v2790_v49  ;;  %v4299_v4 = vadd.f32 %v4298_v40, %v4297_v33  ;;  %v7189_v49 = vpop.permute.xlu1 %2904 }
 0x550   :  { %v3139_v6 = vadd.f32 %v4299_v4, %v2795_v53  ;;  %v3244_v11 = vmax.f32 %v3136_v21, 0.0 }
 0x552   :  { %v3245_v59 = vmax.f32 %v3139_v6, 0.0  ;;  %v4300_v1 = vpop.f32.mrb[64].mxu0  ;;  %v2825_v51 = vpop.permute.xlu1 %2824 }
 0x553   :  { %v4301_v45 = vpop.f32.mrb[65].mxu0  ;;  %v2830_v6 = vpop.permute.xlu0 %2829 }
 0x554   :  { %v7183_v46 = vpack.c.bf16 %v3245_v59, %v3244_v11  ;;  %v4302_v29 = vadd.f32 %v4301_v45, %v4300_v1  ;;  %v4303_v13 = vpop.f32.mrb[66].mxu0 }
 0x555   :  { %v4304_v57 = vpop.f32.mrb[67].mxu0 }
 0x556   :  { %v3144_v39 = vadd.f32 %v4302_v29, %v2800_v31  ;;  %v4305_v17 = vadd.f32 %v4304_v57, %v4303_v13  ;;  %v7195_v24 = vpop.permute.xlu1 %2914 }
 0x558   :  { %v3147_v43 = vadd.f32 %v4305_v17, %v2805_v2  ;;  %v3246_v47 = vmax.f32 %v3144_v39, 0.0 }
 0x55a   :  { %v3247_v25 = vmax.f32 %v3147_v43, 0.0  ;;  %v4306_v42 = vpop.f32.mrb[68].mxu0  ;;  %v2835_v45 = vpop.permute.xlu1 %2834 }
 0x55b   :  { %v4307_v41 = vpop.f32.mrb[69].mxu0 }
 0x55c   :  { %v7187_v9 = vpack.c.bf16 %v3247_v25, %v3246_v47  ;;  %v4308_v19 = vadd.f32 %v4307_v41, %v4306_v42  ;;  %v4309_v26 = vpop.f32.mrb[70].mxu0 }
 0x55d   :  { %v4310_v22 = vpop.f32.mrb[71].mxu0 }
 0x55e   :  { %v3152_v14 = vadd.f32 %v4308_v19, %v2810_v55  ;;  %v4311_v3 = vadd.f32 %v4310_v22, %v4309_v26 }
 0x560   :  { %v3155_v53 = vadd.f32 %v4311_v3, %v2815_v44  ;;  %v3248_v52 = vmax.f32 %v3152_v14, 0.0 }
 0x562   :  { %v3249_v48 = vmax.f32 %v3155_v53, 0.0  ;;  %v4312_v54 = vpop.f32.mrb[72].mxu0 }
 0x563   :  { %v4313_v12 = vpop.f32.mrb[73].mxu0 }
 0x564   :  { %v7191_v20 = vpack.c.bf16 %v3249_v48, %v3248_v52  ;;  %v4314_v5 = vadd.f32 %v4313_v12, %v4312_v54  ;;  %v4315_v60 = vpop.f32.mrb[74].mxu0 }
 0x565   :  { %v4316_v8 = vpop.f32.mrb[75].mxu0 }
 0x566   :  { %v3160_v18 = vadd.f32 %v4314_v5, %v2820_v23  ;;  %v4317_v31 = vadd.f32 %v4316_v8, %v4315_v60 }
 0x568   :  { %v3163_v10 = vadd.f32 %v4317_v31, %v2825_v51  ;;  %v3250_v2 = vmax.f32 %v3160_v18, 0.0 }
 0x56a   :  { %v3251_v61 = vmax.f32 %v3163_v10, 0.0  ;;  %v4318_v30 = vpop.f32.mrb[76].mxu0 }
 0x56b   :  { %v4319_v33 = vpop.f32.mrb[77].mxu0 }
 0x56c   :  { %v7197_v40 = vpack.c.bf16 %v3251_v61, %v3250_v2  ;;  %v4320_v21 = vadd.f32 %v4319_v33, %v4318_v30  ;;  %v4321_v4 = vpop.f32.mrb[78].mxu0 }
 0x56d   :  { %v4322_v11 = vpop.f32.mrb[79].mxu0 }
 0x56e   :  { %v3168_v59 = vadd.f32 %v4320_v21, %v2830_v6  ;;  %v4323_v1 = vadd.f32 %v4322_v11, %v4321_v4 }
 0x570   :  { %v3171_v29 = vadd.f32 %v4323_v1, %v2835_v45  ;;  %v3252_v13 = vmax.f32 %v3168_v59, 0.0 }
 0x572   :  { %v3253_v55 = vmax.f32 %v3171_v29, 0.0  ;;  %v4324_v57 = vpop.f32.mrb[80].mxu0 }
 0x573   :  { %v4325_v39 = vpop.f32.mrb[81].mxu0 }
 0x574   :  { %v7199_v17 = vpack.c.bf16 %v3253_v55, %v3252_v13  ;;  %v4326_v44 = vadd.f32 %v4325_v39, %v4324_v57  ;;  %v4327_v43 = vpop.f32.mrb[82].mxu0 }
 0x575   :  { %v4328_v47 = vpop.f32.mrb[83].mxu0 }
 0x576   :  { %v3176_v25 = vadd.f32 %v4326_v44, %v7150_v37  ;;  %v4329_v42 = vadd.f32 %v4328_v47, %v4327_v43 }
 0x578   :  { %v3179_v41 = vadd.f32 %v4329_v42, %v7152_v36  ;;  %v3254_v19 = vmax.f32 %v3176_v25, 0.0 }
 0x57a   :  { %v3255_v26 = vmax.f32 %v3179_v41, 0.0  ;;  %v4330_v22 = vpop.f32.mrb[84].mxu0 }
 0x57b   :  { %v4331_v14 = vpop.f32.mrb[85].mxu0 }
 0x57c   :  { %v4332_v3 = vadd.f32 %v4331_v14, %v4330_v22  ;;  %v4333_v53 = vpop.f32.mrb[86].mxu0  ;;  %v3278_v23 = vpack.c.bf16 %v3255_v26, %v3254_v19 }
 0x57d   :  { %v4334_v52 = vpop.f32.mrb[87].mxu0 }
 0x57e   :  { %v3184_v48 = vadd.f32 %v4332_v3, %v7154_v15  ;;  %v4335_v54 = vadd.f32 %v4334_v52, %v4333_v53  ;;  %4372 = vmatprep.subr.bf16.mxu1 %v3278_v23 }
 0x57f   :  { %4373 = vmatpush3.bf16.msra.mxu1 %v7169_v35 }
 0x580   :  { %v3187_v51 = vadd.f32 %v4335_v54, %v7156_v16  ;;  %v3256_v37 = vmax.f32 %v3184_v48, 0.0 }
 0x582   :  { %v3257_v12 = vmax.f32 %v3187_v51, 0.0  ;;  %v4336_v5 = vpop.f32.mrb[88].mxu0 }
 0x583   :  { %v4337_v36 = vpop.f32.mrb[89].mxu0 }
 0x584   :  { %v4338_v60 = vadd.f32 %v4337_v36, %v4336_v5  ;;  %v4339_v8 = vpop.f32.mrb[90].mxu0  ;;  %v3279_v18 = vpack.c.bf16 %v3257_v12, %v3256_v37 }
 0x585   :  { %v4340_v31 = vpop.f32.mrb[91].mxu0 }
 0x586   :  { %v3192_v10 = vadd.f32 %v4338_v60, %v7158_v63  ;;  %v4341_v2 = vadd.f32 %v4340_v31, %v4339_v8  ;;  %4374 = vmatprep.subr.bf16.mxu1 %v3279_v18 }
 0x587   :  { %4375 = vmatpush3.bf16.msra.mxu1 %v7173_v27 }
 0x588   :  { %v3195_v15 = vadd.f32 %v4341_v2, %v7160_v34  ;;  %v3258_v61 = vmax.f32 %v3192_v10, 0.0 }
 0x58a   :  { %v3259_v35 = vmax.f32 %v3195_v15, 0.0  ;;  %v4342_v30 = vpop.f32.mrb[92].mxu0  ;;  %v4766_v15 = vld [vmem:[%s7419_s8 + $0x34] ss:$8 sps:$4 sm:$0xff]  }
 0x58b   :  { %v4343_v16 = vpop.f32.mrb[93].mxu0 }
 0x58c   :  { %v4344_v33 = vadd.f32 %v4343_v16, %v4342_v30  ;;  %v4345_v21 = vpop.f32.mrb[94].mxu0  ;;  %v3280_v4 = vpack.c.bf16 %v3259_v35, %v3258_v61  ;;  %v4768_v61 = vld [vmem:[%s7419_s8 + $0x30] ss:$8 sps:$4 sm:$0xff]   ;;  %v4769_v35 = vld [vmem:[%s7419_s8 + $0x44] ss:$8 sps:$4 sm:$0xff]  }
 0x58d   :  { %v4346_v6 = vpop.f32.mrb[95].mxu0  ;;  %v4771_v30 = vld [vmem:[%s7419_s8 + $0x40] ss:$8 sps:$4 sm:$0xff]   ;;  %v4772_v16 = vld [vmem:[%s7419_s8 + $0x54] ss:$8 sps:$4 sm:$0xff]  }
 0x58e   :  { %v3200_v11 = vadd.f32 %v4344_v33, %v7162_v0  ;;  %v4347_v59 = vadd.f32 %v4346_v6, %v4345_v21  ;;  %4376 = vmatprep.subr.bf16.mxu1 %v3280_v4  ;;  %v4774_v33 = vld [vmem:[%s7419_s8 + $0x50] ss:$8 sps:$4 sm:$0xff]   ;;  %v4775_v21 = vld [vmem:[%s7419_s8 + $0x64] ss:$8 sps:$4 sm:$0xff]   ;;  %v4777_v4 = vld [vmem:[%s7419_s8 + $0x60] ss:$8 sps:$4 sm:$0xff]  }
 0x58f   :  { %4377 = vmatpush3.bf16.msra.mxu1 %v7177_v38  ;;  %v4778_v6 = vld [vmem:[%s7419_s8 + $0x74] ss:$8 sps:$4 sm:$0xff]  }
 0x590   :  { %v3203_v63 = vadd.f32 %v4347_v59, %v7167_v62  ;;  %v3260_v1 = vmax.f32 %v3200_v11, 0.0  ;;  %v4780_v11 = vld [vmem:[%s7419_s8 + $0x70] ss:$8 sps:$4 sm:$0xff]   ;;  %v4781_v59 = vld [vmem:[%s7419_s8 + $0x84] ss:$8 sps:$4 sm:$0xff]  }
 0x592   :  { %v3261_v27 = vmax.f32 %v3203_v63, 0.0  ;;  %v4348_v45 = vpop.f32.mrb[96].mxu0  ;;  %v4783_v63 = vld [vmem:[%s7419_s8 + $0x80] ss:$8 sps:$4 sm:$0xff]  }
 0x593   :  { %v4349_v34 = vpop.f32.mrb[97].mxu0 }
 0x594   :  { %v4350_v29 = vadd.f32 %v4349_v34, %v4348_v45  ;;  %v4351_v13 = vpop.f32.mrb[98].mxu0  ;;  %v3281_v55 = vpack.c.bf16 %v3261_v27, %v3260_v1  ;;  %v4784_v1 = vld [vmem:[%s7419_s8 + $0x94] ss:$8 sps:$4 sm:$0xff]   ;;  %v4786_v27 = vld [vmem:[%s7419_s8 + $0x90] ss:$8 sps:$4 sm:$0xff]  }
 0x595   :  { %v4352_v57 = vpop.f32.mrb[99].mxu0  ;;  %v4787_v45 = vld [vmem:[%s7419_s8 + $0xa4] ss:$8 sps:$4 sm:$0xff]   ;;  %v4789_v34 = vld [vmem:[%s7419_s8 + $0xa0] ss:$8 sps:$4 sm:$0xff]  }
 0x596   :  { %v3208_v39 = vadd.f32 %v4350_v29, %v7171_v56  ;;  %v4353_v44 = vadd.f32 %v4352_v57, %v4351_v13  ;;  %4378 = vmatprep.subr.bf16.mxu1 %v3281_v55  ;;  %v4790_v29 = vld [vmem:[%s7419_s8 + $0xb4] ss:$8 sps:$4 sm:$0xff]   ;;  %v4792_v13 = vld [vmem:[%s7419_s8 + $0xb0] ss:$8 sps:$4 sm:$0xff]   ;;  %v4793_v55 = vld [vmem:[%s7419_s8 + $0xc4] ss:$8 sps:$4 sm:$0xff]  }
 0x597   :  { %4379 = vmatpush3.bf16.msra.mxu1 %v7183_v46  ;;  %v4795_v57 = vld [vmem:[%s7419_s8 + $0xc0] ss:$8 sps:$4 sm:$0xff]  }
 0x598   :  { %v3211_v0 = vadd.f32 %v4353_v44, %v7175_v7  ;;  %v3262_v43 = vmax.f32 %v3208_v39, 0.0  ;;  %v4796_v39 = vld [vmem:[%s7419_s8 + $0xd4] ss:$8 sps:$4 sm:$0xff]   ;;  %v4798_v44 = vld [vmem:[%s7419_s8 + $0xd0] ss:$8 sps:$4 sm:$0xff]  }
 0x59a   :  { %v3263_v38 = vmax.f32 %v3211_v0, 0.0  ;;  %v4354_v47 = vpop.f32.mrb[100].mxu0  ;;  %v4799_v0 = vld [vmem:[%s7419_s8 + $0xe4] ss:$8 sps:$4 sm:$0xff]  }
 0x59b   :  { %v4355_v62 = vpop.f32.mrb[101].mxu0 }
 0x59c   :  { %v4356_v25 = vadd.f32 %v4355_v62, %v4354_v47  ;;  %v4357_v42 = vpop.f32.mrb[102].mxu0  ;;  %v3282_v41 = vpack.c.bf16 %v3263_v38, %v3262_v43  ;;  %v4801_v43 = vld [vmem:[%s7419_s8 + $0xe0] ss:$8 sps:$4 sm:$0xff]   ;;  %v4802_v38 = vld [vmem:[%s7419_s8 + $0xf4] ss:$8 sps:$4 sm:$0xff]   ;;  %v7318_v62 = vpop.permute.xlu0 %3432 }
 0x59d   :  { %v4358_v19 = vpop.f32.mrb[103].mxu0  ;;  %v4804_v47 = vld [vmem:[%s7419_s8 + $0xf0] ss:$8 sps:$4 sm:$0xff]  }
 0x59e   :  { %v3216_v26 = vadd.f32 %v4356_v25, %v7179_v32  ;;  %v4359_v22 = vadd.f32 %v4358_v19, %v4357_v42  ;;  %4380 = vmatprep.subr.bf16.mxu1 %v3282_v41  ;;  %v7320_v25 = vpop.permute.xlu1 %3437 }
 0x59f   :  { %4381 = vmatpush3.bf16.msra.mxu1 %v7187_v9 }
 0x5a0   :  { %v3219_v56 = vadd.f32 %v4359_v22, %v7181_v50  ;;  %v3264_v14 = vmax.f32 %v3216_v26, 0.0  ;;  %v3353_v42 = vpop.permute.xlu0 %3352 }
 0x5a2   :  { %v3265_v46 = vmax.f32 %v3219_v56, 0.0  ;;  %v4360_v3 = vpop.f32.mrb[104].mxu0  ;;  %v3358_v41 = vpop.permute.xlu1 %3357 }
 0x5a3   :  { %v4361_v7 = vpop.f32.mrb[105].mxu0 }
 0x5a4   :  { %v4362_v53 = vadd.f32 %v4361_v7, %v4360_v3  ;;  %v4363_v23 = vpop.f32.mrb[106].mxu0  ;;  %v3283_v52 = vpack.c.bf16 %v3265_v46, %v3264_v14  ;;  %v7322_v19 = vpop.permute.xlu0 %3442 }
 0x5a5   :  { %v4364_v48 = vpop.f32.mrb[107].mxu0 }
 0x5a6   :  { %v3224_v54 = vadd.f32 %v4362_v53, %v7185_v58  ;;  %v4365_v51 = vadd.f32 %v4364_v48, %v4363_v23  ;;  %4382 = vmatprep.subr.bf16.mxu1 %v3283_v52  ;;  %v7324_v26 = vpop.permute.xlu1 %3447 }
 0x5a7   :  { %4383 = vmatpush3.bf16.msra.mxu1 %v7191_v20 }
 0x5a8   :  { %v3227_v32 = vadd.f32 %v4365_v51, %v7189_v49  ;;  %v3266_v37 = vmax.f32 %v3224_v54, 0.0  ;;  %v4757_v49 = vld [vmem:[%s7419_s8] ss:$8 sps:$4 sm:$0xff]   ;;  %v3363_v22 = vpop.permute.xlu0 %3362 }
 0x5aa   :  { %v3267_v9 = vmax.f32 %v3227_v32, 0.0  ;;  %v4366_v12 = vpop.f32.mrb[108].mxu0  ;;  %v3368_v56 = vpop.permute.xlu1 %3367 }
 0x5ab   :  { %v4367_v50 = vpop.f32.mrb[109].mxu0 }
 0x5ac   :  { %v4368_v5 = vadd.f32 %v4367_v50, %v4366_v12  ;;  %v4369_v36 = vpop.f32.mrb[110].mxu0  ;;  %v3284_v60 = vpack.c.bf16 %v3267_v9, %v3266_v37  ;;  %v7326_v14 = vpop.permute.xlu0 %3452  ;;  %v7335_v9 = vld [vmem:[%s7421_s10] sm:$0xff]  ;;  %s4888_s10 = smov [#allocation2]  }
 0x5ad   :  { %v4370_v8 = vpop.f32.mrb[111].mxu0  ;;  %v4125_v50 = vcombine.high %v7335_v9, %v7335_v9  ;;  %s3940_s5 = sshll.u32 %s4888_s10, 4  ;;  %s3941_s5 = int_to_ptr.vmem [resolvable:$true] %s3940_s5 }
 0x5ae   :  { %v3232_v18 = vadd.f32 %v4368_v5, %v7193_v28  ;;  %v4371_v31 = vadd.f32 %v4370_v8, %v4369_v36  ;;  %4384 = vmatprep.subr.bf16.mxu1 %v3284_v60  ;;  %v4760_v28 = vld [vmem:[%s7419_s8 + $0x14] ss:$8 sps:$4 sm:$0xff]   ;;  %v7328_v46 = vpop.permute.xlu1 %3457  ;;  %s4855_s2 = scalar_lea.vmem %s3941_s5, 128  ;;  %p4860_p1 = scmp.lt.s32.totalorder %s3941_s5, %s3941_s5 }
 0x5af   :  { %4385 = vmatpush3.bf16.msra.mxu1 %v7197_v40  ;;  %v4763_v40 = vld [vmem:[%s7419_s8 + $0x24] ss:$8 sps:$4 sm:$0xff]   ;;  %3925 = vmatprep.mubr.bf16.mxu0 %v4125_v50  ;;  %p4856_p0 = scmp.ne.s32.totalorder %s3941_s5, %s4855_s2  ;;  %p4861_p2 = scmp.lt.s32.totalorder %s4855_s2, %s4855_s2 }
 0x5b0   :  { %v3235_v58 = vadd.f32 %v4371_v31, %v7195_v24  ;;  %v3268_v10 = vmax.f32 %v3232_v18, 0.0  ;;  %v4762_v24 = vld [vmem:[%s7419_s8 + $0x10] ss:$8 sps:$4 sm:$0xff]   ;;  %v3373_v3 = vpop.permute.xlu0 %3372 }
 0x5b1   :  { %p4862_p3 = por %p4861_p2, %p4860_p1 }
 0x5b2   :  { %v3269_v20 = vmax.f32 %v3235_v58, 0.0  ;;  %v3378_v53 = vpop.permute.xlu1 %3377 }
 0x5b3   :  { %p4863_p4 = pnand %p4862_p3, %p4856_p0 }
 0x5b4   :  { %v3285_v2 = vpack.c.bf16 %v3269_v20, %v3268_v10  ;;  %v7330_v37 = vpop.permute.xlu0 %3462 }
 0x5b6   :  { %4386 = vmatprep.subr.bf16.mxu1 %v3285_v2  ;;  %v7339_v5 = vpop.permute.xlu1 %3467 }
 0x5b7   :  { %4387 = vmatpush3.bf16.msra.mxu1 %v7199_v17  ;;  %v4765_v17 = vld [vmem:[%s7419_s8 + $0x20] ss:$8 sps:$4 sm:$0xff]  }
 0x5b8   :  { %v3383_v20 = vpop.permute.xlu0 %3382 }
 0x5ba   :  { %3703 = vmatmul.mubr.bf16.vlgmr.msra.gmra.mrb[48].mxu1 %v4757_v49 }
 0x5bb   :  { %3710 = vmatprep.mubr.bf16.mxu1 %v4760_v28 }
 0x5c2   :  { %3711 = vmatmul.mubr.bf16.gmra.mrb[52].mxu1 %v4762_v24  ;;  %v3388_v24 = vpop.permute.xlu1 %3387 }
 0x5c3   :  { %3718 = vmatprep.mubr.bf16.mxu1 %v4763_v40 }
 0x5ca   :  { %3719 = vmatmul.mubr.bf16.gmra.mrb[56].mxu1 %v4765_v17 }
 0x5cb   :  { %3726 = vmatprep.mubr.bf16.mxu1 %v4766_v15 }
 0x5d2   :  { %3727 = vmatmul.mubr.bf16.gmra.mrb[60].mxu1 %v4768_v61 }
 0x5d3   :  { %3734 = vmatprep.mubr.bf16.mxu1 %v4769_v35  ;;  %v7343_v35 = vpop.permute.xlu0 %3472 }
 0x5da   :  { %3735 = vmatmul.mubr.bf16.gmra.mrb[64].mxu1 %v4771_v30 }
 0x5db   :  { %3742 = vmatprep.mubr.bf16.mxu1 %v4772_v16 }
 0x5e2   :  { %3743 = vmatmul.mubr.bf16.gmra.mrb[68].mxu1 %v4774_v33 }
 0x5e3   :  { %3750 = vmatprep.mubr.bf16.mxu1 %v4775_v21 }
 0x5ea   :  { %3751 = vmatmul.mubr.bf16.gmra.mrb[72].mxu1 %v4777_v4  ;;  %v7347_v4 = vpop.permute.xlu1 %3477 }
 0x5eb   :  { %3758 = vmatprep.mubr.bf16.mxu1 %v4778_v6 }
 0x5f2   :  { %3759 = vmatmul.mubr.bf16.gmra.mrb[76].mxu1 %v4780_v11 }
 0x5f3   :  { %3766 = vmatprep.mubr.bf16.mxu1 %v4781_v59 }
 0x5fa   :  { %3767 = vmatmul.mubr.bf16.gmra.mrb[80].mxu1 %v4783_v63 }
 0x5fb   :  { %3774 = vmatprep.mubr.bf16.mxu1 %v4784_v1  ;;  %v3393_v1 = vpop.permute.xlu0 %3392 }
 0x602   :  { %3775 = vmatmul.mubr.bf16.gmra.mrb[84].mxu1 %v4786_v27 }
 0x603   :  { %3782 = vmatprep.mubr.bf16.mxu1 %v4787_v45 }
 0x60a   :  { %3783 = vmatmul.mubr.bf16.gmra.mrb[88].mxu1 %v4789_v34 }
 0x60b   :  { %3790 = vmatprep.mubr.bf16.mxu1 %v4790_v29  ;;  %v3398_v29 = vpop.permute.xlu1 %3397 }
 0x612   :  { %3791 = vmatmul.mubr.bf16.gmra.mrb[92].mxu1 %v4792_v13 }
 0x613   :  { %3798 = vmatprep.mubr.bf16.mxu1 %v4793_v55 }
 0x61a   :  { %3799 = vmatmul.mubr.bf16.gmra.mrb[96].mxu1 %v4795_v57 }
 0x61b   :  { %3806 = vmatprep.mubr.bf16.mxu1 %v4796_v39 }
 0x622   :  { %3807 = vmatmul.mubr.bf16.gmra.mrb[100].mxu1 %v4798_v44 }
 0x623   :  { %3814 = vmatprep.mubr.bf16.mxu1 %v4799_v0 }
 0x62a   :  { %3815 = vmatmul.mubr.bf16.gmra.mrb[104].mxu1 %v4801_v43 }
 0x62b   :  { %3822 = vmatprep.mubr.bf16.mxu1 %v4802_v38  ;;  %v7351_v38 = vpop.permute.xlu0 %3482 }
 0x632   :  { %3823 = vmatmul.mubr.bf16.gmra.mrb[108].mxu1 %v4804_v47 }
 0x68d   :  { %v4388_v7 = vpop.f32.mrb[48].mxu1 }
 0x68e   :  { %v4389_v23 = vpop.f32.mrb[49].mxu1 }
 0x68f   :  { %v4390_v52 = vadd.f32 %v4389_v23, %v4388_v7  ;;  %v4391_v48 = vpop.f32.mrb[50].mxu1 }
 0x690   :  { %v4392_v54 = vpop.f32.mrb[51].mxu1 }
 0x691   :  { %v3705_v51 = vadd.f32 %v4390_v52, %v3353_v42  ;;  %v4393_v32 = vadd.f32 %v4392_v54, %v4391_v48  ;;  %v7353_v42 = vpop.permute.xlu1 %3487  ;;  %v3403_v52 = vpop.permute.xlu0 %3402 }
 0x693   :  { %v3708_v12 = vadd.f32 %v4393_v32, %v3358_v41  ;;  %v3831_v36 = vmax.f32 %v3705_v51, 0.0 }
 0x695   :  { %v3832_v60 = vmax.f32 %v3708_v12, 0.0  ;;  %v4394_v8 = vpop.f32.mrb[52].mxu1  ;;  %v3408_v32 = vpop.permute.xlu1 %3407 }
 0x696   :  { %v4395_v18 = vpop.f32.mrb[53].mxu1 }
 0x697   :  { %v7341_v31 = vpack.c.bf16 %v3832_v60, %v3831_v36  ;;  %v4396_v58 = vadd.f32 %v4395_v18, %v4394_v8  ;;  %v4397_v10 = vpop.f32.mrb[54].mxu1  ;;  %v7357_v8 = vpop.permute.xlu0 %3492 }
 0x698   :  { %v4398_v2 = vpop.f32.mrb[55].mxu1 }
 0x699   :  { %v3713_v49 = vadd.f32 %v4396_v58, %v3363_v22  ;;  %v4399_v28 = vadd.f32 %v4398_v2, %v4397_v10  ;;  %v7361_v2 = vpop.permute.xlu1 %3497 }
 0x69b   :  { %v3716_v40 = vadd.f32 %v4399_v28, %v3368_v56  ;;  %v3833_v17 = vmax.f32 %v3713_v49, 0.0 }
 0x69d   :  { %v3834_v15 = vmax.f32 %v3716_v40, 0.0  ;;  %v4400_v61 = vpop.f32.mrb[56].mxu1 }
 0x69e   :  { %v4401_v30 = vpop.f32.mrb[57].mxu1 }
 0x69f   :  { %v7345_v16 = vpack.c.bf16 %v3834_v15, %v3833_v17  ;;  %v4402_v33 = vadd.f32 %v4401_v30, %v4400_v61  ;;  %v4403_v21 = vpop.f32.mrb[58].mxu1  ;;  %v3413_v17 = vpop.permute.xlu0 %3412 }
 0x6a0   :  { %v4404_v6 = vpop.f32.mrb[59].mxu1 }
 0x6a1   :  { %v3721_v11 = vadd.f32 %v4402_v33, %v3373_v3  ;;  %v4405_v59 = vadd.f32 %v4404_v6, %v4403_v21  ;;  %v3418_v33 = vpop.permute.xlu1 %3417 }
 0x6a3   :  { %v3724_v63 = vadd.f32 %v4405_v59, %v3378_v53  ;;  %v3835_v27 = vmax.f32 %v3721_v11, 0.0 }
 0x6a5   :  { %v3836_v45 = vmax.f32 %v3724_v63, 0.0  ;;  %v4406_v34 = vpop.f32.mrb[60].mxu1 }
 0x6a6   :  { %v4407_v13 = vpop.f32.mrb[61].mxu1 }
 0x6a7   :  { %v7349_v55 = vpack.c.bf16 %v3836_v45, %v3835_v27  ;;  %v4408_v57 = vadd.f32 %v4407_v13, %v4406_v34  ;;  %v4409_v39 = vpop.f32.mrb[62].mxu1  ;;  %v7365_v45 = vpop.permute.xlu0 %3502 }
 0x6a8   :  { %v4410_v44 = vpop.f32.mrb[63].mxu1 }
 0x6a9   :  { %v3729_v0 = vadd.f32 %v4408_v57, %v3383_v20  ;;  %v4411_v43 = vadd.f32 %v4410_v44, %v4409_v39 }
 0x6ab   :  { %v3732_v47 = vadd.f32 %v4411_v43, %v3388_v24  ;;  %v3837_v41 = vmax.f32 %v3729_v0, 0.0 }
 0x6ad   :  { %v3838_v22 = vmax.f32 %v3732_v47, 0.0  ;;  %v4412_v56 = vpop.f32.mrb[64].mxu1 }
 0x6ae   :  { %v4413_v3 = vpop.f32.mrb[65].mxu1 }
 0x6af   :  { %v7355_v7 = vpack.c.bf16 %v3838_v22, %v3837_v41  ;;  %v4414_v53 = vadd.f32 %v4413_v3, %v4412_v56  ;;  %v4415_v23 = vpop.f32.mrb[66].mxu1  ;;  %v3423_v41 = vpop.permute.xlu0 %3422 }
 0x6b0   :  { %v4416_v48 = vpop.f32.mrb[67].mxu1 }
 0x6b1   :  { %v3737_v54 = vadd.f32 %v4414_v53, %v3393_v1  ;;  %v4417_v51 = vadd.f32 %v4416_v48, %v4415_v23 }
 0x6b3   :  { %v3740_v12 = vadd.f32 %v4417_v51, %v3398_v29  ;;  %v3839_v50 = vmax.f32 %v3737_v54, 0.0  ;;  %v7367_v29 = vpop.permute.xlu1 %3507 }
 0x6b5   :  { %v3840_v36 = vmax.f32 %v3740_v12, 0.0  ;;  %v4418_v60 = vpop.f32.mrb[68].mxu1 }
 0x6b6   :  { %v4419_v18 = vpop.f32.mrb[69].mxu1 }
 0x6b7   :  { %v7359_v58 = vpack.c.bf16 %v3840_v36, %v3839_v50  ;;  %v4420_v10 = vadd.f32 %v4419_v18, %v4418_v60  ;;  %v4421_v20 = vpop.f32.mrb[70].mxu1  ;;  %v3428_v53 = vpop.permute.xlu1 %3427 }
 0x6b8   :  { %v4422_v49 = vpop.f32.mrb[71].mxu1 }
 0x6b9   :  { %v3745_v28 = vadd.f32 %v4420_v10, %v3403_v52  ;;  %v4423_v24 = vadd.f32 %v4422_v49, %v4421_v20 }
 0x6bb   :  { %v3748_v40 = vadd.f32 %v4423_v24, %v3408_v32  ;;  %v3841_v15 = vmax.f32 %v3745_v28, 0.0 }
 0x6bd   :  { %v3842_v61 = vmax.f32 %v3748_v40, 0.0  ;;  %v4424_v30 = vpop.f32.mrb[72].mxu1 }
 0x6be   :  { %v4425_v21 = vpop.f32.mrb[73].mxu1 }
 0x6bf   :  { %v7363_v6 = vpack.c.bf16 %v3842_v61, %v3841_v15  ;;  %v4426_v11 = vadd.f32 %v4425_v21, %v4424_v30  ;;  %v4427_v59 = vpop.f32.mrb[74].mxu1 }
 0x6c0   :  { %v4428_v63 = vpop.f32.mrb[75].mxu1 }
 0x6c1   :  { %v3753_v1 = vadd.f32 %v4426_v11, %v3413_v17  ;;  %v4429_v27 = vadd.f32 %v4428_v63, %v4427_v59 }
 0x6c3   :  { %v3756_v34 = vadd.f32 %v4429_v27, %v3418_v33  ;;  %v3843_v13 = vmax.f32 %v3753_v1, 0.0 }
 0x6c5   :  { %v3844_v57 = vmax.f32 %v3756_v34, 0.0  ;;  %v4430_v39 = vpop.f32.mrb[76].mxu1 }
 0x6c6   :  { %v4431_v44 = vpop.f32.mrb[77].mxu1 }
 0x6c7   :  { %v7369_v0 = vpack.c.bf16 %v3844_v57, %v3843_v13  ;;  %v4432_v43 = vadd.f32 %v4431_v44, %v4430_v39  ;;  %v4433_v47 = vpop.f32.mrb[78].mxu1 }
 0x6c8   :  { %v4434_v22 = vpop.f32.mrb[79].mxu1 }
 0x6c9   :  { %v3761_v56 = vadd.f32 %v4432_v43, %v3423_v41  ;;  %v4435_v3 = vadd.f32 %v4434_v22, %v4433_v47 }
 0x6cb   :  { %v3764_v23 = vadd.f32 %v4435_v3, %v3428_v53  ;;  %v3845_v52 = vmax.f32 %v3761_v56, 0.0 }
 0x6cd   :  { %v3846_v48 = vmax.f32 %v3764_v23, 0.0  ;;  %v4436_v54 = vpop.f32.mrb[80].mxu1 }
 0x6ce   :  { %v4437_v51 = vpop.f32.mrb[81].mxu1 }
 0x6cf   :  { %v7371_v32 = vpack.c.bf16 %v3846_v48, %v3845_v52  ;;  %v4438_v12 = vadd.f32 %v4437_v51, %v4436_v54  ;;  %v4439_v50 = vpop.f32.mrb[82].mxu1 }
 0x6d0   :  { %v4440_v36 = vpop.f32.mrb[83].mxu1 }
 0x6d1   :  { %v3769_v60 = vadd.f32 %v4438_v12, %v7318_v62  ;;  %v4441_v18 = vadd.f32 %v4440_v36, %v4439_v50 }
 0x6d3   :  { %v3772_v10 = vadd.f32 %v4441_v18, %v7320_v25  ;;  %v3847_v20 = vmax.f32 %v3769_v60, 0.0 }
 0x6d5   :  { %v3848_v49 = vmax.f32 %v3772_v10, 0.0  ;;  %v4442_v28 = vpop.f32.mrb[84].mxu1 }
 0x6d6   :  { %v4443_v24 = vpop.f32.mrb[85].mxu1 }
 0x6d7   :  { %v4444_v40 = vadd.f32 %v4443_v24, %v4442_v28  ;;  %v4445_v17 = vpop.f32.mrb[86].mxu1  ;;  %v3871_v15 = vpack.c.bf16 %v3848_v49, %v3847_v20 }
 0x6d8   :  { %v4446_v61 = vpop.f32.mrb[87].mxu1 }
 0x6d9   :  { %v3777_v30 = vadd.f32 %v4444_v40, %v7322_v19  ;;  %v4447_v33 = vadd.f32 %v4446_v61, %v4445_v17  ;;  %4484 = vmatprep.subr.bf16.mxu0 %v3871_v15 }
 0x6da   :  { %4485 = vmatpush3.bf16.msra.mxu0 %v7341_v31 }
 0x6db   :  { %v3780_v21 = vadd.f32 %v4447_v33, %v7324_v26  ;;  %v3849_v62 = vmax.f32 %v3777_v30, 0.0 }
 0x6dd   :  { %v3850_v11 = vmax.f32 %v3780_v21, 0.0  ;;  %v4448_v59 = vpop.f32.mrb[88].mxu1 }
 0x6de   :  { %v4449_v25 = vpop.f32.mrb[89].mxu1 }
 0x6df   :  { %v4450_v63 = vadd.f32 %v4449_v25, %v4448_v59  ;;  %v4451_v1 = vpop.f32.mrb[90].mxu1  ;;  %v3872_v27 = vpack.c.bf16 %v3850_v11, %v3849_v62 }
 0x6e0   :  { %v4452_v34 = vpop.f32.mrb[91].mxu1 }
 0x6e1   :  { %v3785_v13 = vadd.f32 %v4450_v63, %v7326_v14  ;;  %v4453_v57 = vadd.f32 %v4452_v34, %v4451_v1  ;;  %4486 = vmatprep.subr.bf16.mxu0 %v3872_v27 }
 0x6e2   :  { %4487 = vmatpush3.bf16.msra.mxu0 %v7345_v16 }
 0x6e3   :  { %v3788_v19 = vadd.f32 %v4453_v57, %v7328_v46  ;;  %v3851_v39 = vmax.f32 %v3785_v13, 0.0 }
 0x6e5   :  { %v3852_v31 = vmax.f32 %v3788_v19, 0.0  ;;  %v4454_v44 = vpop.f32.mrb[92].mxu1 }
 0x6e6   :  { %v4455_v26 = vpop.f32.mrb[93].mxu1 }
 0x6e7   :  { %v4456_v43 = vadd.f32 %v4455_v26, %v4454_v44  ;;  %v4457_v47 = vpop.f32.mrb[94].mxu1  ;;  %v3873_v41 = vpack.c.bf16 %v3852_v31, %v3851_v39  ;;  %v3884_v26 = vpop.permute.xlu0 %3883 }
 0x6e8   :  { %v4458_v22 = vpop.f32.mrb[95].mxu1 }
 0x6e9   :  { %v3793_v56 = vadd.f32 %v4456_v43, %v7330_v37  ;;  %v4459_v3 = vadd.f32 %v4458_v22, %v4457_v47  ;;  %4488 = vmatprep.subr.bf16.mxu0 %v3873_v41 }
 0x6ea   :  { %4489 = vmatpush3.bf16.msra.mxu0 %v7349_v55 }
 0x6eb   :  { %v3796_v14 = vadd.f32 %v4459_v3, %v7339_v5  ;;  %v3853_v53 = vmax.f32 %v3793_v56, 0.0 }
 0x6ed   :  { %v3854_v16 = vmax.f32 %v3796_v14, 0.0  ;;  %v4460_v23 = vpop.f32.mrb[96].mxu1 }
 0x6ee   :  { %v4461_v46 = vpop.f32.mrb[97].mxu1 }
 0x6ef   :  { %v4462_v52 = vadd.f32 %v4461_v46, %v4460_v23  ;;  %v4463_v48 = vpop.f32.mrb[98].mxu1  ;;  %v3874_v54 = vpack.c.bf16 %v3854_v16, %v3853_v53 }
 0x6f0   :  { %v4464_v51 = vpop.f32.mrb[99].mxu1 }
 0x6f1   :  { %v3801_v12 = vadd.f32 %v4462_v52, %v7343_v35  ;;  %v4465_v50 = vadd.f32 %v4464_v51, %v4463_v48  ;;  %4490 = vmatprep.subr.bf16.mxu0 %v3874_v54 }
 0x6f2   :  { %4491 = vmatpush3.bf16.msra.mxu0 %v7355_v7 }
 0x6f3   :  { %v3804_v37 = vadd.f32 %v4465_v50, %v7347_v4  ;;  %v3855_v36 = vmax.f32 %v3801_v12, 0.0 }
 0x6f5   :  { %v3856_v55 = vmax.f32 %v3804_v37, 0.0  ;;  %v4466_v60 = vpop.f32.mrb[100].mxu1 }
 0x6f6   :  { %v4467_v5 = vpop.f32.mrb[101].mxu1 }
 0x6f7   :  { %v4468_v18 = vadd.f32 %v4467_v5, %v4466_v60  ;;  %v4469_v10 = vpop.f32.mrb[102].mxu1  ;;  %v3875_v20 = vpack.c.bf16 %v3856_v55, %v3855_v36 }
 0x6f8   :  { %v4470_v49 = vpop.f32.mrb[103].mxu1 }
 0x6f9   :  { %v3809_v28 = vadd.f32 %v4468_v18, %v7351_v38  ;;  %v4471_v24 = vadd.f32 %v4470_v49, %v4469_v10  ;;  %4492 = vmatprep.subr.bf16.mxu0 %v3875_v20 }
 0x6fa   :  { %4493 = vmatpush3.bf16.msra.mxu0 %v7359_v58 }
 0x6fb   :  { %v3812_v35 = vadd.f32 %v4471_v24, %v7353_v42  ;;  %v3857_v40 = vmax.f32 %v3809_v28, 0.0 }
 0x6fd   :  { %v3858_v7 = vmax.f32 %v3812_v35, 0.0  ;;  %v4472_v17 = vpop.f32.mrb[104].mxu1 }
 0x6fe   :  { %v4473_v4 = vpop.f32.mrb[105].mxu1 }
 0x6ff   :  { %v4474_v15 = vadd.f32 %v4473_v4, %v4472_v17  ;;  %v4475_v61 = vpop.f32.mrb[106].mxu1  ;;  %v3876_v30 = vpack.c.bf16 %v3858_v7, %v3857_v40 }
 0x700   :  { %v4476_v33 = vpop.f32.mrb[107].mxu1 }
 0x701   :  { %v3817_v21 = vadd.f32 %v4474_v15, %v7357_v8  ;;  %v4477_v62 = vadd.f32 %v4476_v33, %v4475_v61  ;;  %4494 = vmatprep.subr.bf16.mxu0 %v3876_v30 }
 0x702   :  { %4495 = vmatpush3.bf16.msra.mxu0 %v7363_v6 }
 0x703   :  { %v3820_v38 = vadd.f32 %v4477_v62, %v7361_v2  ;;  %v3859_v11 = vmax.f32 %v3817_v21, 0.0  ;;  %v4124_v2 = vcombine.low %v7335_v9, %v7335_v9 }
 0x705   :  { %v3860_v58 = vmax.f32 %v3820_v38, 0.0  ;;  %v4478_v59 = vpop.f32.mrb[108].mxu1 }
 0x706   :  { %v4479_v42 = vpop.f32.mrb[109].mxu1 }
 0x707   :  { %v4480_v25 = vadd.f32 %v4479_v42, %v4478_v59  ;;  %v4481_v63 = vpop.f32.mrb[110].mxu1  ;;  %v3877_v1 = vpack.c.bf16 %v3860_v58, %v3859_v11 }
 0x708   :  { %v4482_v27 = vpop.f32.mrb[111].mxu1 }
 0x709   :  { %v3825_v34 = vadd.f32 %v4480_v25, %v7365_v45  ;;  %v4483_v13 = vadd.f32 %v4482_v27, %v4481_v63  ;;  %4496 = vmatprep.subr.bf16.mxu0 %v3877_v1 }
 0x70a   :  { %4497 = vmatpush3.bf16.msra.mxu0 %v7369_v0 }
 0x70b   :  { %v3828_v8 = vadd.f32 %v4483_v13, %v7367_v29  ;;  %v3861_v57 = vmax.f32 %v3825_v34, 0.0 }
 0x70d   :  { %v3862_v6 = vmax.f32 %v3828_v8, 0.0 }
 0x70f   :  { %v3878_v19 = vpack.c.bf16 %v3862_v6, %v3861_v57 }
 0x711   :  { %4498 = vmatprep.subr.bf16.mxu0 %v3878_v19 }
 0x712   :  { %4499 = vmatpush3.bf16.msra.mxu0 %v7371_v32 }
 0x715   :  { %3926 = vmatmul.mubr.bf16.vlgmr.msra.gmra.mrb[112].mxu0 %v4124_v2 }
 0x7e8   :  { %v4500_v39 = vpop.f32.mrb[112].mxu0 }
 0x7e9   :  { %v4501_v31 = vpop.f32.mrb[113].mxu0 }
 0x7ea   :  { %v4502_v45 = vadd.f32 %v4501_v31, %v4500_v39  ;;  %v4503_v44 = vpop.f32.mrb[114].mxu0 }
 0x7eb   :  { %v4504_v0 = vpop.f32.mrb[115].mxu0 }
 0x7ec   :  { %v3928_v43 = vadd.f32 %v4502_v45, %v3884_v26 }
 0x7ee   :  { %3933 = vst [vmem:[#allocation2] sm:$0xff] %v3928_v43 }
 0x7ef   :  { %4866 = shalt.err (!%p4863_p4)
}
 0x7f0   :  { %s4867_s19 = scalar_lea.hbm %s7423_s12, 128 }
 0x7f1   :  { %p4868_p5 = scmp.ne.s32.totalorder %s7423_s12, %s4867_s19  ;;  %p4871_p6 = scmp.lt.u32.totalorder %s4867_s19, %s7423_s12 }
 0x7f3   :  { %p4873_p7 = pnand %p4871_p6, %p4868_p5 }
 0x7f5   :  { %4876 = shalt.err (!%p4873_p7)
}
 0x7f6   :  { %3943 = dma.vmem_to_hbm [thread:$0]  %s3941_s5, 128, %s7423_s12, [#allocation3]  }
 0x7f7   :  { %4877 = dma.done.wait [#allocation3], 128  }
 0x7f8   :  { %4878 = vsyncadd [#allocation3], 4294967168 }
 0x7f9   :  { %3947 = vsyncpa [#allocation3], 1 }

</bundles_post_ra>
